<compile_context>
chip_gen: v7x
topology: tpu7x:2x2x1
jax: 0.10.0
libtpu: 0.0.40
codegen_flags: <defaults>
</compile_context>

<pallas_src>
import functools
import math

import numpy as np
import jax
import jax.numpy as jnp
from jax import lax
from jax.experimental import pallas as pl
from jax.experimental.pallas import tpu as pltpu

LN_EPS = 1e-5
INV_SQRT2 = 1.0 / math.sqrt(2.0)
NEG_INF = -1e30


# ----------------------------- small helpers -----------------------------

def _round_up(x, m):
    return (x + m - 1) // m * m


def _pick_tile(n, target):
    """Largest tile <= target that divides n and is a multiple of 8 (or == n)."""
    for cand in range(min(target, n), 0, -1):
        if n % cand == 0 and (cand % 8 == 0 or cand == n):
            return cand
    return n


def _pick_tile_128(n, target):
    """Largest tile <= target that divides n and is a multiple of 128 (or n)."""
    for cand in range(min(target, n), 127, -1):
        if n % cand == 0 and cand % 128 == 0:
            return cand
    return n


@functools.lru_cache(maxsize=1)
def _vmem_limit_bytes():
    # Generation-aware VMEM budget: ~80% of physical per-core VMEM, capped at
    # 100 MiB (v5e/v6e: 128 MiB physical; v7x: 64 MiB).  Conservative fallback
    # if the TPU info query is unavailable.
    try:
        info = pltpu.get_tpu_info()
        cap = getattr(info, "vmem_capacity_bytes", None)
        if cap:
            return int(min(cap * 0.8, 100 * 1024 * 1024))
    except Exception:
        pass
    return 48 * 1024 * 1024


def _cparams(dimension_semantics):
    return pltpu.CompilerParams(dimension_semantics=dimension_semantics,
                                vmem_limit_bytes=_vmem_limit_bytes())


def _layer_norm(x, g, b):
    mu = jnp.mean(x, axis=-1, keepdims=True)
    var = jnp.mean((x - mu) ** 2, axis=-1, keepdims=True)
    return (x - mu) * lax.rsqrt(var + LN_EPS) * g + b


def _gelu(x):
    return 0.5 * x * (1.0 + lax.erf(x * INV_SQRT2))     # exact GELU (nn.GELU)


# ------------------------- row-tiled fused kernels -------------------------

def _in_proj_kernel(x_ref, pos_ref, w_ref, b_ref, o_ref):
    # o = x @ W_in + b_in + pos_emb          (Linear1 + positional embedding)
    x = x_ref[0].astype(w_ref.dtype)
    o = jnp.dot(x, w_ref[...], preferred_element_type=jnp.float32)
    o_ref[0] = (o + b_ref[...] + pos_ref[0]).astype(o_ref.dtype)


def _ln_qkv_kernel(x_ref, g_ref, be_ref, w_ref, b_ref, o_ref):
    # o = LayerNorm(x) @ W_qkv + b_qkv       (fused ln1 + q/k/v projection)
    h = _layer_norm(x_ref[0], g_ref[...], be_ref[...])
    o_ref[0] = (jnp.dot(h.astype(w_ref.dtype), w_ref[...],
                        preferred_element_type=jnp.float32)
                + b_ref[...]).astype(o_ref.dtype)


def _ln_mlp_kernel(x_ref, g_ref, be_ref, w1_ref, b1_ref, w2_ref, b2_ref, o_ref):
    # o = x + FC2(GELU(FC1(LayerNorm(x))))   (fused ln2 + MLP + residual)
    x = x_ref[0]
    h = _layer_norm(x, g_ref[...], be_ref[...])
    h1 = (jnp.dot(h.astype(w1_ref.dtype), w1_ref[...],
                  preferred_element_type=jnp.float32) + b1_ref[...])
    h1 = _gelu(h1)
    h2 = (jnp.dot(h1.astype(w2_ref.dtype), w2_ref[...],
                  preferred_element_type=jnp.float32) + b2_ref[...])
    o_ref[0] = (x + h2).astype(o_ref.dtype)


def _ln_mlp_split_kernel(x_ref, g_ref, be_ref, w1_ref, b1_ref, w2_ref, b2_ref,
                         o_ref, hln_ref, acc_ref):
    # Hidden-dim (4C) split variant: grid axis 2 walks hidden chunks; FC2
    # partials accumulate into a (tile, C) f32 scratch (keeps v7x VMEM small).
    hj = pl.program_id(2)

    @pl.when(hj == 0)
    def _init():
        hln_ref[...] = _layer_norm(x_ref[0], g_ref[...], be_ref[...])
        acc_ref[...] = jnp.zeros_like(acc_ref)

    h1 = (jnp.dot(hln_ref[...].astype(w1_ref.dtype), w1_ref[...],
                  preferred_element_type=jnp.float32) + b1_ref[...])
    h1 = _gelu(h1)
    acc_ref[...] += jnp.dot(h1.astype(w2_ref.dtype), w2_ref[...],
                            preferred_element_type=jnp.float32)

    @pl.when(hj == pl.num_programs(2) - 1)
    def _finalize():
        o_ref[0] = (x_ref[0] + acc_ref[...] + b2_ref[...]).astype(o_ref.dtype)


def _linear_kernel(x_ref, w_ref, b_ref, o_ref):
    # o = x @ W + b                          (Linear2)
    o_ref[0] = (jnp.dot(x_ref[0].astype(w_ref.dtype), w_ref[...],
                        preferred_element_type=jnp.float32)
                + b_ref[...]).astype(o_ref.dtype)


# --------------------- flash-style causal attention ---------------------

def _flash_attn_kernel(q_ref, k_ref, v_ref, xres_ref, wp_ref, bp_ref, o_ref,
                       acc_ref, m_ref, l_ref,
                       *, n_head, head_dim, scale, tq, tk, approx_recip):
    qi = pl.program_id(1)
    ki = pl.program_id(2)
    q_start = qi * tq
    kv_start = ki * tk

    @pl.when(ki == 0)
    def _init():
        m_ref[...] = jnp.full(m_ref.shape, NEG_INF, jnp.float32)
        l_ref[...] = jnp.zeros(l_ref.shape, jnp.float32)
        acc_ref[...] = jnp.zeros(acc_ref.shape, jnp.float32)

    def _update(masked):
        q = q_ref[0]            # (tq, C)
        k = k_ref[0]            # (tk, C)
        v = v_ref[0]            # (tk, C)
        if masked:
            row = q_start + lax.broadcasted_iota(jnp.int32, (tq, tk), 0)
            col = kv_start + lax.broadcasted_iota(jnp.int32, (tq, tk), 1)
            keep = col <= row
        for h in range(n_head):                  # static, small head loop
            lo = h * head_dim
            q_h = q[:, lo:lo + head_dim]
            k_h = k[:, lo:lo + head_dim]
            v_h = v[:, lo:lo + head_dim]
            s = lax.dot_general(q_h, k_h, (((1,), (1,)), ((), ())),
                                preferred_element_type=jnp.float32) * scale
            if masked:
                s = jnp.where(keep, s, NEG_INF)
            m_prev = m_ref[h]                                      # (tq, 1)
            m_new = jnp.maximum(m_prev, jnp.max(s, axis=-1, keepdims=True))
            alpha = jnp.exp(m_prev - m_new)
            p = jnp.exp(s - m_new)                                 # (tq, tk)
            l_ref[h] = alpha * l_ref[h] + jnp.sum(p, axis=-1, keepdims=True)
            acc_ref[h] = alpha * acc_ref[h] + jnp.dot(
                p.astype(v_h.dtype), v_h, preferred_element_type=jnp.float32)
            m_ref[h] = m_new

    # Strictly-below-diagonal blocks: mask-free fast path (no iota / select).
    @pl.when(kv_start + (tk - 1) <= q_start)
    def _unmasked():
        _update(masked=False)

    # Diagonal-intersecting blocks: apply the causal mask.
    @pl.when(jnp.logical_and(kv_start + (tk - 1) > q_start,
                             kv_start <= q_start + (tq - 1)))
    def _masked():
        _update(masked=True)

    # Blocks strictly above the diagonal do no work (and, via the clamped K/V
    # index_map, no DMA either).

    @pl.when(ki == pl.num_programs(2) - 1)
    def _finalize():
        # Per-head matmuls against head_dim-row slices of w_proj, accumulated
        # into the output (no n_head-way concatenate); fused proj + residual.
        out = xres_ref[0] + bp_ref[...]
        for h in range(n_head):
            y_h = (acc_ref[h] *
                   pl.reciprocal(l_ref[h], approx=approx_recip)).astype(wp_ref.dtype)
            out = out + jnp.dot(y_h, wp_ref[h * head_dim:(h + 1) * head_dim, :],
                                preferred_element_type=jnp.float32)
        o_ref[0] = out.astype(o_ref.dtype)


# ----------------------------- pallas_call wrappers -----------------------------

def _rowwise_call(kernel, x, consts, out_dim, row_target, out_dtype=jnp.float32):
    """Row-tiled call: x is (B, T, C); consts are full-block resident weights."""
    B, T, C = x.shape
    tt = _pick_tile(T, row_target)
    in_specs = [pl.BlockSpec((1, tt, C), lambda b, t: (b, t, 0))]
    in_specs += [pl.BlockSpec(c.shape, lambda b, t, _n=c.ndim: (0,) * _n)
                 for c in consts]
    return pl.pallas_call(
        kernel,
        out_shape=jax.ShapeDtypeStruct((B, T, out_dim), out_dtype),
        grid=(B, T // tt),
        in_specs=in_specs,
        out_specs=pl.BlockSpec((1, tt, out_dim), lambda b, t: (b, t, 0)),
        compiler_params=_cparams(("parallel", "parallel")),
    )(x, *consts)


def _input_projection(x, pos_emb, w_in, b_in, row_target):
    B, T, Kp = x.shape
    C = w_in.shape[1]
    assert Kp == w_in.shape[0], "pad x with pad_features() before calling"
    tt = _pick_tile(T, row_target)
    return pl.pallas_call(
        _in_proj_kernel,
        out_shape=jax.ShapeDtypeStruct((B, T, C), jnp.float32),
        grid=(B, T // tt),
        in_specs=[
            pl.BlockSpec((1, tt, Kp), lambda b, t: (b, t, 0)),
            pl.BlockSpec((1, tt, C), lambda b, t: (0, t, 0)),      # pos rows
            pl.BlockSpec((Kp, C), lambda b, t: (0, 0)),
            pl.BlockSpec((1, C), lambda b, t: (0, 0)),
        ],
        out_specs=pl.BlockSpec((1, tt, C), lambda b, t: (b, t, 0)),
        compiler_params=_cparams(("parallel", "parallel")),
    )(x, pos_emb, w_in, b_in)


def _attention(qkv, x_res, w_proj, b_proj, n_head, seq_target):
    B, T, C3 = qkv.shape
    C = C3 // 3
    # Split Q/K/V BlockSpecs need 128-aligned last-dim block offsets.
    assert C % 128 == 0, "split-QKV attention requires n_embd % 128 == 0"
    head_dim = C // n_head
    tq = _pick_tile(T, seq_target)
    tk = tq
    approx_recip = w_proj.dtype != jnp.float32
    kernel = functools.partial(
        _flash_attn_kernel, n_head=n_head, head_dim=head_dim,
        scale=1.0 / math.sqrt(head_dim), tq=tq, tk=tk,
        approx_recip=approx_recip)
    # K/V block index is clamped to min(ki, qi): causally-skipped steps
    # re-reference the resident block, so their DMA is elided by the pipeline.
    return pl.pallas_call(
        kernel,
        out_shape=jax.ShapeDtypeStruct((B, T, C), jnp.float32),
        grid=(B, T // tq, T // tk),
        in_specs=[
            pl.BlockSpec((1, tq, C), lambda b, qi, ki: (b, qi, 0)),              # Q
            pl.BlockSpec((1, tk, C),
                         lambda b, qi, ki: (b, jnp.minimum(ki, qi), 1)),          # K
            pl.BlockSpec((1, tk, C),
                         lambda b, qi, ki: (b, jnp.minimum(ki, qi), 2)),          # V
            pl.BlockSpec((1, tq, C), lambda b, qi, ki: (b, qi, 0)),              # res
            pl.BlockSpec(w_proj.shape, lambda b, qi, ki: (0, 0)),
            pl.BlockSpec(b_proj.shape, lambda b, qi, ki: (0, 0)),
        ],
        out_specs=pl.BlockSpec((1, tq, C), lambda b, qi, ki: (b, qi, 0)),
        scratch_shapes=[
            pltpu.VMEM((n_head, tq, head_dim), jnp.float32),  # acc (per head)
            pltpu.VMEM((n_head, tq, 1), jnp.float32),         # running max
            pltpu.VMEM((n_head, tq, 1), jnp.float32),         # running sum
        ],
        compiler_params=_cparams(("parallel", "parallel", "arbitrary")),
    )(qkv, qkv, qkv, x_res, w_proj, b_proj)


def _ln_mlp(x, p, row_target, hidden_tile):
    B, T, C = x.shape
    H = p["w_fc1"].shape[1]
    tt = _pick_tile(T, row_target)
    if hidden_tile is None:
        itemsize = p["w_fc1"].dtype.itemsize
        resident = 2 * (p["w_fc1"].size + p["w_fc2"].size) * itemsize  # dbl-buf
        if resident <= _vmem_limit_bytes() // 2:
            return _rowwise_call(
                _ln_mlp_kernel, x,
                [p["ln2_g"], p["ln2_b"], p["w_fc1"], p["b_fc1"],
                 p["w_fc2"], p["b_fc2"]], C, row_target)
        hidden_tile = 1024
    th = _pick_tile_128(H, hidden_tile)
    return pl.pallas_call(
        _ln_mlp_split_kernel,
        out_shape=jax.ShapeDtypeStruct((B, T, C), jnp.float32),
        grid=(B, T // tt, H // th),
        in_specs=[
            pl.BlockSpec((1, tt, C), lambda b, t, h: (b, t, 0)),
            pl.BlockSpec(p["ln2_g"].shape, lambda b, t, h: (0, 0)),
            pl.BlockSpec(p["ln2_b"].shape, lambda b, t, h: (0, 0)),
            pl.BlockSpec((C, th), lambda b, t, h: (0, h)),
            pl.BlockSpec((1, th), lambda b, t, h: (0, h)),
            pl.BlockSpec((th, C), lambda b, t, h: (h, 0)),
            pl.BlockSpec(p["b_fc2"].shape, lambda b, t, h: (0, 0)),
        ],
        out_specs=pl.BlockSpec((1, tt, C), lambda b, t, h: (b, t, 0)),
        scratch_shapes=[pltpu.VMEM((tt, C), jnp.float32),   # LayerNorm(x)
                        pltpu.VMEM((tt, C), jnp.float32)],  # FC2 accumulator
        compiler_params=_cparams(("parallel", "parallel", "arbitrary")),
    )(x, p["ln2_g"], p["ln2_b"], p["w_fc1"], p["b_fc1"], p["w_fc2"], p["b_fc2"])


# ----------------------------- model forward -----------------------------

def _music_block(x, p, n_head, row_target, seq_target, mlp_hidden_tile):
    C = x.shape[-1]
    qkv = _rowwise_call(
        _ln_qkv_kernel, x,
        [p["ln1_g"], p["ln1_b"], p["w_qkv"], p["b_qkv"]],
        3 * C, row_target, out_dtype=p["w_qkv"].dtype)   # bf16 qkv when bf16 weights
    x = _attention(qkv, x, p["w_proj"], p["b_proj"], n_head, seq_target)
    x = _ln_mlp(x, p, row_target, mlp_hidden_tile)
    return x


def music_encoder(x, params, n_head, *, row_target=512, seq_target=256,
                  mlp_hidden_tile=None):
    """Forward pass.  `x` must already be padded to params['w_in'].shape[0]."""
    C = params["w_in"].shape[1]
    h = _input_projection(x, params["pos_emb"], params["w_in"], params["b_in"],
                          row_target)
    for p in params["blocks"]:
        h = _music_block(h, p, n_head, row_target, seq_target, mlp_hidden_tile)
    return _rowwise_call(_linear_kernel, h,
                         [params["w_out"], params["b_out"]], C, row_target)


# ------------------ one-time (outside-jit) preparation ------------------

def prepare_params(params, mxu_dtype=jnp.float32):
    """Cast MXU weight operands once and pad w_in's in_features to x128.

    Run OUTSIDE jit so the f32->bf16 weight copies are not re-materialized on
    every forward.  Biases, LayerNorm params and pos_emb stay f32.
    """
    def cast(w):
        return w.astype(mxu_dtype)

    w_in = params["w_in"]
    K = w_in.shape[0]
    Kp = _round_up(K, 128)
    if Kp != K:
        w_in = jnp.pad(w_in, ((0, Kp - K), (0, 0)))
    out = dict(params)
    out["w_in"] = cast(w_in)
    out["w_out"] = cast(params["w_out"])
    out["blocks"] = [dict(b, w_qkv=cast(b["w_qkv"]), w_proj=cast(b["w_proj"]),
                          w_fc1=cast(b["w_fc1"]), w_fc2=cast(b["w_fc2"]))
                     for b in params["blocks"]]
    return out


def pad_features(x, k_padded):
    """Pad x's feature dim once (outside jit) to match the padded w_in."""
    K = x.shape[-1]
    if K == k_padded:
        return x
    return jnp.pad(x, ((0, 0), (0, 0), (0, k_padded - K)))


# ----------------------------- params + reference -----------------------------

def init_params(key, n_embd, n_head, n_layer, block_size, in_features=1462):
    keys = jax.random.split(key, 3 + n_layer)

    def lin(k, fi, fo):
        k1, k2 = jax.random.split(k)
        bound = 1.0 / math.sqrt(fi)
        w = jax.random.uniform(k1, (fi, fo), jnp.float32, -bound, bound)
        b = jax.random.uniform(k2, (1, fo), jnp.float32, -bound, bound)
        return w, b

    w_in, b_in = lin(keys[0], in_features, n_embd)
    w_out, b_out = lin(keys[1], n_embd, n_embd)
    # nn.Parameter(torch.zeros(...)) in the module; randomized here so the add
    # is exercised (forward semantics do not depend on the value).
    pos_emb = 0.02 * jax.random.normal(keys[2], (1, block_size, n_embd),
                                       jnp.float32)
    blocks = []
    for li in range(n_layer):
        bk = jax.random.split(keys[3 + li], 6)
        wq, bq = lin(bk[0], n_embd, n_embd)
        wk, bk_ = lin(bk[1], n_embd, n_embd)
        wv, bv = lin(bk[2], n_embd, n_embd)
        wp, bp = lin(bk[3], n_embd, n_embd)
        w1, b1 = lin(bk[4], n_embd, 4 * n_embd)
        w2, b2 = lin(bk[5], 4 * n_embd, n_embd)
        blocks.append(dict(
            ln1_g=jnp.ones((1, n_embd), jnp.float32),
            ln1_b=jnp.zeros((1, n_embd), jnp.float32),
            ln2_g=jnp.ones((1, n_embd), jnp.float32),
            ln2_b=jnp.zeros((1, n_embd), jnp.float32),
            w_qkv=jnp.concatenate([wq, wk, wv], axis=1),
            b_qkv=jnp.concatenate([bq, bk_, bv], axis=1),
            w_proj=wp, b_proj=bp,
            w_fc1=w1, b_fc1=b1, w_fc2=w2, b_fc2=b2))
    return dict(w_in=w_in, b_in=b_in, w_out=w_out, b_out=b_out,
                pos_emb=pos_emb, blocks=blocks)


def ref_forward(x, params, n_head):
    """Pure-JAX reference mirroring the PyTorch forward (dropout = identity)."""
    def ln(h):
        mu = jnp.mean(h, -1, keepdims=True)
        var = jnp.mean((h - mu) ** 2, -1, keepdims=True)
        return (h - mu) / jnp.sqrt(var + LN_EPS)

    B, T, _ = x.shape
    C = params["w_in"].shape[1]
    h = x @ params["w_in"] + params["b_in"] + params["pos_emb"][:, :T, :]
    hd = C // n_head
    for p in params["blocks"]:
        g = ln(h) * p["ln1_g"] + p["ln1_b"]
        qkv = g @ p["w_qkv"] + p["b_qkv"]
        q, k, v = jnp.split(qkv, 3, -1)
        heads = lambda a: a.reshape(B, T, n_head, hd).transpose(0, 2, 1, 3)
        q, k, v = heads(q), heads(k), heads(v)
        att = (q @ jnp.swapaxes(k, -1, -2)) * (1.0 / math.sqrt(hd))
        mask = jnp.tril(jnp.ones((T, T), bool))
        att = jnp.where(mask, att, -jnp.inf)
        att = jax.nn.softmax(att, axis=-1)
        y = (att @ v).transpose(0, 2, 1, 3).reshape(B, T, C)
        h = h + y @ p["w_proj"] + p["b_proj"]
        g = ln(h) * p["ln2_g"] + p["ln2_b"]
        m = g @ p["w_fc1"] + p["b_fc1"]
        m = 0.5 * m * (1.0 + lax.erf(m * INV_SQRT2))
        h = h + m @ p["w_fc2"] + p["b_fc2"]
    return h @ params["w_out"] + params["b_out"]


# ----------------------------- main -----------------------------

if __name__ == "__main__":
    B, T = 2, 16
    # n_embd = 128 keeps the split Q/K/V blocks 128-lane aligned (small but
    # TPU-legal); n_head=4 -> head_dim=32.
    n_embd, n_head, n_layer, block_size = 128, 4, 2, 16
    in_features = 1462

    key = jax.random.PRNGKey(0)
    kx, kp = jax.random.split(key)
    x = jax.random.normal(kx, (B, T, in_features), jnp.float32)
    params = init_params(kp, n_embd, n_head, n_layer, block_size, in_features)

    ref = jax.block_until_ready(ref_forward(x, params, n_head))

    # --- f32 path: exact parity with the PyTorch module semantics ---
    p_f32 = prepare_params(params, jnp.float32)       # pads w_in once
    x_pad = pad_features(x, p_f32["w_in"].shape[0])   # pads x once, outside jit
    fwd = jax.jit(functools.partial(music_encoder, n_head=n_head))
    out = jax.block_until_ready(fwd(x_pad, p_f32))
    assert out.shape == (B, T, n_embd)
    np.testing.assert_allclose(np.asarray(out), np.asarray(ref),
                               rtol=5e-3, atol=5e-3)

    # --- f32 path, forcing the MLP hidden-dim split (v7x VMEM fallback) ---
    fwd_split = jax.jit(functools.partial(music_encoder, n_head=n_head,
                                          mlp_hidden_tile=128))
    out_split = jax.block_until_ready(fwd_split(x_pad, p_f32))
    np.testing.assert_allclose(np.asarray(out_split), np.asarray(ref),
                               rtol=5e-3, atol=5e-3)

    # --- bf16 MXU-operand path (recommended on v5e/v6e/v7x): weights cast
    #     once outside jit; f32 accumulation / LayerNorm / softmax / residual.
    p_bf16 = prepare_params(params, jnp.bfloat16)
    out_bf16 = jax.block_until_ready(fwd(x_pad, p_bf16))
    np.testing.assert_allclose(np.asarray(out_bf16), np.asarray(ref),
                               rtol=5e-2, atol=5e-2)

    print("KERNEL_OK")
</pallas_src>

<mosaic_0001>
module attributes {stable_mosaic.version = 11 : i64} {
  func.func @_ln_qkv_kernel(%arg0: i32, %arg1: i32, %arg2: memref<1x16x128xf32, #tpu.memory_space<vmem>>, %arg3: memref<1x128xf32, #tpu.memory_space<vmem>>, %arg4: memref<1x128xf32, #tpu.memory_space<vmem>>, %arg5: memref<128x384xf32, #tpu.memory_space<vmem>>, %arg6: memref<1x384xf32, #tpu.memory_space<vmem>>, %arg7: memref<1x16x384xf32, #tpu.memory_space<vmem>>) attributes {dimension_semantics = [#tpu.dimension_semantics<parallel>, #tpu.dimension_semantics<parallel>], iteration_bounds = array<i64: 2, 1>, scalar_prefetch = 0 : i64, scratch_operands = 0 : i64, tpu.core_type = #tpu.core_type<tc>, window_params = [{transform_indices = @transform_0, window_bounds = array<i64: 1, 16, 128>}, {pipeline_mode = #tpu.pipeline_mode<synchronous>, transform_indices = @transform_1, window_bounds = array<i64: 1, 128>}, {pipeline_mode = #tpu.pipeline_mode<synchronous>, transform_indices = @transform_2, window_bounds = array<i64: 1, 128>}, {pipeline_mode = #tpu.pipeline_mode<synchronous>, transform_indices = @transform_3, window_bounds = array<i64: 128, 384>}, {pipeline_mode = #tpu.pipeline_mode<synchronous>, transform_indices = @transform_4, window_bounds = array<i64: 1, 384>}, {transform_indices = @transform_5, window_bounds = array<i64: 1, 16, 384>}]} {
    %c0 = arith.constant 0 : index
    %c0_0 = arith.constant 0 : index
    %c0_1 = arith.constant 0 : index
    %0 = vector.load %arg2[%c0, %c0_0, %c0_1] : memref<1x16x128xf32, #tpu.memory_space<vmem>>, vector<1x16x128xf32>
    %1 = vector.shape_cast %0 : vector<1x16x128xf32> to vector<16x128xf32>
    %c0_2 = arith.constant 0 : index
    %c0_3 = arith.constant 0 : index
    %2 = vector.load %arg3[%c0_2, %c0_3] : memref<1x128xf32, #tpu.memory_space<vmem>>, vector<1x128xf32>
    %c0_4 = arith.constant 0 : index
    %c0_5 = arith.constant 0 : index
    %3 = vector.load %arg4[%c0_4, %c0_5] : memref<1x128xf32, #tpu.memory_space<vmem>>, vector<1x128xf32>
    %cst = arith.constant dense<0.000000e+00> : vector<16xf32>
    %4 = vector.multi_reduction <add>, %1, %cst [1] : vector<16x128xf32> to vector<16xf32>
    %5 = vector.shape_cast %4 : vector<16xf32> to vector<16x1xf32>
    %cst_6 = arith.constant 1.280000e+02 : f32
    %6 = vector.broadcast %cst_6 : f32 to vector<16x1xf32>
    %7 = arith.divf %5, %6 : vector<16x1xf32>
    %8 = vector.broadcast %7 : vector<16x1xf32> to vector<16x128xf32>
    %9 = arith.subf %1, %8 : vector<16x128xf32>
    %10 = arith.mulf %9, %9 : vector<16x128xf32>
    %cst_7 = arith.constant dense<0.000000e+00> : vector<16xf32>
    %11 = vector.multi_reduction <add>, %10, %cst_7 [1] : vector<16x128xf32> to vector<16xf32>
    %12 = vector.shape_cast %11 : vector<16xf32> to vector<16x1xf32>
    %cst_8 = arith.constant 1.280000e+02 : f32
    %13 = vector.broadcast %cst_8 : f32 to vector<16x1xf32>
    %14 = arith.divf %12, %13 : vector<16x1xf32>
    %15 = vector.broadcast %7 : vector<16x1xf32> to vector<16x128xf32>
    %16 = arith.subf %1, %15 : vector<16x128xf32>
    %cst_9 = arith.constant 9.99999974E-6 : f32
    %17 = vector.broadcast %cst_9 : f32 to vector<16x1xf32>
    %18 = arith.addf %14, %17 : vector<16x1xf32>
    %19 = math.rsqrt %18 : vector<16x1xf32>
    %20 = vector.broadcast %19 : vector<16x1xf32> to vector<16x128xf32>
    %21 = arith.mulf %16, %20 : vector<16x128xf32>
    %22 = vector.broadcast %2 : vector<1x128xf32> to vector<16x128xf32>
    %23 = arith.mulf %21, %22 : vector<16x128xf32>
    %24 = vector.broadcast %3 : vector<1x128xf32> to vector<16x128xf32>
    %25 = arith.addf %23, %24 : vector<16x128xf32>
    %c0_10 = arith.constant 0 : index
    %c0_11 = arith.constant 0 : index
    %26 = vector.load %arg5[%c0_10, %c0_11] : memref<128x384xf32, #tpu.memory_space<vmem>>, vector<128x384xf32>
    %cst_12 = arith.constant dense<0.000000e+00> : vector<16x384xf32>
    %27 = tpu.matmul %25, %26, %cst_12 {dimension_numbers = #tpu.dot_dimension_numbers<[1], [0], [0], [1], [0, 0, 1, 1], [], []>} : vector<16x128xf32>, vector<128x384xf32>, vector<16x384xf32> -> vector<16x384xf32>
    %c0_13 = arith.constant 0 : index
    %c0_14 = arith.constant 0 : index
    %28 = vector.load %arg6[%c0_13, %c0_14] : memref<1x384xf32, #tpu.memory_space<vmem>>, vector<1x384xf32>
    %29 = vector.broadcast %28 : vector<1x384xf32> to vector<16x384xf32>
    %30 = arith.addf %27, %29 : vector<16x384xf32>
    %c0_15 = arith.constant 0 : index
    %c0_16 = arith.constant 0 : index
    %c0_17 = arith.constant 0 : index
    %31 = vector.load %arg7[%c0_15, %c0_16, %c0_17] : memref<1x16x384xf32, #tpu.memory_space<vmem>>, vector<1x16x384xf32>
    %32 = vector.shape_cast %31 : vector<1x16x384xf32> to vector<16x384xf32>
    %33 = vector.shape_cast %30 : vector<16x384xf32> to vector<1x16x384xf32>
    tpu.vector_store %arg7[%c0_15, %c0_16, %c0_17], %33 {strides = array<i32>} : memref<1x16x384xf32, #tpu.memory_space<vmem>>, vector<1x16x384xf32>,
    return
  }
  func.func @transform_0(%arg0: i32, %arg1: i32) -> (i32, i32, i32) {
    %c0_i32 = arith.constant 0 : i32
    %c0_i32_0 = arith.constant 0 : i32
    return %arg0, %arg1, %c0_i32 : i32, i32, i32
  }
  func.func @transform_1(%arg0: i32, %arg1: i32) -> (i32, i32) {
    %c0_i32 = arith.constant 0 : i32
    %c0_i32_0 = arith.constant 0 : i32
    %c0_i32_1 = arith.constant 0 : i32
    return %c0_i32, %c0_i32_0 : i32, i32
  }
  func.func @transform_2(%arg0: i32, %arg1: i32) -> (i32, i32) {
    %c0_i32 = arith.constant 0 : i32
    %c0_i32_0 = arith.constant 0 : i32
    %c0_i32_1 = arith.constant 0 : i32
    return %c0_i32, %c0_i32_0 : i32, i32
  }
  func.func @transform_3(%arg0: i32, %arg1: i32) -> (i32, i32) {
    %c0_i32 = arith.constant 0 : i32
    %c0_i32_0 = arith.constant 0 : i32
    %c0_i32_1 = arith.constant 0 : i32
    return %c0_i32, %c0_i32_0 : i32, i32
  }
  func.func @transform_4(%arg0: i32, %arg1: i32) -> (i32, i32) {
    %c0_i32 = arith.constant 0 : i32
    %c0_i32_0 = arith.constant 0 : i32
    %c0_i32_1 = arith.constant 0 : i32
    return %c0_i32, %c0_i32_0 : i32, i32
  }
  func.func @transform_5(%arg0: i32, %arg1: i32) -> (i32, i32, i32) {
    %c0_i32 = arith.constant 0 : i32
    %c0_i32_0 = arith.constant 0 : i32
    return %arg0, %arg1, %c0_i32 : i32, i32, i32
  }
}

module attributes {stable_mosaic.version = 11 : i64} {
  func.func @_in_proj_kernel(%arg0: i32, %arg1: i32, %arg2: memref<1x16x1536xf32, #tpu.memory_space<vmem>>, %arg3: memref<1x16x128xf32, #tpu.memory_space<vmem>>, %arg4: memref<1536x128xf32, #tpu.memory_space<vmem>>, %arg5: memref<1x128xf32, #tpu.memory_space<vmem>>, %arg6: memref<1x16x128xf32, #tpu.memory_space<vmem>>) attributes {dimension_semantics = [#tpu.dimension_semantics<parallel>, #tpu.dimension_semantics<parallel>], iteration_bounds = array<i64: 2, 1>, scalar_prefetch = 0 : i64, scratch_operands = 0 : i64, tpu.core_type = #tpu.core_type<tc>, window_params = [{transform_indices = @transform_0, window_bounds = array<i64: 1, 16, 1536>}, {transform_indices = @transform_1, window_bounds = array<i64: 1, 16, 128>}, {pipeline_mode = #tpu.pipeline_mode<synchronous>, transform_indices = @transform_2, window_bounds = array<i64: 1536, 128>}, {pipeline_mode = #tpu.pipeline_mode<synchronous>, transform_indices = @transform_3, window_bounds = array<i64: 1, 128>}, {transform_indices = @transform_4, window_bounds = array<i64: 1, 16, 128>}]} {
    %c0 = arith.constant 0 : index
    %c0_0 = arith.constant 0 : index
    %c0_1 = arith.constant 0 : index
    %0 = vector.load %arg2[%c0, %c0_0, %c0_1] : memref<1x16x1536xf32, #tpu.memory_space<vmem>>, vector<1x16x1536xf32>
    %1 = vector.shape_cast %0 : vector<1x16x1536xf32> to vector<16x1536xf32>
    %c0_2 = arith.constant 0 : index
    %c0_3 = arith.constant 0 : index
    %2 = vector.load %arg4[%c0_2, %c0_3] : memref<1536x128xf32, #tpu.memory_space<vmem>>, vector<1536x128xf32>
    %cst = arith.constant dense<0.000000e+00> : vector<16x128xf32>
    %3 = tpu.matmul %1, %2, %cst {dimension_numbers = #tpu.dot_dimension_numbers<[1], [0], [0], [1], [0, 0, 1, 1], [], []>} : vector<16x1536xf32>, vector<1536x128xf32>, vector<16x128xf32> -> vector<16x128xf32>
    %c0_4 = arith.constant 0 : index
    %c0_5 = arith.constant 0 : index
    %4 = vector.load %arg5[%c0_4, %c0_5] : memref<1x128xf32, #tpu.memory_space<vmem>>, vector<1x128xf32>
    %5 = vector.broadcast %4 : vector<1x128xf32> to vector<16x128xf32>
    %6 = arith.addf %3, %5 : vector<16x128xf32>
    %c0_6 = arith.constant 0 : index
    %c0_7 = arith.constant 0 : index
    %c0_8 = arith.constant 0 : index
    %7 = vector.load %arg3[%c0_6, %c0_7, %c0_8] : memref<1x16x128xf32, #tpu.memory_space<vmem>>, vector<1x16x128xf32>
    %8 = vector.shape_cast %7 : vector<1x16x128xf32> to vector<16x128xf32>
    %9 = arith.addf %6, %8 : vector<16x128xf32>
    %c0_9 = arith.constant 0 : index
    %c0_10 = arith.constant 0 : index
    %c0_11 = arith.constant 0 : index
    %10 = vector.load %arg6[%c0_9, %c0_10, %c0_11] : memref<1x16x128xf32, #tpu.memory_space<vmem>>, vector<1x16x128xf32>
    %11 = vector.shape_cast %10 : vector<1x16x128xf32> to vector<16x128xf32>
    %12 = vector.shape_cast %9 : vector<16x128xf32> to vector<1x16x128xf32>
    tpu.vector_store %arg6[%c0_9, %c0_10, %c0_11], %12 {strides = array<i32>} : memref<1x16x128xf32, #tpu.memory_space<vmem>>, vector<1x16x128xf32>,
    return
  }
  func.func @transform_0(%arg0: i32, %arg1: i32) -> (i32, i32, i32) {
    %c0_i32 = arith.constant 0 : i32
    %c0_i32_0 = arith.constant 0 : i32
    return %arg0, %arg1, %c0_i32 : i32, i32, i32
  }
  func.func @transform_1(%arg0: i32, %arg1: i32) -> (i32, i32, i32) {
    %c0_i32 = arith.constant 0 : i32
    %c0_i32_0 = arith.constant 0 : i32
    %c0_i32_1 = arith.constant 0 : i32
    return %c0_i32, %arg1, %c0_i32_0 : i32, i32, i32
  }
  func.func @transform_2(%arg0: i32, %arg1: i32) -> (i32, i32) {
    %c0_i32 = arith.constant 0 : i32
    %c0_i32_0 = arith.constant 0 : i32
    %c0_i32_1 = arith.constant 0 : i32
    return %c0_i32, %c0_i32_0 : i32, i32
  }
  func.func @transform_3(%arg0: i32, %arg1: i32) -> (i32, i32) {
    %c0_i32 = arith.constant 0 : i32
    %c0_i32_0 = arith.constant 0 : i32
    %c0_i32_1 = arith.constant 0 : i32
    return %c0_i32, %c0_i32_0 : i32, i32
  }
  func.func @transform_4(%arg0: i32, %arg1: i32) -> (i32, i32, i32) {
    %c0_i32 = arith.constant 0 : i32
    %c0_i32_0 = arith.constant 0 : i32
    return %arg0, %arg1, %c0_i32 : i32, i32, i32
  }
}

module attributes {stable_mosaic.version = 11 : i64} {
  func.func @_ln_mlp_kernel(%arg0: i32, %arg1: i32, %arg2: memref<1x16x128xf32, #tpu.memory_space<vmem>>, %arg3: memref<1x128xf32, #tpu.memory_space<vmem>>, %arg4: memref<1x128xf32, #tpu.memory_space<vmem>>, %arg5: memref<128x512xf32, #tpu.memory_space<vmem>>, %arg6: memref<1x512xf32, #tpu.memory_space<vmem>>, %arg7: memref<512x128xf32, #tpu.memory_space<vmem>>, %arg8: memref<1x128xf32, #tpu.memory_space<vmem>>, %arg9: memref<1x16x128xf32, #tpu.memory_space<vmem>>) attributes {dimension_semantics = [#tpu.dimension_semantics<parallel>, #tpu.dimension_semantics<parallel>], iteration_bounds = array<i64: 2, 1>, scalar_prefetch = 0 : i64, scratch_operands = 0 : i64, tpu.core_type = #tpu.core_type<tc>, window_params = [{transform_indices = @transform_0, window_bounds = array<i64: 1, 16, 128>}, {pipeline_mode = #tpu.pipeline_mode<synchronous>, transform_indices = @transform_1, window_bounds = array<i64: 1, 128>}, {pipeline_mode = #tpu.pipeline_mode<synchronous>, transform_indices = @transform_2, window_bounds = array<i64: 1, 128>}, {pipeline_mode = #tpu.pipeline_mode<synchronous>, transform_indices = @transform_3, window_bounds = array<i64: 128, 512>}, {pipeline_mode = #tpu.pipeline_mode<synchronous>, transform_indices = @transform_4, window_bounds = array<i64: 1, 512>}, {pipeline_mode = #tpu.pipeline_mode<synchronous>, transform_indices = @transform_5, window_bounds = array<i64: 512, 128>}, {pipeline_mode = #tpu.pipeline_mode<synchronous>, transform_indices = @transform_6, window_bounds = array<i64: 1, 128>}, {transform_indices = @transform_7, window_bounds = array<i64: 1, 16, 128>}]} {
    %c0 = arith.constant 0 : index
    %c0_0 = arith.constant 0 : index
    %c0_1 = arith.constant 0 : index
    %0 = vector.load %arg2[%c0, %c0_0, %c0_1] : memref<1x16x128xf32, #tpu.memory_space<vmem>>, vector<1x16x128xf32>
    %1 = vector.shape_cast %0 : vector<1x16x128xf32> to vector<16x128xf32>
    %c0_2 = arith.constant 0 : index
    %c0_3 = arith.constant 0 : index
    %2 = vector.load %arg3[%c0_2, %c0_3] : memref<1x128xf32, #tpu.memory_space<vmem>>, vector<1x128xf32>
    %c0_4 = arith.constant 0 : index
    %c0_5 = arith.constant 0 : index
    %3 = vector.load %arg4[%c0_4, %c0_5] : memref<1x128xf32, #tpu.memory_space<vmem>>, vector<1x128xf32>
    %cst = arith.constant dense<0.000000e+00> : vector<16xf32>
    %4 = vector.multi_reduction <add>, %1, %cst [1] : vector<16x128xf32> to vector<16xf32>
    %5 = vector.shape_cast %4 : vector<16xf32> to vector<16x1xf32>
    %cst_6 = arith.constant 1.280000e+02 : f32
    %6 = vector.broadcast %cst_6 : f32 to vector<16x1xf32>
    %7 = arith.divf %5, %6 : vector<16x1xf32>
    %8 = vector.broadcast %7 : vector<16x1xf32> to vector<16x128xf32>
    %9 = arith.subf %1, %8 : vector<16x128xf32>
    %10 = arith.mulf %9, %9 : vector<16x128xf32>
    %cst_7 = arith.constant dense<0.000000e+00> : vector<16xf32>
    %11 = vector.multi_reduction <add>, %10, %cst_7 [1] : vector<16x128xf32> to vector<16xf32>
    %12 = vector.shape_cast %11 : vector<16xf32> to vector<16x1xf32>
    %cst_8 = arith.constant 1.280000e+02 : f32
    %13 = vector.broadcast %cst_8 : f32 to vector<16x1xf32>
    %14 = arith.divf %12, %13 : vector<16x1xf32>
    %15 = vector.broadcast %7 : vector<16x1xf32> to vector<16x128xf32>
    %16 = arith.subf %1, %15 : vector<16x128xf32>
    %cst_9 = arith.constant 9.99999974E-6 : f32
    %17 = vector.broadcast %cst_9 : f32 to vector<16x1xf32>
    %18 = arith.addf %14, %17 : vector<16x1xf32>
    %19 = math.rsqrt %18 : vector<16x1xf32>
    %20 = vector.broadcast %19 : vector<16x1xf32> to vector<16x128xf32>
    %21 = arith.mulf %16, %20 : vector<16x128xf32>
    %22 = vector.broadcast %2 : vector<1x128xf32> to vector<16x128xf32>
    %23 = arith.mulf %21, %22 : vector<16x128xf32>
    %24 = vector.broadcast %3 : vector<1x128xf32> to vector<16x128xf32>
    %25 = arith.addf %23, %24 : vector<16x128xf32>
    %c0_10 = arith.constant 0 : index
    %c0_11 = arith.constant 0 : index
    %26 = vector.load %arg5[%c0_10, %c0_11] : memref<128x512xf32, #tpu.memory_space<vmem>>, vector<128x512xf32>
    %cst_12 = arith.constant dense<0.000000e+00> : vector<16x512xf32>
    %27 = tpu.matmul %25, %26, %cst_12 {dimension_numbers = #tpu.dot_dimension_numbers<[1], [0], [0], [1], [0, 0, 1, 1], [], []>} : vector<16x128xf32>, vector<128x512xf32>, vector<16x512xf32> -> vector<16x512xf32>
    %c0_13 = arith.constant 0 : index
    %c0_14 = arith.constant 0 : index
    %28 = vector.load %arg6[%c0_13, %c0_14] : memref<1x512xf32, #tpu.memory_space<vmem>>, vector<1x512xf32>
    %29 = vector.broadcast %28 : vector<1x512xf32> to vector<16x512xf32>
    %30 = arith.addf %27, %29 : vector<16x512xf32>
    %cst_15 = arith.constant 5.000000e-01 : f32
    %31 = vector.broadcast %cst_15 : f32 to vector<16x512xf32>
    %32 = arith.mulf %31, %30 : vector<16x512xf32>
    %cst_16 = arith.constant 0.707106769 : f32
    %33 = vector.broadcast %cst_16 : f32 to vector<16x512xf32>
    %34 = arith.mulf %30, %33 : vector<16x512xf32>
    %35 = math.erf %34 : vector<16x512xf32>
    %cst_17 = arith.constant 1.000000e+00 : f32
    %36 = vector.broadcast %cst_17 : f32 to vector<16x512xf32>
    %37 = arith.addf %36, %35 : vector<16x512xf32>
    %38 = arith.mulf %32, %37 : vector<16x512xf32>
    %c0_18 = arith.constant 0 : index
    %c0_19 = arith.constant 0 : index
    %39 = vector.load %arg7[%c0_18, %c0_19] : memref<512x128xf32, #tpu.memory_space<vmem>>, vector<512x128xf32>
    %cst_20 = arith.constant dense<0.000000e+00> : vector<16x128xf32>
    %40 = tpu.matmul %38, %39, %cst_20 {dimension_numbers = #tpu.dot_dimension_numbers<[1], [0], [0], [1], [0, 0, 1, 1], [], []>} : vector<16x512xf32>, vector<512x128xf32>, vector<16x128xf32> -> vector<16x128xf32>
    %c0_21 = arith.constant 0 : index
    %c0_22 = arith.constant 0 : index
    %41 = vector.load %arg8[%c0_21, %c0_22] : memref<1x128xf32, #tpu.memory_space<vmem>>, vector<1x128xf32>
    %42 = vector.broadcast %41 : vector<1x128xf32> to vector<16x128xf32>
    %43 = arith.addf %40, %42 : vector<16x128xf32>
    %44 = arith.addf %1, %43 : vector<16x128xf32>
    %c0_23 = arith.constant 0 : index
    %c0_24 = arith.constant 0 : index
    %c0_25 = arith.constant 0 : index
    %45 = vector.load %arg9[%c0_23, %c0_24, %c0_25] : memref<1x16x128xf32, #tpu.memory_space<vmem>>, vector<1x16x128xf32>
    %46 = vector.shape_cast %45 : vector<1x16x128xf32> to vector<16x128xf32>
    %47 = vector.shape_cast %44 : vector<16x128xf32> to vector<1x16x128xf32>
    tpu.vector_store %arg9[%c0_23, %c0_24, %c0_25], %47 {strides = array<i32>} : memref<1x16x128xf32, #tpu.memory_space<vmem>>, vector<1x16x128xf32>,
    return
  }
  func.func @transform_0(%arg0: i32, %arg1: i32) -> (i32, i32, i32) {
    %c0_i32 = arith.constant 0 : i32
    %c0_i32_0 = arith.constant 0 : i32
    return %arg0, %arg1, %c0_i32 : i32, i32, i32
  }
  func.func @transform_1(%arg0: i32, %arg1: i32) -> (i32, i32) {
    %c0_i32 = arith.constant 0 : i32
    %c0_i32_0 = arith.constant 0 : i32
    %c0_i32_1 = arith.constant 0 : i32
    return %c0_i32, %c0_i32_0 : i32, i32
  }
  func.func @transform_2(%arg0: i32, %arg1: i32) -> (i32, i32) {
    %c0_i32 = arith.constant 0 : i32
    %c0_i32_0 = arith.constant 0 : i32
    %c0_i32_1 = arith.constant 0 : i32
    return %c0_i32, %c0_i32_0 : i32, i32
  }
  func.func @transform_3(%arg0: i32, %arg1: i32) -> (i32, i32) {
    %c0_i32 = arith.constant 0 : i32
    %c0_i32_0 = arith.constant 0 : i32
    %c0_i32_1 = arith.constant 0 : i32
    return %c0_i32, %c0_i32_0 : i32, i32
  }
  func.func @transform_4(%arg0: i32, %arg1: i32) -> (i32, i32) {
    %c0_i32 = arith.constant 0 : i32
    %c0_i32_0 = arith.constant 0 : i32
    %c0_i32_1 = arith.constant 0 : i32
    return %c0_i32, %c0_i32_0 : i32, i32
  }
  func.func @transform_5(%arg0: i32, %arg1: i32) -> (i32, i32) {
    %c0_i32 = arith.constant 0 : i32
    %c0_i32_0 = arith.constant 0 : i32
    %c0_i32_1 = arith.constant 0 : i32
    return %c0_i32, %c0_i32_0 : i32, i32
  }
  func.func @transform_6(%arg0: i32, %arg1: i32) -> (i32, i32) {
    %c0_i32 = arith.constant 0 : i32
    %c0_i32_0 = arith.constant 0 : i32
    %c0_i32_1 = arith.constant 0 : i32
    return %c0_i32, %c0_i32_0 : i32, i32
  }
  func.func @transform_7(%arg0: i32, %arg1: i32) -> (i32, i32, i32) {
    %c0_i32 = arith.constant 0 : i32
    %c0_i32_0 = arith.constant 0 : i32
    return %arg0, %arg1, %c0_i32 : i32, i32, i32
  }
}

module attributes {stable_mosaic.version = 11 : i64} {
  func.func @_flash_attn_kernel(%arg0: i32, %arg1: i32, %arg2: i32, %arg3: memref<1x16x128xf32, #tpu.memory_space<vmem>>, %arg4: memref<1x16x128xf32, #tpu.memory_space<vmem>>, %arg5: memref<1x16x128xf32, #tpu.memory_space<vmem>>, %arg6: memref<1x16x128xf32, #tpu.memory_space<vmem>>, %arg7: memref<128x128xf32, #tpu.memory_space<vmem>>, %arg8: memref<1x128xf32, #tpu.memory_space<vmem>>, %arg9: memref<1x16x128xf32, #tpu.memory_space<vmem>>, %arg10: memref<4x16x32xf32, #tpu.memory_space<vmem>>, %arg11: memref<4x16x1xf32, #tpu.memory_space<vmem>>, %arg12: memref<4x16x1xf32, #tpu.memory_space<vmem>>) attributes {dimension_semantics = [#tpu.dimension_semantics<parallel>, #tpu.dimension_semantics<parallel>, #tpu.dimension_semantics<arbitrary>], iteration_bounds = array<i64: 2, 1, 1>, scalar_prefetch = 0 : i64, scratch_operands = 3 : i64, tpu.core_type = #tpu.core_type<tc>, window_params = [{transform_indices = @transform_0, window_bounds = array<i64: 1, 16, 128>}, {transform_indices = @transform_1, window_bounds = array<i64: 1, 16, 128>}, {transform_indices = @transform_2, window_bounds = array<i64: 1, 16, 128>}, {transform_indices = @transform_3, window_bounds = array<i64: 1, 16, 128>}, {pipeline_mode = #tpu.pipeline_mode<synchronous>, transform_indices = @transform_4, window_bounds = array<i64: 128, 128>}, {pipeline_mode = #tpu.pipeline_mode<synchronous>, transform_indices = @transform_5, window_bounds = array<i64: 1, 128>}, {transform_indices = @transform_6, window_bounds = array<i64: 1, 16, 128>}]} {
    %c16_i32 = arith.constant 16 : i32
    %0 = arith.muli %arg1, %c16_i32 : i32
    %c16_i32_0 = arith.constant 16 : i32
    %1 = arith.muli %arg2, %c16_i32_0 : i32
    %c0_i32 = arith.constant 0 : i32
    %2 = arith.cmpi eq, %arg2, %c0_i32 : i32
    %3 = arith.extui %2 : i1 to i32
    %c0_i32_1 = arith.constant 0 : i32
    %4 = arith.cmpi ne, %3, %c0_i32_1 : i32
    scf.if %4 {
      %cst = arith.constant -1.000000e+30 : f32
      %19 = vector.broadcast %cst : f32 to vector<4x16x1xf32>
      %c0 = arith.constant 0 : index
      %c0_8 = arith.constant 0 : index
      %c0_9 = arith.constant 0 : index
      %20 = vector.load %arg11[%c0, %c0_8, %c0_9] : memref<4x16x1xf32, #tpu.memory_space<vmem>>, vector<4x16x1xf32>
      tpu.vector_store %arg11[%c0, %c0_8, %c0_9], %19 {strides = array<i32>} : memref<4x16x1xf32, #tpu.memory_space<vmem>>, vector<4x16x1xf32>,
      %cst_10 = arith.constant 0.000000e+00 : f32
      %21 = vector.broadcast %cst_10 : f32 to vector<4x16x1xf32>
      %c0_11 = arith.constant 0 : index
      %c0_12 = arith.constant 0 : index
      %c0_13 = arith.constant 0 : index
      %22 = vector.load %arg12[%c0_11, %c0_12, %c0_13] : memref<4x16x1xf32, #tpu.memory_space<vmem>>, vector<4x16x1xf32>
      tpu.vector_store %arg12[%c0_11, %c0_12, %c0_13], %21 {strides = array<i32>} : memref<4x16x1xf32, #tpu.memory_space<vmem>>, vector<4x16x1xf32>,
      %cst_14 = arith.constant 0.000000e+00 : f32
      %23 = vector.broadcast %cst_14 : f32 to vector<4x16x32xf32>
      %c0_15 = arith.constant 0 : index
      %c0_16 = arith.constant 0 : index
      %c0_17 = arith.constant 0 : index
      %24 = vector.load %arg10[%c0_15, %c0_16, %c0_17] : memref<4x16x32xf32, #tpu.memory_space<vmem>>, vector<4x16x32xf32>
      tpu.vector_store %arg10[%c0_15, %c0_16, %c0_17], %23 {strides = array<i32>} : memref<4x16x32xf32, #tpu.memory_space<vmem>>, vector<4x16x32xf32>,
    } else {
    }
    %c15_i32 = arith.constant 15 : i32
    %5 = arith.addi %1, %c15_i32 : i32
    %6 = arith.cmpi sle, %5, %0 : i32
    %7 = arith.extui %6 : i1 to i32
    %c0_i32_2 = arith.constant 0 : i32
    %8 = arith.cmpi ne, %7, %c0_i32_2 : i32
    scf.if %8 {
      %c0 = arith.constant 0 : index
      %c0_8 = arith.constant 0 : index
      %c0_9 = arith.constant 0 : index
      %19 = vector.load %arg3[%c0, %c0_8, %c0_9] : memref<1x16x128xf32, #tpu.memory_space<vmem>>, vector<1x16x128xf32>
      %20 = vector.shape_cast %19 : vector<1x16x128xf32> to vector<16x128xf32>
      %c0_10 = arith.constant 0 : index
      %c0_11 = arith.constant 0 : index
      %c0_12 = arith.constant 0 : index
      %21 = vector.load %arg4[%c0_10, %c0_11, %c0_12] : memref<1x16x128xf32, #tpu.memory_space<vmem>>, vector<1x16x128xf32>
      %22 = vector.shape_cast %21 : vector<1x16x128xf32> to vector<16x128xf32>
      %c0_13 = arith.constant 0 : index
      %c0_14 = arith.constant 0 : index
      %c0_15 = arith.constant 0 : index
      %23 = vector.load %arg5[%c0_13, %c0_14, %c0_15] : memref<1x16x128xf32, #tpu.memory_space<vmem>>, vector<1x16x128xf32>
      %24 = vector.shape_cast %23 : vector<1x16x128xf32> to vector<16x128xf32>
      %25 = vector.extract_strided_slice %20 {offsets = [0, 0], sizes = [16, 32], strides = [1, 1]} : vector<16x128xf32> to vector<16x32xf32>
      %26 = vector.extract_strided_slice %22 {offsets = [0, 0], sizes = [16, 32], strides = [1, 1]} : vector<16x128xf32> to vector<16x32xf32>
      %27 = vector.extract_strided_slice %24 {offsets = [0, 0], sizes = [16, 32], strides = [1, 1]} : vector<16x128xf32> to vector<16x32xf32>
      %cst = arith.constant dense<0.000000e+00> : vector<16x16xf32>
      %28 = tpu.matmul %25, %26, %cst {dimension_numbers = #tpu.dot_dimension_numbers<[1], [1], [0], [0], [0, 0, 1, 0], [], []>} : vector<16x32xf32>, vector<16x32xf32>, vector<16x16xf32> -> vector<16x16xf32>
      %cst_16 = arith.constant 0.176776692 : f32
      %29 = vector.broadcast %cst_16 : f32 to vector<16x16xf32>
      %30 = arith.mulf %28, %29 : vector<16x16xf32>
      %c0_17 = arith.constant 0 : index
      %c0_18 = arith.constant 0 : index
      %c0_19 = arith.constant 0 : index
      %31 = vector.load %arg11[%c0_17, %c0_18, %c0_19] : memref<4x16x1xf32, #tpu.memory_space<vmem>>, vector<1x16x1xf32>
      %32 = vector.shape_cast %31 : vector<1x16x1xf32> to vector<16x1xf32>
      %cst_20 = arith.constant dense<0xFF800000> : vector<16xf32>
      %33 = vector.multi_reduction <maximumf>, %30, %cst_20 [1] : vector<16x16xf32> to vector<16xf32>
      %34 = vector.shape_cast %33 : vector<16xf32> to vector<16x1xf32>
      %35 = arith.maximumf %32, %34 : vector<16x1xf32>
      %36 = arith.subf %32, %35 : vector<16x1xf32>
      %37 = math.exp %36 : vector<16x1xf32>
      %38 = vector.broadcast %35 : vector<16x1xf32> to vector<16x16xf32>
      %39 = arith.subf %30, %38 : vector<16x16xf32>
      %40 = math.exp %39 : vector<16x16xf32>
      %c0_21 = arith.constant 0 : index
      %c0_22 = arith.constant 0 : index
      %c0_23 = arith.constant 0 : index
      %41 = vector.load %arg12[%c0_21, %c0_22, %c0_23] : memref<4x16x1xf32, #tpu.memory_space<vmem>>, vector<1x16x1xf32>
      %42 = vector.shape_cast %41 : vector<1x16x1xf32> to vector<16x1xf32>
      %43 = arith.mulf %37, %42 : vector<16x1xf32>
      %cst_24 = arith.constant dense<0.000000e+00> : vector<16xf32>
      %44 = vector.multi_reduction <add>, %40, %cst_24 [1] : vector<16x16xf32> to vector<16xf32>
      %45 = vector.shape_cast %44 : vector<16xf32> to vector<16x1xf32>
      %46 = arith.addf %43, %45 : vector<16x1xf32>
      %c0_25 = arith.constant 0 : index
      %c0_26 = arith.constant 0 : index
      %c0_27 = arith.constant 0 : index
      %47 = vector.load %arg12[%c0_25, %c0_26, %c0_27] : memref<4x16x1xf32, #tpu.memory_space<vmem>>, vector<1x16x1xf32>
      %48 = vector.shape_cast %47 : vector<1x16x1xf32> to vector<16x1xf32>
      %49 = vector.shape_cast %46 : vector<16x1xf32> to vector<1x16x1xf32>
      tpu.vector_store %arg12[%c0_25, %c0_26, %c0_27], %49 {strides = array<i32>} : memref<4x16x1xf32, #tpu.memory_space<vmem>>, vector<1x16x1xf32>,
      %c0_28 = arith.constant 0 : index
      %c0_29 = arith.constant 0 : index
      %c0_30 = arith.constant 0 : index
      %50 = vector.load %arg10[%c0_28, %c0_29, %c0_30] : memref<4x16x32xf32, #tpu.memory_space<vmem>>, vector<1x16x32xf32>
      %51 = vector.shape_cast %50 : vector<1x16x32xf32> to vector<16x32xf32>
      %52 = vector.broadcast %37 : vector<16x1xf32> to vector<16x32xf32>
      %53 = arith.mulf %52, %51 : vector<16x32xf32>
      %cst_31 = arith.constant dense<0.000000e+00> : vector<16x32xf32>
      %54 = tpu.matmul %40, %27, %cst_31 {dimension_numbers = #tpu.dot_dimension_numbers<[1], [0], [0], [1], [0, 0, 1, 1], [], []>} : vector<16x16xf32>, vector<16x32xf32>, vector<16x32xf32> -> vector<16x32xf32>
      %55 = arith.addf %53, %54 : vector<16x32xf32>
      %c0_32 = arith.constant 0 : index
      %c0_33 = arith.constant 0 : index
      %c0_34 = arith.constant 0 : index
      %56 = vector.load %arg10[%c0_32, %c0_33, %c0_34] : memref<4x16x32xf32, #tpu.memory_space<vmem>>, vector<1x16x32xf32>
      %57 = vector.shape_cast %56 : vector<1x16x32xf32> to vector<16x32xf32>
      %58 = vector.shape_cast %55 : vector<16x32xf32> to vector<1x16x32xf32>
      tpu.vector_store %arg10[%c0_32, %c0_33, %c0_34], %58 {strides = array<i32>} : memref<4x16x32xf32, #tpu.memory_space<vmem>>, vector<1x16x32xf32>,
      %c0_35 = arith.constant 0 : index
      %c0_36 = arith.constant 0 : index
      %c0_37 = arith.constant 0 : index
      %59 = vector.load %arg11[%c0_35, %c0_36, %c0_37] : memref<4x16x1xf32, #tpu.memory_space<vmem>>, vector<1x16x1xf32>
      %60 = vector.shape_cast %59 : vector<1x16x1xf32> to vector<16x1xf32>
      %61 = vector.shape_cast %35 : vector<16x1xf32> to vector<1x16x1xf32>
      tpu.vector_store %arg11[%c0_35, %c0_36, %c0_37], %61 {strides = array<i32>} : memref<4x16x1xf32, #tpu.memory_space<vmem>>, vector<1x16x1xf32>,
      %62 = vector.extract_strided_slice %20 {offsets = [0, 32], sizes = [16, 32], strides = [1, 1]} : vector<16x128xf32> to vector<16x32xf32>
      %63 = vector.extract_strided_slice %22 {offsets = [0, 32], sizes = [16, 32], strides = [1, 1]} : vector<16x128xf32> to vector<16x32xf32>
      %64 = vector.extract_strided_slice %24 {offsets = [0, 32], sizes = [16, 32], strides = [1, 1]} : vector<16x128xf32> to vector<16x32xf32>
      %cst_38 = arith.constant dense<0.000000e+00> : vector<16x16xf32>
      %65 = tpu.matmul %62, %63, %cst_38 {dimension_numbers = #tpu.dot_dimension_numbers<[1], [1], [0], [0], [0, 0, 1, 0], [], []>} : vector<16x32xf32>, vector<16x32xf32>, vector<16x16xf32> -> vector<16x16xf32>
      %cst_39 = arith.constant 0.176776692 : f32
      %66 = vector.broadcast %cst_39 : f32 to vector<16x16xf32>
      %67 = arith.mulf %65, %66 : vector<16x16xf32>
      %c1 = arith.constant 1 : index
      %c0_40 = arith.constant 0 : index
      %c0_41 = arith.constant 0 : index
      %68 = vector.load %arg11[%c1, %c0_40, %c0_41] : memref<4x16x1xf32, #tpu.memory_space<vmem>>, vector<1x16x1xf32>
      %69 = vector.shape_cast %68 : vector<1x16x1xf32> to vector<16x1xf32>
      %cst_42 = arith.constant dense<0xFF800000> : vector<16xf32>
      %70 = vector.multi_reduction <maximumf>, %67, %cst_42 [1] : vector<16x16xf32> to vector<16xf32>
      %71 = vector.shape_cast %70 : vector<16xf32> to vector<16x1xf32>
      %72 = arith.maximumf %69, %71 : vector<16x1xf32>
      %73 = arith.subf %69, %72 : vector<16x1xf32>
      %74 = math.exp %73 : vector<16x1xf32>
      %75 = vector.broadcast %72 : vector<16x1xf32> to vector<16x16xf32>
      %76 = arith.subf %67, %75 : vector<16x16xf32>
      %77 = math.exp %76 : vector<16x16xf32>
      %c1_43 = arith.constant 1 : index
      %c0_44 = arith.constant 0 : index
      %c0_45 = arith.constant 0 : index
      %78 = vector.load %arg12[%c1_43, %c0_44, %c0_45] : memref<4x16x1xf32, #tpu.memory_space<vmem>>, vector<1x16x1xf32>
      %79 = vector.shape_cast %78 : vector<1x16x1xf32> to vector<16x1xf32>
      %80 = arith.mulf %74, %79 : vector<16x1xf32>
      %cst_46 = arith.constant dense<0.000000e+00> : vector<16xf32>
      %81 = vector.multi_reduction <add>, %77, %cst_46 [1] : vector<16x16xf32> to vector<16xf32>
      %82 = vector.shape_cast %81 : vector<16xf32> to vector<16x1xf32>
      %83 = arith.addf %80, %82 : vector<16x1xf32>
      %c1_47 = arith.constant 1 : index
      %c0_48 = arith.constant 0 : index
      %c0_49 = arith.constant 0 : index
      %84 = vector.load %arg12[%c1_47, %c0_48, %c0_49] : memref<4x16x1xf32, #tpu.memory_space<vmem>>, vector<1x16x1xf32>
      %85 = vector.shape_cast %84 : vector<1x16x1xf32> to vector<16x1xf32>
      %86 = vector.shape_cast %83 : vector<16x1xf32> to vector<1x16x1xf32>
      tpu.vector_store %arg12[%c1_47, %c0_48, %c0_49], %86 {strides = array<i32>} : memref<4x16x1xf32, #tpu.memory_space<vmem>>, vector<1x16x1xf32>,
      %c1_50 = arith.constant 1 : index
      %c0_51 = arith.constant 0 : index
      %c0_52 = arith.constant 0 : index
      %87 = vector.load %arg10[%c1_50, %c0_51, %c0_52] : memref<4x16x32xf32, #tpu.memory_space<vmem>>, vector<1x16x32xf32>
      %88 = vector.shape_cast %87 : vector<1x16x32xf32> to vector<16x32xf32>
      %89 = vector.broadcast %74 : vector<16x1xf32> to vector<16x32xf32>
      %90 = arith.mulf %89, %88 : vector<16x32xf32>
      %cst_53 = arith.constant dense<0.000000e+00> : vector<16x32xf32>
      %91 = tpu.matmul %77, %64, %cst_53 {dimension_numbers = #tpu.dot_dimension_numbers<[1], [0], [0], [1], [0, 0, 1, 1], [], []>} : vector<16x16xf32>, vector<16x32xf32>, vector<16x32xf32> -> vector<16x32xf32>
      %92 = arith.addf %90, %91 : vector<16x32xf32>
      %c1_54 = arith.constant 1 : index
      %c0_55 = arith.constant 0 : index
      %c0_56 = arith.constant 0 : index
      %93 = vector.load %arg10[%c1_54, %c0_55, %c0_56] : memref<4x16x32xf32, #tpu.memory_space<vmem>>, vector<1x16x32xf32>
      %94 = vector.shape_cast %93 : vector<1x16x32xf32> to vector<16x32xf32>
      %95 = vector.shape_cast %92 : vector<16x32xf32> to vector<1x16x32xf32>
      tpu.vector_store %arg10[%c1_54, %c0_55, %c0_56], %95 {strides = array<i32>} : memref<4x16x32xf32, #tpu.memory_space<vmem>>, vector<1x16x32xf32>,
      %c1_57 = arith.constant 1 : index
      %c0_58 = arith.constant 0 : index
      %c0_59 = arith.constant 0 : index
      %96 = vector.load %arg11[%c1_57, %c0_58, %c0_59] : memref<4x16x1xf32, #tpu.memory_space<vmem>>, vector<1x16x1xf32>
      %97 = vector.shape_cast %96 : vector<1x16x1xf32> to vector<16x1xf32>
      %98 = vector.shape_cast %72 : vector<16x1xf32> to vector<1x16x1xf32>
      tpu.vector_store %arg11[%c1_57, %c0_58, %c0_59], %98 {strides = array<i32>} : memref<4x16x1xf32, #tpu.memory_space<vmem>>, vector<1x16x1xf32>,
      %99 = vector.extract_strided_slice %20 {offsets = [0, 64], sizes = [16, 32], strides = [1, 1]} : vector<16x128xf32> to vector<16x32xf32>
      %100 = vector.extract_strided_slice %22 {offsets = [0, 64], sizes = [16, 32], strides = [1, 1]} : vector<16x128xf32> to vector<16x32xf32>
      %101 = vector.extract_strided_slice %24 {offsets = [0, 64], sizes = [16, 32], strides = [1, 1]} : vector<16x128xf32> to vector<16x32xf32>
      %cst_60 = arith.constant dense<0.000000e+00> : vector<16x16xf32>
      %102 = tpu.matmul %99, %100, %cst_60 {dimension_numbers = #tpu.dot_dimension_numbers<[1], [1], [0], [0], [0, 0, 1, 0], [], []>} : vector<16x32xf32>, vector<16x32xf32>, vector<16x16xf32> -> vector<16x16xf32>
      %cst_61 = arith.constant 0.176776692 : f32
      %103 = vector.broadcast %cst_61 : f32 to vector<16x16xf32>
      %104 = arith.mulf %102, %103 : vector<16x16xf32>
      %c2 = arith.constant 2 : index
      %c0_62 = arith.constant 0 : index
      %c0_63 = arith.constant 0 : index
      %105 = vector.load %arg11[%c2, %c0_62, %c0_63] : memref<4x16x1xf32, #tpu.memory_space<vmem>>, vector<1x16x1xf32>
      %106 = vector.shape_cast %105 : vector<1x16x1xf32> to vector<16x1xf32>
      %cst_64 = arith.constant dense<0xFF800000> : vector<16xf32>
      %107 = vector.multi_reduction <maximumf>, %104, %cst_64 [1] : vector<16x16xf32> to vector<16xf32>
      %108 = vector.shape_cast %107 : vector<16xf32> to vector<16x1xf32>
      %109 = arith.maximumf %106, %108 : vector<16x1xf32>
      %110 = arith.subf %106, %109 : vector<16x1xf32>
      %111 = math.exp %110 : vector<16x1xf32>
      %112 = vector.broadcast %109 : vector<16x1xf32> to vector<16x16xf32>
      %113 = arith.subf %104, %112 : vector<16x16xf32>
      %114 = math.exp %113 : vector<16x16xf32>
      %c2_65 = arith.constant 2 : index
      %c0_66 = arith.constant 0 : index
      %c0_67 = arith.constant 0 : index
      %115 = vector.load %arg12[%c2_65, %c0_66, %c0_67] : memref<4x16x1xf32, #tpu.memory_space<vmem>>, vector<1x16x1xf32>
      %116 = vector.shape_cast %115 : vector<1x16x1xf32> to vector<16x1xf32>
      %117 = arith.mulf %111, %116 : vector<16x1xf32>
      %cst_68 = arith.constant dense<0.000000e+00> : vector<16xf32>
      %118 = vector.multi_reduction <add>, %114, %cst_68 [1] : vector<16x16xf32> to vector<16xf32>
      %119 = vector.shape_cast %118 : vector<16xf32> to vector<16x1xf32>
      %120 = arith.addf %117, %119 : vector<16x1xf32>
      %c2_69 = arith.constant 2 : index
      %c0_70 = arith.constant 0 : index
      %c0_71 = arith.constant 0 : index
      %121 = vector.load %arg12[%c2_69, %c0_70, %c0_71] : memref<4x16x1xf32, #tpu.memory_space<vmem>>, vector<1x16x1xf32>
      %122 = vector.shape_cast %121 : vector<1x16x1xf32> to vector<16x1xf32>
      %123 = vector.shape_cast %120 : vector<16x1xf32> to vector<1x16x1xf32>
      tpu.vector_store %arg12[%c2_69, %c0_70, %c0_71], %123 {strides = array<i32>} : memref<4x16x1xf32, #tpu.memory_space<vmem>>, vector<1x16x1xf32>,
      %c2_72 = arith.constant 2 : index
      %c0_73 = arith.constant 0 : index
      %c0_74 = arith.constant 0 : index
      %124 = vector.load %arg10[%c2_72, %c0_73, %c0_74] : memref<4x16x32xf32, #tpu.memory_space<vmem>>, vector<1x16x32xf32>
      %125 = vector.shape_cast %124 : vector<1x16x32xf32> to vector<16x32xf32>
      %126 = vector.broadcast %111 : vector<16x1xf32> to vector<16x32xf32>
      %127 = arith.mulf %126, %125 : vector<16x32xf32>
      %cst_75 = arith.constant dense<0.000000e+00> : vector<16x32xf32>
      %128 = tpu.matmul %114, %101, %cst_75 {dimension_numbers = #tpu.dot_dimension_numbers<[1], [0], [0], [1], [0, 0, 1, 1], [], []>} : vector<16x16xf32>, vector<16x32xf32>, vector<16x32xf32> -> vector<16x32xf32>
      %129 = arith.addf %127, %128 : vector<16x32xf32>
      %c2_76 = arith.constant 2 : index
      %c0_77 = arith.constant 0 : index
      %c0_78 = arith.constant 0 : index
      %130 = vector.load %arg10[%c2_76, %c0_77, %c0_78] : memref<4x16x32xf32, #tpu.memory_space<vmem>>, vector<1x16x32xf32>
      %131 = vector.shape_cast %130 : vector<1x16x32xf32> to vector<16x32xf32>
      %132 = vector.shape_cast %129 : vector<16x32xf32> to vector<1x16x32xf32>
      tpu.vector_store %arg10[%c2_76, %c0_77, %c0_78], %132 {strides = array<i32>} : memref<4x16x32xf32, #tpu.memory_space<vmem>>, vector<1x16x32xf32>,
      %c2_79 = arith.constant 2 : index
      %c0_80 = arith.constant 0 : index
      %c0_81 = arith.constant 0 : index
      %133 = vector.load %arg11[%c2_79, %c0_80, %c0_81] : memref<4x16x1xf32, #tpu.memory_space<vmem>>, vector<1x16x1xf32>
      %134 = vector.shape_cast %133 : vector<1x16x1xf32> to vector<16x1xf32>
      %135 = vector.shape_cast %109 : vector<16x1xf32> to vector<1x16x1xf32>
      tpu.vector_store %arg11[%c2_79, %c0_80, %c0_81], %135 {strides = array<i32>} : memref<4x16x1xf32, #tpu.memory_space<vmem>>, vector<1x16x1xf32>,
      %136 = vector.extract_strided_slice %20 {offsets = [0, 96], sizes = [16, 32], strides = [1, 1]} : vector<16x128xf32> to vector<16x32xf32>
      %137 = vector.extract_strided_slice %22 {offsets = [0, 96], sizes = [16, 32], strides = [1, 1]} : vector<16x128xf32> to vector<16x32xf32>
      %138 = vector.extract_strided_slice %24 {offsets = [0, 96], sizes = [16, 32], strides = [1, 1]} : vector<16x128xf32> to vector<16x32xf32>
      %cst_82 = arith.constant dense<0.000000e+00> : vector<16x16xf32>
      %139 = tpu.matmul %136, %137, %cst_82 {dimension_numbers = #tpu.dot_dimension_numbers<[1], [1], [0], [0], [0, 0, 1, 0], [], []>} : vector<16x32xf32>, vector<16x32xf32>, vector<16x16xf32> -> vector<16x16xf32>
      %cst_83 = arith.constant 0.176776692 : f32
      %140 = vector.broadcast %cst_83 : f32 to vector<16x16xf32>
      %141 = arith.mulf %139, %140 : vector<16x16xf32>
      %c3 = arith.constant 3 : index
      %c0_84 = arith.constant 0 : index
      %c0_85 = arith.constant 0 : index
      %142 = vector.load %arg11[%c3, %c0_84, %c0_85] : memref<4x16x1xf32, #tpu.memory_space<vmem>>, vector<1x16x1xf32>
      %143 = vector.shape_cast %142 : vector<1x16x1xf32> to vector<16x1xf32>
      %cst_86 = arith.constant dense<0xFF800000> : vector<16xf32>
      %144 = vector.multi_reduction <maximumf>, %141, %cst_86 [1] : vector<16x16xf32> to vector<16xf32>
      %145 = vector.shape_cast %144 : vector<16xf32> to vector<16x1xf32>
      %146 = arith.maximumf %143, %145 : vector<16x1xf32>
      %147 = arith.subf %143, %146 : vector<16x1xf32>
      %148 = math.exp %147 : vector<16x1xf32>
      %149 = vector.broadcast %146 : vector<16x1xf32> to vector<16x16xf32>
      %150 = arith.subf %141, %149 : vector<16x16xf32>
      %151 = math.exp %150 : vector<16x16xf32>
      %c3_87 = arith.constant 3 : index
      %c0_88 = arith.constant 0 : index
      %c0_89 = arith.constant 0 : index
      %152 = vector.load %arg12[%c3_87, %c0_88, %c0_89] : memref<4x16x1xf32, #tpu.memory_space<vmem>>, vector<1x16x1xf32>
      %153 = vector.shape_cast %152 : vector<1x16x1xf32> to vector<16x1xf32>
      %154 = arith.mulf %148, %153 : vector<16x1xf32>
      %cst_90 = arith.constant dense<0.000000e+00> : vector<16xf32>
      %155 = vector.multi_reduction <add>, %151, %cst_90 [1] : vector<16x16xf32> to vector<16xf32>
      %156 = vector.shape_cast %155 : vector<16xf32> to vector<16x1xf32>
      %157 = arith.addf %154, %156 : vector<16x1xf32>
      %c3_91 = arith.constant 3 : index
      %c0_92 = arith.constant 0 : index
      %c0_93 = arith.constant 0 : index
      %158 = vector.load %arg12[%c3_91, %c0_92, %c0_93] : memref<4x16x1xf32, #tpu.memory_space<vmem>>, vector<1x16x1xf32>
      %159 = vector.shape_cast %158 : vector<1x16x1xf32> to vector<16x1xf32>
      %160 = vector.shape_cast %157 : vector<16x1xf32> to vector<1x16x1xf32>
      tpu.vector_store %arg12[%c3_91, %c0_92, %c0_93], %160 {strides = array<i32>} : memref<4x16x1xf32, #tpu.memory_space<vmem>>, vector<1x16x1xf32>,
      %c3_94 = arith.constant 3 : index
      %c0_95 = arith.constant 0 : index
      %c0_96 = arith.constant 0 : index
      %161 = vector.load %arg10[%c3_94, %c0_95, %c0_96] : memref<4x16x32xf32, #tpu.memory_space<vmem>>, vector<1x16x32xf32>
      %162 = vector.shape_cast %161 : vector<1x16x32xf32> to vector<16x32xf32>
      %163 = vector.broadcast %148 : vector<16x1xf32> to vector<16x32xf32>
      %164 = arith.mulf %163, %162 : vector<16x32xf32>
      %cst_97 = arith.constant dense<0.000000e+00> : vector<16x32xf32>
      %165 = tpu.matmul %151, %138, %cst_97 {dimension_numbers = #tpu.dot_dimension_numbers<[1], [0], [0], [1], [0, 0, 1, 1], [], []>} : vector<16x16xf32>, vector<16x32xf32>, vector<16x32xf32> -> vector<16x32xf32>
      %166 = arith.addf %164, %165 : vector<16x32xf32>
      %c3_98 = arith.constant 3 : index
      %c0_99 = arith.constant 0 : index
      %c0_100 = arith.constant 0 : index
      %167 = vector.load %arg10[%c3_98, %c0_99, %c0_100] : memref<4x16x32xf32, #tpu.memory_space<vmem>>, vector<1x16x32xf32>
      %168 = vector.shape_cast %167 : vector<1x16x32xf32> to vector<16x32xf32>
      %169 = vector.shape_cast %166 : vector<16x32xf32> to vector<1x16x32xf32>
      tpu.vector_store %arg10[%c3_98, %c0_99, %c0_100], %169 {strides = array<i32>} : memref<4x16x32xf32, #tpu.memory_space<vmem>>, vector<1x16x32xf32>,
      %c3_101 = arith.constant 3 : index
      %c0_102 = arith.constant 0 : index
      %c0_103 = arith.constant 0 : index
      %170 = vector.load %arg11[%c3_101, %c0_102, %c0_103] : memref<4x16x1xf32, #tpu.memory_space<vmem>>, vector<1x16x1xf32>
      %171 = vector.shape_cast %170 : vector<1x16x1xf32> to vector<16x1xf32>
      %172 = vector.shape_cast %146 : vector<16x1xf32> to vector<1x16x1xf32>
      tpu.vector_store %arg11[%c3_101, %c0_102, %c0_103], %172 {strides = array<i32>} : memref<4x16x1xf32, #tpu.memory_space<vmem>>, vector<1x16x1xf32>,
    } else {
    }
    %c15_i32_3 = arith.constant 15 : i32
    %9 = arith.addi %1, %c15_i32_3 : i32
    %10 = arith.cmpi sgt, %9, %0 : i32
    %c15_i32_4 = arith.constant 15 : i32
    %11 = arith.addi %0, %c15_i32_4 : i32
    %12 = arith.cmpi sle, %1, %11 : i32
    %13 = arith.andi %10, %12 : i1
    %14 = arith.extui %13 : i1 to i32
    %c0_i32_5 = arith.constant 0 : i32
    %15 = arith.cmpi ne, %14, %c0_i32_5 : i32
    scf.if %15 {
      %c0 = arith.constant 0 : index
      %c0_8 = arith.constant 0 : index
      %c0_9 = arith.constant 0 : index
      %19 = vector.load %arg3[%c0, %c0_8, %c0_9] : memref<1x16x128xf32, #tpu.memory_space<vmem>>, vector<1x16x128xf32>
      %20 = vector.shape_cast %19 : vector<1x16x128xf32> to vector<16x128xf32>
      %c0_10 = arith.constant 0 : index
      %c0_11 = arith.constant 0 : index
      %c0_12 = arith.constant 0 : index
      %21 = vector.load %arg4[%c0_10, %c0_11, %c0_12] : memref<1x16x128xf32, #tpu.memory_space<vmem>>, vector<1x16x128xf32>
      %22 = vector.shape_cast %21 : vector<1x16x128xf32> to vector<16x128xf32>
      %c0_13 = arith.constant 0 : index
      %c0_14 = arith.constant 0 : index
      %c0_15 = arith.constant 0 : index
      %23 = vector.load %arg5[%c0_13, %c0_14, %c0_15] : memref<1x16x128xf32, #tpu.memory_space<vmem>>, vector<1x16x128xf32>
      %24 = vector.shape_cast %23 : vector<1x16x128xf32> to vector<16x128xf32>
      %25 = tpu.iota {dimensions = array<i32: 0>} : vector<16x16xi32>
      %26 = vector.broadcast %0 : i32 to vector<16x16xi32>
      %27 = arith.addi %26, %25 : vector<16x16xi32>
      %28 = tpu.iota {dimensions = array<i32: 1>} : vector<16x16xi32>
      %29 = vector.broadcast %1 : i32 to vector<16x16xi32>
      %30 = arith.addi %29, %28 : vector<16x16xi32>
      %31 = arith.cmpi sle, %30, %27 : vector<16x16xi32>
      %32 = vector.extract_strided_slice %20 {offsets = [0, 0], sizes = [16, 32], strides = [1, 1]} : vector<16x128xf32> to vector<16x32xf32>
      %33 = vector.extract_strided_slice %22 {offsets = [0, 0], sizes = [16, 32], strides = [1, 1]} : vector<16x128xf32> to vector<16x32xf32>
      %34 = vector.extract_strided_slice %24 {offsets = [0, 0], sizes = [16, 32], strides = [1, 1]} : vector<16x128xf32> to vector<16x32xf32>
      %cst = arith.constant dense<0.000000e+00> : vector<16x16xf32>
      %35 = tpu.matmul %32, %33, %cst {dimension_numbers = #tpu.dot_dimension_numbers<[1], [1], [0], [0], [0, 0, 1, 0], [], []>} : vector<16x32xf32>, vector<16x32xf32>, vector<16x16xf32> -> vector<16x16xf32>
      %cst_16 = arith.constant 0.176776692 : f32
      %36 = vector.broadcast %cst_16 : f32 to vector<16x16xf32>
      %37 = arith.mulf %35, %36 : vector<16x16xf32>
      %cst_17 = arith.constant -1.000000e+30 : f32
      %38 = vector.broadcast %cst_17 : f32 to vector<16x16xf32>
      %39 = arith.select %31, %37, %38 : vector<16x16xi1>, vector<16x16xf32>
      %c0_18 = arith.constant 0 : index
      %c0_19 = arith.constant 0 : index
      %c0_20 = arith.constant 0 : index
      %40 = vector.load %arg11[%c0_18, %c0_19, %c0_20] : memref<4x16x1xf32, #tpu.memory_space<vmem>>, vector<1x16x1xf32>
      %41 = vector.shape_cast %40 : vector<1x16x1xf32> to vector<16x1xf32>
      %cst_21 = arith.constant dense<0xFF800000> : vector<16xf32>
      %42 = vector.multi_reduction <maximumf>, %39, %cst_21 [1] : vector<16x16xf32> to vector<16xf32>
      %43 = vector.shape_cast %42 : vector<16xf32> to vector<16x1xf32>
      %44 = arith.maximumf %41, %43 : vector<16x1xf32>
      %45 = arith.subf %41, %44 : vector<16x1xf32>
      %46 = math.exp %45 : vector<16x1xf32>
      %47 = vector.broadcast %44 : vector<16x1xf32> to vector<16x16xf32>
      %48 = arith.subf %39, %47 : vector<16x16xf32>
      %49 = math.exp %48 : vector<16x16xf32>
      %c0_22 = arith.constant 0 : index
      %c0_23 = arith.constant 0 : index
      %c0_24 = arith.constant 0 : index
      %50 = vector.load %arg12[%c0_22, %c0_23, %c0_24] : memref<4x16x1xf32, #tpu.memory_space<vmem>>, vector<1x16x1xf32>
      %51 = vector.shape_cast %50 : vector<1x16x1xf32> to vector<16x1xf32>
      %52 = arith.mulf %46, %51 : vector<16x1xf32>
      %cst_25 = arith.constant dense<0.000000e+00> : vector<16xf32>
      %53 = vector.multi_reduction <add>, %49, %cst_25 [1] : vector<16x16xf32> to vector<16xf32>
      %54 = vector.shape_cast %53 : vector<16xf32> to vector<16x1xf32>
      %55 = arith.addf %52, %54 : vector<16x1xf32>
      %c0_26 = arith.constant 0 : index
      %c0_27 = arith.constant 0 : index
      %c0_28 = arith.constant 0 : index
      %56 = vector.load %arg12[%c0_26, %c0_27, %c0_28] : memref<4x16x1xf32, #tpu.memory_space<vmem>>, vector<1x16x1xf32>
      %57 = vector.shape_cast %56 : vector<1x16x1xf32> to vector<16x1xf32>
      %58 = vector.shape_cast %55 : vector<16x1xf32> to vector<1x16x1xf32>
      tpu.vector_store %arg12[%c0_26, %c0_27, %c0_28], %58 {strides = array<i32>} : memref<4x16x1xf32, #tpu.memory_space<vmem>>, vector<1x16x1xf32>,
      %c0_29 = arith.constant 0 : index
      %c0_30 = arith.constant 0 : index
      %c0_31 = arith.constant 0 : index
      %59 = vector.load %arg10[%c0_29, %c0_30, %c0_31] : memref<4x16x32xf32, #tpu.memory_space<vmem>>, vector<1x16x32xf32>
      %60 = vector.shape_cast %59 : vector<1x16x32xf32> to vector<16x32xf32>
      %61 = vector.broadcast %46 : vector<16x1xf32> to vector<16x32xf32>
      %62 = arith.mulf %61, %60 : vector<16x32xf32>
      %cst_32 = arith.constant dense<0.000000e+00> : vector<16x32xf32>
      %63 = tpu.matmul %49, %34, %cst_32 {dimension_numbers = #tpu.dot_dimension_numbers<[1], [0], [0], [1], [0, 0, 1, 1], [], []>} : vector<16x16xf32>, vector<16x32xf32>, vector<16x32xf32> -> vector<16x32xf32>
      %64 = arith.addf %62, %63 : vector<16x32xf32>
      %c0_33 = arith.constant 0 : index
      %c0_34 = arith.constant 0 : index
      %c0_35 = arith.constant 0 : index
      %65 = vector.load %arg10[%c0_33, %c0_34, %c0_35] : memref<4x16x32xf32, #tpu.memory_space<vmem>>, vector<1x16x32xf32>
      %66 = vector.shape_cast %65 : vector<1x16x32xf32> to vector<16x32xf32>
      %67 = vector.shape_cast %64 : vector<16x32xf32> to vector<1x16x32xf32>
      tpu.vector_store %arg10[%c0_33, %c0_34, %c0_35], %67 {strides = array<i32>} : memref<4x16x32xf32, #tpu.memory_space<vmem>>, vector<1x16x32xf32>,
      %c0_36 = arith.constant 0 : index
      %c0_37 = arith.constant 0 : index
      %c0_38 = arith.constant 0 : index
      %68 = vector.load %arg11[%c0_36, %c0_37, %c0_38] : memref<4x16x1xf32, #tpu.memory_space<vmem>>, vector<1x16x1xf32>
      %69 = vector.shape_cast %68 : vector<1x16x1xf32> to vector<16x1xf32>
      %70 = vector.shape_cast %44 : vector<16x1xf32> to vector<1x16x1xf32>
      tpu.vector_store %arg11[%c0_36, %c0_37, %c0_38], %70 {strides = array<i32>} : memref<4x16x1xf32, #tpu.memory_space<vmem>>, vector<1x16x1xf32>,
      %71 = vector.extract_strided_slice %20 {offsets = [0, 32], sizes = [16, 32], strides = [1, 1]} : vector<16x128xf32> to vector<16x32xf32>
      %72 = vector.extract_strided_slice %22 {offsets = [0, 32], sizes = [16, 32], strides = [1, 1]} : vector<16x128xf32> to vector<16x32xf32>
      %73 = vector.extract_strided_slice %24 {offsets = [0, 32], sizes = [16, 32], strides = [1, 1]} : vector<16x128xf32> to vector<16x32xf32>
      %cst_39 = arith.constant dense<0.000000e+00> : vector<16x16xf32>
      %74 = tpu.matmul %71, %72, %cst_39 {dimension_numbers = #tpu.dot_dimension_numbers<[1], [1], [0], [0], [0, 0, 1, 0], [], []>} : vector<16x32xf32>, vector<16x32xf32>, vector<16x16xf32> -> vector<16x16xf32>
      %cst_40 = arith.constant 0.176776692 : f32
      %75 = vector.broadcast %cst_40 : f32 to vector<16x16xf32>
      %76 = arith.mulf %74, %75 : vector<16x16xf32>
      %cst_41 = arith.constant -1.000000e+30 : f32
      %77 = vector.broadcast %cst_41 : f32 to vector<16x16xf32>
      %78 = arith.select %31, %76, %77 : vector<16x16xi1>, vector<16x16xf32>
      %c1 = arith.constant 1 : index
      %c0_42 = arith.constant 0 : index
      %c0_43 = arith.constant 0 : index
      %79 = vector.load %arg11[%c1, %c0_42, %c0_43] : memref<4x16x1xf32, #tpu.memory_space<vmem>>, vector<1x16x1xf32>
      %80 = vector.shape_cast %79 : vector<1x16x1xf32> to vector<16x1xf32>
      %cst_44 = arith.constant dense<0xFF800000> : vector<16xf32>
      %81 = vector.multi_reduction <maximumf>, %78, %cst_44 [1] : vector<16x16xf32> to vector<16xf32>
      %82 = vector.shape_cast %81 : vector<16xf32> to vector<16x1xf32>
      %83 = arith.maximumf %80, %82 : vector<16x1xf32>
      %84 = arith.subf %80, %83 : vector<16x1xf32>
      %85 = math.exp %84 : vector<16x1xf32>
      %86 = vector.broadcast %83 : vector<16x1xf32> to vector<16x16xf32>
      %87 = arith.subf %78, %86 : vector<16x16xf32>
      %88 = math.exp %87 : vector<16x16xf32>
      %c1_45 = arith.constant 1 : index
      %c0_46 = arith.constant 0 : index
      %c0_47 = arith.constant 0 : index
      %89 = vector.load %arg12[%c1_45, %c0_46, %c0_47] : memref<4x16x1xf32, #tpu.memory_space<vmem>>, vector<1x16x1xf32>
      %90 = vector.shape_cast %89 : vector<1x16x1xf32> to vector<16x1xf32>
      %91 = arith.mulf %85, %90 : vector<16x1xf32>
      %cst_48 = arith.constant dense<0.000000e+00> : vector<16xf32>
      %92 = vector.multi_reduction <add>, %88, %cst_48 [1] : vector<16x16xf32> to vector<16xf32>
      %93 = vector.shape_cast %92 : vector<16xf32> to vector<16x1xf32>
      %94 = arith.addf %91, %93 : vector<16x1xf32>
      %c1_49 = arith.constant 1 : index
      %c0_50 = arith.constant 0 : index
      %c0_51 = arith.constant 0 : index
      %95 = vector.load %arg12[%c1_49, %c0_50, %c0_51] : memref<4x16x1xf32, #tpu.memory_space<vmem>>, vector<1x16x1xf32>
      %96 = vector.shape_cast %95 : vector<1x16x1xf32> to vector<16x1xf32>
      %97 = vector.shape_cast %94 : vector<16x1xf32> to vector<1x16x1xf32>
      tpu.vector_store %arg12[%c1_49, %c0_50, %c0_51], %97 {strides = array<i32>} : memref<4x16x1xf32, #tpu.memory_space<vmem>>, vector<1x16x1xf32>,
      %c1_52 = arith.constant 1 : index
      %c0_53 = arith.constant 0 : index
      %c0_54 = arith.constant 0 : index
      %98 = vector.load %arg10[%c1_52, %c0_53, %c0_54] : memref<4x16x32xf32, #tpu.memory_space<vmem>>, vector<1x16x32xf32>
      %99 = vector.shape_cast %98 : vector<1x16x32xf32> to vector<16x32xf32>
      %100 = vector.broadcast %85 : vector<16x1xf32> to vector<16x32xf32>
      %101 = arith.mulf %100, %99 : vector<16x32xf32>
      %cst_55 = arith.constant dense<0.000000e+00> : vector<16x32xf32>
      %102 = tpu.matmul %88, %73, %cst_55 {dimension_numbers = #tpu.dot_dimension_numbers<[1], [0], [0], [1], [0, 0, 1, 1], [], []>} : vector<16x16xf32>, vector<16x32xf32>, vector<16x32xf32> -> vector<16x32xf32>
      %103 = arith.addf %101, %102 : vector<16x32xf32>
      %c1_56 = arith.constant 1 : index
      %c0_57 = arith.constant 0 : index
      %c0_58 = arith.constant 0 : index
      %104 = vector.load %arg10[%c1_56, %c0_57, %c0_58] : memref<4x16x32xf32, #tpu.memory_space<vmem>>, vector<1x16x32xf32>
      %105 = vector.shape_cast %104 : vector<1x16x32xf32> to vector<16x32xf32>
      %106 = vector.shape_cast %103 : vector<16x32xf32> to vector<1x16x32xf32>
      tpu.vector_store %arg10[%c1_56, %c0_57, %c0_58], %106 {strides = array<i32>} : memref<4x16x32xf32, #tpu.memory_space<vmem>>, vector<1x16x32xf32>,
      %c1_59 = arith.constant 1 : index
      %c0_60 = arith.constant 0 : index
      %c0_61 = arith.constant 0 : index
      %107 = vector.load %arg11[%c1_59, %c0_60, %c0_61] : memref<4x16x1xf32, #tpu.memory_space<vmem>>, vector<1x16x1xf32>
      %108 = vector.shape_cast %107 : vector<1x16x1xf32> to vector<16x1xf32>
      %109 = vector.shape_cast %83 : vector<16x1xf32> to vector<1x16x1xf32>
      tpu.vector_store %arg11[%c1_59, %c0_60, %c0_61], %109 {strides = array<i32>} : memref<4x16x1xf32, #tpu.memory_space<vmem>>, vector<1x16x1xf32>,
      %110 = vector.extract_strided_slice %20 {offsets = [0, 64], sizes = [16, 32], strides = [1, 1]} : vector<16x128xf32> to vector<16x32xf32>
      %111 = vector.extract_strided_slice %22 {offsets = [0, 64], sizes = [16, 32], strides = [1, 1]} : vector<16x128xf32> to vector<16x32xf32>
      %112 = vector.extract_strided_slice %24 {offsets = [0, 64], sizes = [16, 32], strides = [1, 1]} : vector<16x128xf32> to vector<16x32xf32>
      %cst_62 = arith.constant dense<0.000000e+00> : vector<16x16xf32>
      %113 = tpu.matmul %110, %111, %cst_62 {dimension_numbers = #tpu.dot_dimension_numbers<[1], [1], [0], [0], [0, 0, 1, 0], [], []>} : vector<16x32xf32>, vector<16x32xf32>, vector<16x16xf32> -> vector<16x16xf32>
      %cst_63 = arith.constant 0.176776692 : f32
      %114 = vector.broadcast %cst_63 : f32 to vector<16x16xf32>
      %115 = arith.mulf %113, %114 : vector<16x16xf32>
      %cst_64 = arith.constant -1.000000e+30 : f32
      %116 = vector.broadcast %cst_64 : f32 to vector<16x16xf32>
      %117 = arith.select %31, %115, %116 : vector<16x16xi1>, vector<16x16xf32>
      %c2 = arith.constant 2 : index
      %c0_65 = arith.constant 0 : index
      %c0_66 = arith.constant 0 : index
      %118 = vector.load %arg11[%c2, %c0_65, %c0_66] : memref<4x16x1xf32, #tpu.memory_space<vmem>>, vector<1x16x1xf32>
      %119 = vector.shape_cast %118 : vector<1x16x1xf32> to vector<16x1xf32>
      %cst_67 = arith.constant dense<0xFF800000> : vector<16xf32>
      %120 = vector.multi_reduction <maximumf>, %117, %cst_67 [1] : vector<16x16xf32> to vector<16xf32>
      %121 = vector.shape_cast %120 : vector<16xf32> to vector<16x1xf32>
      %122 = arith.maximumf %119, %121 : vector<16x1xf32>
      %123 = arith.subf %119, %122 : vector<16x1xf32>
      %124 = math.exp %123 : vector<16x1xf32>
      %125 = vector.broadcast %122 : vector<16x1xf32> to vector<16x16xf32>
      %126 = arith.subf %117, %125 : vector<16x16xf32>
      %127 = math.exp %126 : vector<16x16xf32>
      %c2_68 = arith.constant 2 : index
      %c0_69 = arith.constant 0 : index
      %c0_70 = arith.constant 0 : index
      %128 = vector.load %arg12[%c2_68, %c0_69, %c0_70] : memref<4x16x1xf32, #tpu.memory_space<vmem>>, vector<1x16x1xf32>
      %129 = vector.shape_cast %128 : vector<1x16x1xf32> to vector<16x1xf32>
      %130 = arith.mulf %124, %129 : vector<16x1xf32>
      %cst_71 = arith.constant dense<0.000000e+00> : vector<16xf32>
      %131 = vector.multi_reduction <add>, %127, %cst_71 [1] : vector<16x16xf32> to vector<16xf32>
      %132 = vector.shape_cast %131 : vector<16xf32> to vector<16x1xf32>
      %133 = arith.addf %130, %132 : vector<16x1xf32>
      %c2_72 = arith.constant 2 : index
      %c0_73 = arith.constant 0 : index
      %c0_74 = arith.constant 0 : index
      %134 = vector.load %arg12[%c2_72, %c0_73, %c0_74] : memref<4x16x1xf32, #tpu.memory_space<vmem>>, vector<1x16x1xf32>
      %135 = vector.shape_cast %134 : vector<1x16x1xf32> to vector<16x1xf32>
      %136 = vector.shape_cast %133 : vector<16x1xf32> to vector<1x16x1xf32>
      tpu.vector_store %arg12[%c2_72, %c0_73, %c0_74], %136 {strides = array<i32>} : memref<4x16x1xf32, #tpu.memory_space<vmem>>, vector<1x16x1xf32>,
      %c2_75 = arith.constant 2 : index
      %c0_76 = arith.constant 0 : index
      %c0_77 = arith.constant 0 : index
      %137 = vector.load %arg10[%c2_75, %c0_76, %c0_77] : memref<4x16x32xf32, #tpu.memory_space<vmem>>, vector<1x16x32xf32>
      %138 = vector.shape_cast %137 : vector<1x16x32xf32> to vector<16x32xf32>
      %139 = vector.broadcast %124 : vector<16x1xf32> to vector<16x32xf32>
      %140 = arith.mulf %139, %138 : vector<16x32xf32>
      %cst_78 = arith.constant dense<0.000000e+00> : vector<16x32xf32>
      %141 = tpu.matmul %127, %112, %cst_78 {dimension_numbers = #tpu.dot_dimension_numbers<[1], [0], [0], [1], [0, 0, 1, 1], [], []>} : vector<16x16xf32>, vector<16x32xf32>, vector<16x32xf32> -> vector<16x32xf32>
      %142 = arith.addf %140, %141 : vector<16x32xf32>
      %c2_79 = arith.constant 2 : index
      %c0_80 = arith.constant 0 : index
      %c0_81 = arith.constant 0 : index
      %143 = vector.load %arg10[%c2_79, %c0_80, %c0_81] : memref<4x16x32xf32, #tpu.memory_space<vmem>>, vector<1x16x32xf32>
      %144 = vector.shape_cast %143 : vector<1x16x32xf32> to vector<16x32xf32>
      %145 = vector.shape_cast %142 : vector<16x32xf32> to vector<1x16x32xf32>
      tpu.vector_store %arg10[%c2_79, %c0_80, %c0_81], %145 {strides = array<i32>} : memref<4x16x32xf32, #tpu.memory_space<vmem>>, vector<1x16x32xf32>,
      %c2_82 = arith.constant 2 : index
      %c0_83 = arith.constant 0 : index
      %c0_84 = arith.constant 0 : index
      %146 = vector.load %arg11[%c2_82, %c0_83, %c0_84] : memref<4x16x1xf32, #tpu.memory_space<vmem>>, vector<1x16x1xf32>
      %147 = vector.shape_cast %146 : vector<1x16x1xf32> to vector<16x1xf32>
      %148 = vector.shape_cast %122 : vector<16x1xf32> to vector<1x16x1xf32>
      tpu.vector_store %arg11[%c2_82, %c0_83, %c0_84], %148 {strides = array<i32>} : memref<4x16x1xf32, #tpu.memory_space<vmem>>, vector<1x16x1xf32>,
      %149 = vector.extract_strided_slice %20 {offsets = [0, 96], sizes = [16, 32], strides = [1, 1]} : vector<16x128xf32> to vector<16x32xf32>
      %150 = vector.extract_strided_slice %22 {offsets = [0, 96], sizes = [16, 32], strides = [1, 1]} : vector<16x128xf32> to vector<16x32xf32>
      %151 = vector.extract_strided_slice %24 {offsets = [0, 96], sizes = [16, 32], strides = [1, 1]} : vector<16x128xf32> to vector<16x32xf32>
      %cst_85 = arith.constant dense<0.000000e+00> : vector<16x16xf32>
      %152 = tpu.matmul %149, %150, %cst_85 {dimension_numbers = #tpu.dot_dimension_numbers<[1], [1], [0], [0], [0, 0, 1, 0], [], []>} : vector<16x32xf32>, vector<16x32xf32>, vector<16x16xf32> -> vector<16x16xf32>
      %cst_86 = arith.constant 0.176776692 : f32
      %153 = vector.broadcast %cst_86 : f32 to vector<16x16xf32>
      %154 = arith.mulf %152, %153 : vector<16x16xf32>
      %cst_87 = arith.constant -1.000000e+30 : f32
      %155 = vector.broadcast %cst_87 : f32 to vector<16x16xf32>
      %156 = arith.select %31, %154, %155 : vector<16x16xi1>, vector<16x16xf32>
      %c3 = arith.constant 3 : index
      %c0_88 = arith.constant 0 : index
      %c0_89 = arith.constant 0 : index
      %157 = vector.load %arg11[%c3, %c0_88, %c0_89] : memref<4x16x1xf32, #tpu.memory_space<vmem>>, vector<1x16x1xf32>
      %158 = vector.shape_cast %157 : vector<1x16x1xf32> to vector<16x1xf32>
      %cst_90 = arith.constant dense<0xFF800000> : vector<16xf32>
      %159 = vector.multi_reduction <maximumf>, %156, %cst_90 [1] : vector<16x16xf32> to vector<16xf32>
      %160 = vector.shape_cast %159 : vector<16xf32> to vector<16x1xf32>
      %161 = arith.maximumf %158, %160 : vector<16x1xf32>
      %162 = arith.subf %158, %161 : vector<16x1xf32>
      %163 = math.exp %162 : vector<16x1xf32>
      %164 = vector.broadcast %161 : vector<16x1xf32> to vector<16x16xf32>
      %165 = arith.subf %156, %164 : vector<16x16xf32>
      %166 = math.exp %165 : vector<16x16xf32>
      %c3_91 = arith.constant 3 : index
      %c0_92 = arith.constant 0 : index
      %c0_93 = arith.constant 0 : index
      %167 = vector.load %arg12[%c3_91, %c0_92, %c0_93] : memref<4x16x1xf32, #tpu.memory_space<vmem>>, vector<1x16x1xf32>
      %168 = vector.shape_cast %167 : vector<1x16x1xf32> to vector<16x1xf32>
      %169 = arith.mulf %163, %168 : vector<16x1xf32>
      %cst_94 = arith.constant dense<0.000000e+00> : vector<16xf32>
      %170 = vector.multi_reduction <add>, %166, %cst_94 [1] : vector<16x16xf32> to vector<16xf32>
      %171 = vector.shape_cast %170 : vector<16xf32> to vector<16x1xf32>
      %172 = arith.addf %169, %171 : vector<16x1xf32>
      %c3_95 = arith.constant 3 : index
      %c0_96 = arith.constant 0 : index
      %c0_97 = arith.constant 0 : index
      %173 = vector.load %arg12[%c3_95, %c0_96, %c0_97] : memref<4x16x1xf32, #tpu.memory_space<vmem>>, vector<1x16x1xf32>
      %174 = vector.shape_cast %173 : vector<1x16x1xf32> to vector<16x1xf32>
      %175 = vector.shape_cast %172 : vector<16x1xf32> to vector<1x16x1xf32>
      tpu.vector_store %arg12[%c3_95, %c0_96, %c0_97], %175 {strides = array<i32>} : memref<4x16x1xf32, #tpu.memory_space<vmem>>, vector<1x16x1xf32>,
      %c3_98 = arith.constant 3 : index
      %c0_99 = arith.constant 0 : index
      %c0_100 = arith.constant 0 : index
      %176 = vector.load %arg10[%c3_98, %c0_99, %c0_100] : memref<4x16x32xf32, #tpu.memory_space<vmem>>, vector<1x16x32xf32>
      %177 = vector.shape_cast %176 : vector<1x16x32xf32> to vector<16x32xf32>
      %178 = vector.broadcast %163 : vector<16x1xf32> to vector<16x32xf32>
      %179 = arith.mulf %178, %177 : vector<16x32xf32>
      %cst_101 = arith.constant dense<0.000000e+00> : vector<16x32xf32>
      %180 = tpu.matmul %166, %151, %cst_101 {dimension_numbers = #tpu.dot_dimension_numbers<[1], [0], [0], [1], [0, 0, 1, 1], [], []>} : vector<16x16xf32>, vector<16x32xf32>, vector<16x32xf32> -> vector<16x32xf32>
      %181 = arith.addf %179, %180 : vector<16x32xf32>
      %c3_102 = arith.constant 3 : index
      %c0_103 = arith.constant 0 : index
      %c0_104 = arith.constant 0 : index
      %182 = vector.load %arg10[%c3_102, %c0_103, %c0_104] : memref<4x16x32xf32, #tpu.memory_space<vmem>>, vector<1x16x32xf32>
      %183 = vector.shape_cast %182 : vector<1x16x32xf32> to vector<16x32xf32>
      %184 = vector.shape_cast %181 : vector<16x32xf32> to vector<1x16x32xf32>
      tpu.vector_store %arg10[%c3_102, %c0_103, %c0_104], %184 {strides = array<i32>} : memref<4x16x32xf32, #tpu.memory_space<vmem>>, vector<1x16x32xf32>,
      %c3_105 = arith.constant 3 : index
      %c0_106 = arith.constant 0 : index
      %c0_107 = arith.constant 0 : index
      %185 = vector.load %arg11[%c3_105, %c0_106, %c0_107] : memref<4x16x1xf32, #tpu.memory_space<vmem>>, vector<1x16x1xf32>
      %186 = vector.shape_cast %185 : vector<1x16x1xf32> to vector<16x1xf32>
      %187 = vector.shape_cast %161 : vector<16x1xf32> to vector<1x16x1xf32>
      tpu.vector_store %arg11[%c3_105, %c0_106, %c0_107], %187 {strides = array<i32>} : memref<4x16x1xf32, #tpu.memory_space<vmem>>, vector<1x16x1xf32>,
    } else {
    }
    %c0_i32_6 = arith.constant 0 : i32
    %16 = arith.cmpi eq, %arg2, %c0_i32_6 : i32
    %17 = arith.extui %16 : i1 to i32
    %c0_i32_7 = arith.constant 0 : i32
    %18 = arith.cmpi ne, %17, %c0_i32_7 : i32
    scf.if %18 {
      %c0 = arith.constant 0 : index
      %c0_8 = arith.constant 0 : index
      %c0_9 = arith.constant 0 : index
      %19 = vector.load %arg6[%c0, %c0_8, %c0_9] : memref<1x16x128xf32, #tpu.memory_space<vmem>>, vector<1x16x128xf32>
      %20 = vector.shape_cast %19 : vector<1x16x128xf32> to vector<16x128xf32>
      %c0_10 = arith.constant 0 : index
      %c0_11 = arith.constant 0 : index
      %21 = vector.load %arg8[%c0_10, %c0_11] : memref<1x128xf32, #tpu.memory_space<vmem>>, vector<1x128xf32>
      %22 = vector.broadcast %21 : vector<1x128xf32> to vector<16x128xf32>
      %23 = arith.addf %20, %22 : vector<16x128xf32>
      %c0_12 = arith.constant 0 : index
      %c0_13 = arith.constant 0 : index
      %c0_14 = arith.constant 0 : index
      %24 = vector.load %arg10[%c0_12, %c0_13, %c0_14] : memref<4x16x32xf32, #tpu.memory_space<vmem>>, vector<1x16x32xf32>
      %25 = vector.shape_cast %24 : vector<1x16x32xf32> to vector<16x32xf32>
      %c0_15 = arith.constant 0 : index
      %c0_16 = arith.constant 0 : index
      %c0_17 = arith.constant 0 : index
      %26 = vector.load %arg12[%c0_15, %c0_16, %c0_17] : memref<4x16x1xf32, #tpu.memory_space<vmem>>, vector<1x16x1xf32>
      %27 = vector.shape_cast %26 : vector<1x16x1xf32> to vector<16x1xf32>
      %28 = tpu.reciprocal %27 : vector<16x1xf32> -> vector<16x1xf32>
      %29 = vector.broadcast %28 : vector<16x1xf32> to vector<16x32xf32>
      %30 = arith.mulf %25, %29 : vector<16x32xf32>
      %c0_18 = arith.constant 0 : index
      %c0_19 = arith.constant 0 : index
      %31 = vector.load %arg7[%c0_18, %c0_19] : memref<128x128xf32, #tpu.memory_space<vmem>>, vector<32x128xf32>
      %cst = arith.constant dense<0.000000e+00> : vector<16x128xf32>
      %32 = tpu.matmul %30, %31, %cst {dimension_numbers = #tpu.dot_dimension_numbers<[1], [0], [0], [1], [0, 0, 1, 1], [], []>} : vector<16x32xf32>, vector<32x128xf32>, vector<16x128xf32> -> vector<16x128xf32>
      %33 = arith.addf %23, %32 : vector<16x128xf32>
      %c1 = arith.constant 1 : index
      %c0_20 = arith.constant 0 : index
      %c0_21 = arith.constant 0 : index
      %34 = vector.load %arg10[%c1, %c0_20, %c0_21] : memref<4x16x32xf32, #tpu.memory_space<vmem>>, vector<1x16x32xf32>
      %35 = vector.shape_cast %34 : vector<1x16x32xf32> to vector<16x32xf32>
      %c1_22 = arith.constant 1 : index
      %c0_23 = arith.constant 0 : index
      %c0_24 = arith.constant 0 : index
      %36 = vector.load %arg12[%c1_22, %c0_23, %c0_24] : memref<4x16x1xf32, #tpu.memory_space<vmem>>, vector<1x16x1xf32>
      %37 = vector.shape_cast %36 : vector<1x16x1xf32> to vector<16x1xf32>
      %38 = tpu.reciprocal %37 : vector<16x1xf32> -> vector<16x1xf32>
      %39 = vector.broadcast %38 : vector<16x1xf32> to vector<16x32xf32>
      %40 = arith.mulf %35, %39 : vector<16x32xf32>
      %c32 = arith.constant 32 : index
      %c0_25 = arith.constant 0 : index
      %41 = vector.load %arg7[%c32, %c0_25] : memref<128x128xf32, #tpu.memory_space<vmem>>, vector<32x128xf32>
      %cst_26 = arith.constant dense<0.000000e+00> : vector<16x128xf32>
      %42 = tpu.matmul %40, %41, %cst_26 {dimension_numbers = #tpu.dot_dimension_numbers<[1], [0], [0], [1], [0, 0, 1, 1], [], []>} : vector<16x32xf32>, vector<32x128xf32>, vector<16x128xf32> -> vector<16x128xf32>
      %43 = arith.addf %33, %42 : vector<16x128xf32>
      %c2 = arith.constant 2 : index
      %c0_27 = arith.constant 0 : index
      %c0_28 = arith.constant 0 : index
      %44 = vector.load %arg10[%c2, %c0_27, %c0_28] : memref<4x16x32xf32, #tpu.memory_space<vmem>>, vector<1x16x32xf32>
      %45 = vector.shape_cast %44 : vector<1x16x32xf32> to vector<16x32xf32>
      %c2_29 = arith.constant 2 : index
      %c0_30 = arith.constant 0 : index
      %c0_31 = arith.constant 0 : index
      %46 = vector.load %arg12[%c2_29, %c0_30, %c0_31] : memref<4x16x1xf32, #tpu.memory_space<vmem>>, vector<1x16x1xf32>
      %47 = vector.shape_cast %46 : vector<1x16x1xf32> to vector<16x1xf32>
      %48 = tpu.reciprocal %47 : vector<16x1xf32> -> vector<16x1xf32>
      %49 = vector.broadcast %48 : vector<16x1xf32> to vector<16x32xf32>
      %50 = arith.mulf %45, %49 : vector<16x32xf32>
      %c64 = arith.constant 64 : index
      %c0_32 = arith.constant 0 : index
      %51 = vector.load %arg7[%c64, %c0_32] : memref<128x128xf32, #tpu.memory_space<vmem>>, vector<32x128xf32>
      %cst_33 = arith.constant dense<0.000000e+00> : vector<16x128xf32>
      %52 = tpu.matmul %50, %51, %cst_33 {dimension_numbers = #tpu.dot_dimension_numbers<[1], [0], [0], [1], [0, 0, 1, 1], [], []>} : vector<16x32xf32>, vector<32x128xf32>, vector<16x128xf32> -> vector<16x128xf32>
      %53 = arith.addf %43, %52 : vector<16x128xf32>
      %c3 = arith.constant 3 : index
      %c0_34 = arith.constant 0 : index
      %c0_35 = arith.constant 0 : index
      %54 = vector.load %arg10[%c3, %c0_34, %c0_35] : memref<4x16x32xf32, #tpu.memory_space<vmem>>, vector<1x16x32xf32>
      %55 = vector.shape_cast %54 : vector<1x16x32xf32> to vector<16x32xf32>
      %c3_36 = arith.constant 3 : index
      %c0_37 = arith.constant 0 : index
      %c0_38 = arith.constant 0 : index
      %56 = vector.load %arg12[%c3_36, %c0_37, %c0_38] : memref<4x16x1xf32, #tpu.memory_space<vmem>>, vector<1x16x1xf32>
      %57 = vector.shape_cast %56 : vector<1x16x1xf32> to vector<16x1xf32>
      %58 = tpu.reciprocal %57 : vector<16x1xf32> -> vector<16x1xf32>
      %59 = vector.broadcast %58 : vector<16x1xf32> to vector<16x32xf32>
      %60 = arith.mulf %55, %59 : vector<16x32xf32>
      %c96 = arith.constant 96 : index
      %c0_39 = arith.constant 0 : index
      %61 = vector.load %arg7[%c96, %c0_39] : memref<128x128xf32, #tpu.memory_space<vmem>>, vector<32x128xf32>
      %cst_40 = arith.constant dense<0.000000e+00> : vector<16x128xf32>
      %62 = tpu.matmul %60, %61, %cst_40 {dimension_numbers = #tpu.dot_dimension_numbers<[1], [0], [0], [1], [0, 0, 1, 1], [], []>} : vector<16x32xf32>, vector<32x128xf32>, vector<16x128xf32> -> vector<16x128xf32>
      %63 = arith.addf %53, %62 : vector<16x128xf32>
      %c0_41 = arith.constant 0 : index
      %c0_42 = arith.constant 0 : index
      %c0_43 = arith.constant 0 : index
      %64 = vector.load %arg9[%c0_41, %c0_42, %c0_43] : memref<1x16x128xf32, #tpu.memory_space<vmem>>, vector<1x16x128xf32>
      %65 = vector.shape_cast %64 : vector<1x16x128xf32> to vector<16x128xf32>
      %66 = vector.shape_cast %63 : vector<16x128xf32> to vector<1x16x128xf32>
      tpu.vector_store %arg9[%c0_41, %c0_42, %c0_43], %66 {strides = array<i32>} : memref<1x16x128xf32, #tpu.memory_space<vmem>>, vector<1x16x128xf32>,
    } else {
    }
    return
  }
  func.func @transform_0(%arg0: i32, %arg1: i32, %arg2: i32) -> (i32, i32, i32) {
    %c0_i32 = arith.constant 0 : i32
    %c0_i32_0 = arith.constant 0 : i32
    return %arg0, %arg1, %c0_i32 : i32, i32, i32
  }
  func.func @transform_1(%arg0: i32, %arg1: i32, %arg2: i32) -> (i32, i32, i32) {
    %0 = arith.minsi %arg2, %arg1 : i32
    %c1_i32 = arith.constant 1 : i32
    %c0_i32 = arith.constant 0 : i32
    return %arg0, %0, %c1_i32 : i32, i32, i32
  }
  func.func @transform_2(%arg0: i32, %arg1: i32, %arg2: i32) -> (i32, i32, i32) {
    %0 = arith.minsi %arg2, %arg1 : i32
    %c2_i32 = arith.constant 2 : i32
    %c0_i32 = arith.constant 0 : i32
    return %arg0, %0, %c2_i32 : i32, i32, i32
  }
  func.func @transform_3(%arg0: i32, %arg1: i32, %arg2: i32) -> (i32, i32, i32) {
    %c0_i32 = arith.constant 0 : i32
    %c0_i32_0 = arith.constant 0 : i32
    return %arg0, %arg1, %c0_i32 : i32, i32, i32
  }
  func.func @transform_4(%arg0: i32, %arg1: i32, %arg2: i32) -> (i32, i32) {
    %c0_i32 = arith.constant 0 : i32
    %c0_i32_0 = arith.constant 0 : i32
    %c0_i32_1 = arith.constant 0 : i32
    return %c0_i32, %c0_i32_0 : i32, i32
  }
  func.func @transform_5(%arg0: i32, %arg1: i32, %arg2: i32) -> (i32, i32) {
    %c0_i32 = arith.constant 0 : i32
    %c0_i32_0 = arith.constant 0 : i32
    %c0_i32_1 = arith.constant 0 : i32
    return %c0_i32, %c0_i32_0 : i32, i32
  }
  func.func @transform_6(%arg0: i32, %arg1: i32, %arg2: i32) -> (i32, i32, i32) {
    %c0_i32 = arith.constant 0 : i32
    %c0_i32_0 = arith.constant 0 : i32
    return %arg0, %arg1, %c0_i32 : i32, i32, i32
  }
}

module attributes {stable_mosaic.version = 11 : i64} {
  func.func @_linear_kernel(%arg0: i32, %arg1: i32, %arg2: memref<1x16x128xf32, #tpu.memory_space<vmem>>, %arg3: memref<128x128xf32, #tpu.memory_space<vmem>>, %arg4: memref<1x128xf32, #tpu.memory_space<vmem>>, %arg5: memref<1x16x128xf32, #tpu.memory_space<vmem>>) attributes {dimension_semantics = [#tpu.dimension_semantics<parallel>, #tpu.dimension_semantics<parallel>], iteration_bounds = array<i64: 2, 1>, scalar_prefetch = 0 : i64, scratch_operands = 0 : i64, tpu.core_type = #tpu.core_type<tc>, window_params = [{transform_indices = @transform_0, window_bounds = array<i64: 1, 16, 128>}, {pipeline_mode = #tpu.pipeline_mode<synchronous>, transform_indices = @transform_1, window_bounds = array<i64: 128, 128>}, {pipeline_mode = #tpu.pipeline_mode<synchronous>, transform_indices = @transform_2, window_bounds = array<i64: 1, 128>}, {transform_indices = @transform_3, window_bounds = array<i64: 1, 16, 128>}]} {
    %c0 = arith.constant 0 : index
    %c0_0 = arith.constant 0 : index
    %c0_1 = arith.constant 0 : index
    %0 = vector.load %arg2[%c0, %c0_0, %c0_1] : memref<1x16x128xf32, #tpu.memory_space<vmem>>, vector<1x16x128xf32>
    %1 = vector.shape_cast %0 : vector<1x16x128xf32> to vector<16x128xf32>
    %c0_2 = arith.constant 0 : index
    %c0_3 = arith.constant 0 : index
    %2 = vector.load %arg3[%c0_2, %c0_3] : memref<128x128xf32, #tpu.memory_space<vmem>>, vector<128x128xf32>
    %cst = arith.constant dense<0.000000e+00> : vector<16x128xf32>
    %3 = tpu.matmul %1, %2, %cst {dimension_numbers = #tpu.dot_dimension_numbers<[1], [0], [0], [1], [0, 0, 1, 1], [], []>} : vector<16x128xf32>, vector<128x128xf32>, vector<16x128xf32> -> vector<16x128xf32>
    %c0_4 = arith.constant 0 : index
    %c0_5 = arith.constant 0 : index
    %4 = vector.load %arg4[%c0_4, %c0_5] : memref<1x128xf32, #tpu.memory_space<vmem>>, vector<1x128xf32>
    %5 = vector.broadcast %4 : vector<1x128xf32> to vector<16x128xf32>
    %6 = arith.addf %3, %5 : vector<16x128xf32>
    %c0_6 = arith.constant 0 : index
    %c0_7 = arith.constant 0 : index
    %c0_8 = arith.constant 0 : index
    %7 = vector.load %arg5[%c0_6, %c0_7, %c0_8] : memref<1x16x128xf32, #tpu.memory_space<vmem>>, vector<1x16x128xf32>
    %8 = vector.shape_cast %7 : vector<1x16x128xf32> to vector<16x128xf32>
    %9 = vector.shape_cast %6 : vector<16x128xf32> to vector<1x16x128xf32>
    tpu.vector_store %arg5[%c0_6, %c0_7, %c0_8], %9 {strides = array<i32>} : memref<1x16x128xf32, #tpu.memory_space<vmem>>, vector<1x16x128xf32>,
    return
  }
  func.func @transform_0(%arg0: i32, %arg1: i32) -> (i32, i32, i32) {
    %c0_i32 = arith.constant 0 : i32
    %c0_i32_0 = arith.constant 0 : i32
    return %arg0, %arg1, %c0_i32 : i32, i32, i32
  }
  func.func @transform_1(%arg0: i32, %arg1: i32) -> (i32, i32) {
    %c0_i32 = arith.constant 0 : i32
    %c0_i32_0 = arith.constant 0 : i32
    %c0_i32_1 = arith.constant 0 : i32
    return %c0_i32, %c0_i32_0 : i32, i32
  }
  func.func @transform_2(%arg0: i32, %arg1: i32) -> (i32, i32) {
    %c0_i32 = arith.constant 0 : i32
    %c0_i32_0 = arith.constant 0 : i32
    %c0_i32_1 = arith.constant 0 : i32
    return %c0_i32, %c0_i32_0 : i32, i32
  }
  func.func @transform_3(%arg0: i32, %arg1: i32) -> (i32, i32, i32) {
    %c0_i32 = arith.constant 0 : i32
    %c0_i32_0 = arith.constant 0 : i32
    return %arg0, %arg1, %c0_i32 : i32, i32, i32
  }
}

</mosaic_0001>

<bundles_post_ra>
// kernel: music_encoder.9
= control target key start
LH: loop header
LB: loop body
LE: loop exit
PB: predicated region body
PF: predicated region fallthrough
CT: control target
= control target key end

     0   :  { %s840_s18 = smov 0   ;;  %s842_s19 = smov 0   ;;  %s1040_s0 = inlined_call_operand.vmem [shape: f32[2,16,128], index: 0, kind: input, shape index: {}]   ;;  %s1041_s1 = inlined_call_operand.vmem [shape: f32[1,128], index: 1, kind: input, shape index: {}]   ;;  %s1042_s2 = inlined_call_operand.vmem [shape: f32[1,128], index: 2, kind: input, shape index: {}]   ;;  %s1043_s3 = inlined_call_operand.vmem [shape: f32[128,384], index: 3, kind: input, shape index: {}]   ;;  %s1044_s4 = inlined_call_operand.vmem [shape: f32[1,384], index: 4, kind: input, shape index: {}]   ;;  %s1045_s5 = inlined_call_operand.vmem [shape: f32[2,16,384], index: 5, kind: output, shape index: {}]  }
   0x1   :  { %s844_s20 = smov 0  }
   0x2 LB: > { %s27_s21 = sadd.s32 1, %s803_s19  ;;  %p629_p0 = scmp.ge.s32.totalorder %s807_s20, 1  ;;  %s807_s20 = sphi %s844_s20, %s15_s20   ;;  %s803_s19 = sphi %s842_s19, %s1047_s19   ;;  %s799_s18 = sphi %s840_s18, %s1046_s18  }
   0x3   : > { %p29_p1 = scmp.ge.s32.totalorder %s27_s21, 2  ;;  %p208_p2 = scmp.lt.s32.totalorder %s807_s20, 3 }
   0x5   : > { %s1049_s21 = smov (%p29_p1, %s27_s21), 0  ;;  %p209_p3 = pnand %p629_p0, %p208_p2 }
   0x6   : > { %p246_p4 = scmp.lt.s32.totalorder (!%p209_p3), %s799_s18, 1  ;;  %v310_v2 = vld [vmem:[%s1043_s3 + $0x8] sm:$0xff] (!%p209_p3)  ;;  %v313_v3 = vld [vmem:[%s1043_s3 + $0x20] sm:$0xff] (!%p209_p3)  ;;  %v312_v6 = vld [vmem:[%s1043_s3 + $0x18] sm:$0xff] (!%p209_p3) }
   0x7   : > { %212 = sbr.rel (%p209_p3) target bundleno = 549 (0x225), region = 40  ;;  %v309_v4 = vld [vmem:[%s1043_s3] sm:$0xff] (!%p209_p3)  ;;  %v691_v5 = vpack.c.bf16 (!%p209_p3), %v313_v3, %v310_v2  ;;  %v316_v7 = vld [vmem:[%s1043_s3 + $0x38] sm:$0xff] (!%p209_p3)  ;;  %v319_v8 = vld [vmem:[%s1043_s3 + $0x50] sm:$0xff] (!%p209_p3) }
   0x8   : > { %v693_v9 = vpack.c.bf16 (!%p209_p3), %v312_v6, %v309_v4  ;;  %v695_v10 = vpack.c.bf16 (!%p209_p3), %v319_v8, %v316_v7  ;;  %v311_v11 = vld [vmem:[%s1043_s3 + $0x10] sm:$0xff] (!%p209_p3)  ;;  %v314_v12 = vld [vmem:[%s1043_s3 + $0x28] sm:$0xff] (!%p209_p3)  ;;  %v325_v17 = vld [vmem:[%s1043_s3 + $0x80] sm:$0xff] (!%p209_p3)  ;;  %v809_v4 = vmov (!%p209_p3), 0.0  }
   0x9   : > { %v315_v13 = vld [vmem:[%s1043_s3 + $0x30] sm:$0xff] (!%p209_p3)  ;;  %692 = vmatprep.subr.bf16.mxu0 (!%p209_p3), %v691_v5  ;;  %v723_v14 = vpack.c.bf16 (!%p209_p3), %v314_v12, %v311_v11  ;;  %v318_v15 = vld [vmem:[%s1043_s3 + $0x48] sm:$0xff] (!%p209_p3)  ;;  %v317_v19 = vld [vmem:[%s1043_s3 + $0x40] sm:$0xff] (!%p209_p3)  ;;  %438 = vmatprep.mubr.f32.mxu0 (!%p209_p3), %v809_v4 }
   0xa   : > { %v322_v16 = vld [vmem:[%s1043_s3 + $0x68] sm:$0xff] (!%p209_p3)  ;;  %694 = vmatpush1.bf16.msra.mxu0 (!%p209_p3), %v693_v9  ;;  %v697_v18 = vpack.c.bf16 (!%p209_p3), %v318_v15, %v315_v13  ;;  %v320_v20 = vld [vmem:[%s1043_s3 + $0x58] sm:$0xff] (!%p209_p3)  ;;  %v321_v23 = vld [vmem:[%s1043_s3 + $0x60] sm:$0xff] (!%p209_p3) }
   0xb   : > { %696 = vmatprep.subr.bf16.mxu0 (!%p209_p3), %v695_v10  ;;  %724 = vmatprep.subr.bf16.mxu1 (!%p209_p3), %v723_v14  ;;  %v699_v21 = vpack.c.bf16 (!%p209_p3), %v325_v17, %v322_v16  ;;  %v727_v22 = vpack.c.bf16 (!%p209_p3), %v320_v20, %v317_v19  ;;  %v324_v24 = vld [vmem:[%s1043_s3 + $0x78] sm:$0xff] (!%p209_p3)  ;;  %v331_v35 = vld [vmem:[%s1043_s3 + $0xb0] sm:$0xff] (!%p209_p3)  ;;  %v326_v38 = vld [vmem:[%s1043_s3 + $0x88] sm:$0xff] (!%p209_p3) }
   0xc   : > { %726 = vmatpush3.bf16.msra.mxu1 (!%p209_p3), %v723_v14  ;;  %v701_v25 = vpack.c.bf16 (!%p209_p3), %v324_v24, %v321_v23  ;;  %v328_v34 = vld [vmem:[%s1043_s3 + $0x98] sm:$0xff] (!%p209_p3)  ;;  %v323_v36 = vld [vmem:[%s1043_s3 + $0x70] sm:$0xff] (!%p209_p3)  ;;  %v330_v40 = vld [vmem:[%s1043_s3 + $0xa8] sm:$0xff] (!%p209_p3) }
   0xd   : > { %728 = vmatprep.subr.bf16.mxu1 (!%p209_p3), %v727_v22  ;;  %v703_v37 = vpack.c.bf16 (!%p209_p3), %v331_v35, %v328_v34  ;;  %v327_v39 = vld [vmem:[%s1043_s3 + $0x90] sm:$0xff] (!%p209_p3)  ;;  %v731_v41 = vpack.c.bf16 (!%p209_p3), %v326_v38, %v323_v36  ;;  %v334_v43 = vld [vmem:[%s1043_s3 + $0xc8] sm:$0xff] (!%p209_p3)  ;;  %v337_v44 = vld [vmem:[%s1043_s3 + $0xe0] sm:$0xff] (!%p209_p3) }
   0xe   : > { %s1051_s18 = smov (!%p246_p4, %s799_s18), 1  ;;  %698 = vmatpush1.bf16.msra.mxu0 %v697_v18  ;;  %v705_v42 = vpack.c.bf16 %v330_v40, %v327_v39  ;;  %v329_v45 = vld [vmem:[%s1043_s3 + $0xa0] sm:$0xff]  ;;  %v707_v46 = vpack.c.bf16 %v337_v44, %v334_v43  ;;  %v332_v47 = vld [vmem:[%s1043_s3 + $0xb8] sm:$0xff]  ;;  %v343_v53 = vld [vmem:[%s1043_s3 + $0x110] sm:$0xff] }
   0xf   : > { %s637_s22 = sshll.u32 %s1051_s18, 4  ;;  %700 = vmatprep.subr.bf16.mxu0 %v699_v21  ;;  %v333_v48 = vld [vmem:[%s1043_s3 + $0xc0] sm:$0xff]  ;;  %v336_v49 = vld [vmem:[%s1043_s3 + $0xd8] sm:$0xff]  ;;  %v735_v50 = vpack.c.bf16 %v332_v47, %v329_v45  ;;  %v335_v54 = vld [vmem:[%s1043_s3 + $0xd0] sm:$0xff]  ;;  %s755_s23 = smul.u32 48, %s1051_s18 }
  0x10   : > { %s253_s25 = scalar_lea.vmem %s1040_s0, %s637_s22  ;;  %730 = vmatpush3.bf16.msra.mxu1 %v727_v22  ;;  %v709_v51 = vpack.c.bf16 %v336_v49, %v333_v48  ;;  %v340_v52 = vld [vmem:[%s1043_s3 + $0xf8] sm:$0xff]  ;;  %v338_v56 = vld [vmem:[%s1043_s3 + $0xe8] sm:$0xff]  ;;  %v339_v57 = vld [vmem:[%s1043_s3 + $0xf0] sm:$0xff] }
  0x11   : > { %v266_v0 = vld [vmem:[%s253_s25] sm:$0xff]  ;;  %v267_v1 = vld [vmem:[%s253_s25 + $0x8] sm:$0xff]  ;;  %732 = vmatprep.subr.bf16.mxu1 %v731_v41  ;;  %v711_v55 = vpack.c.bf16 %v343_v53, %v340_v52  ;;  %v739_v59 = vpack.c.bf16 %v338_v56, %v335_v54  ;;  %v348_v3 = vld [vmem:[%s1043_s3 + $0x138] sm:$0xff]  ;;  %s264_s26 = scalar_lea.vmem %s1045_s5, %s755_s23 }
  0x12   : > { %270 = vadd.xlane.f32.xlu0 %v266_v0  ;;  %702 = vmatpush1.bf16.msra.mxu0 %v701_v25  ;;  %v342_v58 = vld [vmem:[%s1043_s3 + $0x108] sm:$0xff]  ;;  %v349_v62 = vld [vmem:[%s1043_s3 + $0x140] sm:$0xff]  ;;  %v352_v7 = vld [vmem:[%s1043_s3 + $0x158] sm:$0xff] }
  0x13   : > { %704 = vmatprep.subr.bf16.mxu0 %v703_v37  ;;  %v713_v60 = vpack.c.bf16 %v342_v58, %v339_v57  ;;  %v346_v61 = vld [vmem:[%s1043_s3 + $0x128] sm:$0xff]  ;;  %v341_v63 = vld [vmem:[%s1043_s3 + $0x100] sm:$0xff]  ;;  %v355_v8 = vld [vmem:[%s1043_s3 + $0x170] sm:$0xff]  ;;  %v359_v37 = vlaneseq }
  0x14   : > { %734 = vmatpush3.bf16.msra.mxu1 %v731_v41  ;;  %v345_v2 = vld [vmem:[%s1043_s3 + $0x120] sm:$0xff]  ;;  %v347_v9 = vld [vmem:[%s1043_s3 + $0x130] sm:$0xff]  ;;  %v719_v10 = vpack.c.bf16 %v355_v8, %v352_v7  ;;  %v350_v11 = vld [vmem:[%s1043_s3 + $0x148] sm:$0xff] }
  0x15   : > { %736 = vmatprep.subr.bf16.mxu1 %v735_v50  ;;  %v717_v6 = vpack.c.bf16 %v348_v3, %v345_v2  ;;  %v351_v12 = vld [vmem:[%s1043_s3 + $0x150] sm:$0xff]  ;;  %v354_v13 = vld [vmem:[%s1043_s3 + $0x168] sm:$0xff]  ;;  %v747_v14 = vpack.c.bf16 %v350_v11, %v347_v9  ;;  %v353_v16 = vld [vmem:[%s1043_s3 + $0x160] sm:$0xff]  ;;  %v360_v38 = vshrl.u32 %v359_v37, 7 }
  0x16   : > { %272 = vadd.xlane.f32.xlu0 %v267_v1  ;;  %706 = vmatpush1.bf16.msra.mxu0 %v705_v42  ;;  %v721_v15 = vpack.c.bf16 %v354_v13, %v351_v12  ;;  %v356_v17 = vld [vmem:[%s1043_s3 + $0x178] sm:$0xff]  ;;  %v357_v39 = vld [vmem:[%s1044_s4] sm:$0x7] }
  0x17   : > { %708 = vmatprep.subr.bf16.mxu0 %v707_v46  ;;  %v751_v18 = vpack.c.bf16 %v356_v17, %v353_v16  ;;  %v365_v40 = vsub.s32 1, %v360_v38  ;;  %v369_v42 = vsub.s32 2, %v360_v38 }
  0x18   : > { %738 = vmatpush3.bf16.msra.mxu1 %v735_v50 }
  0x19   : > { %740 = vmatprep.subr.bf16.mxu1 %v739_v59  ;;  %v366_v43 = vrot.slane %v357_v39, %v365_v40  ;;  %v370_v46 = vrot.slane %v357_v39, %v369_v42 }
  0x1a   : > { %710 = vmatpush1.bf16.msra.mxu0 %v709_v51 }
  0x1b   : > { %712 = vmatprep.subr.bf16.mxu0 %v711_v55 }
  0x1c   : > { %742 = vmatpush3.bf16.msra.mxu1 %v739_v59 }
  0x1e   : > { %714 = vmatpush1.bf16.msra.mxu0 %v713_v60 }
  0x9f   : > { %v271_v26 = vpop.xlane.xlu0 %270 }
  0xa0   : > { %v275_v27 = vmul.f32 0.0078125, %v271_v26  ;;  %v633_v26 = vld [vmem:[%s1041_s1] ss:$0 sm:$0xff] }
  0xa2   : > { %v912_v28 = vsub.f32 %v266_v0, %v275_v27  ;;  %v715_v0 = vpack.c.bf16 %v349_v62, %v346_v61 }
  0xa3   : > { %v273_v29 = vpop.xlane.xlu0 %272 }
  0xa4   : > { %v276_v30 = vmul.f32 0.0078125, %v273_v29  ;;  %v279_v31 = vmul.f32 %v912_v28, %v912_v28  ;;  %716 = vmatprep.subr.bf16.mxu0 %v715_v0  ;;  %v634_v29 = vld [vmem:[%s1042_s2] ss:$0 sm:$0xff] }
  0xa5   : > { %718 = vmatpush1.bf16.msra.mxu0 %v717_v6 }
  0xa6   : > { %v916_v32 = vsub.f32 %v267_v1, %v276_v30  ;;  %281 = vadd.xlane.f32.xlu1 %v279_v31  ;;  %v344_v1 = vld [vmem:[%s1043_s3 + $0x118] sm:$0xff]  ;;  %720 = vmatprep.subr.bf16.mxu0 %v719_v10 }
  0xa7   : > { %v743_v5 = vpack.c.bf16 %v344_v1, %v341_v63 }
  0xa8   : > { %v280_v33 = vmul.f32 %v916_v32, %v916_v32 }
  0xa9   : > { %744 = vmatprep.subr.bf16.mxu1 %v743_v5  ;;  %722 = vmatpush1.bf16.msra.mxu0 %v721_v15 }
  0xaa   : > { %283 = vadd.xlane.f32.xlu1 %v280_v33  ;;  %746 = vmatpush3.bf16.msra.mxu1 %v743_v5 }
  0xab   : > { %748 = vmatprep.subr.bf16.mxu1 %v747_v14 }
  0xae   : > { %750 = vmatpush3.bf16.msra.mxu1 %v747_v14 }
  0xaf   : > { %752 = vmatprep.subr.bf16.mxu1 %v751_v18 }
  0xb2   : > { %754 = vmatpush3.bf16.msra.mxu1 %v751_v18 }
 0x133   : > { %v282_v19 = vpop.xlane.xlu1 %281 }
 0x134   : > { %v285_v20 = vmul.f32 0.0078125, %v282_v19 }
 0x136   : > { %v287_v21 = vadd.f32 1e-05, %v285_v20 }
 0x137   : > { %v284_v22 = vpop.xlane.xlu1 %283 }
 0x138   : > { %781 = vrsqrt.f32 %v287_v21  ;;  %v286_v23 = vmul.f32 0.0078125, %v284_v22 }
 0x13a   : > { %v288_v24 = vadd.f32 1e-05, %v286_v23 }
 0x13c   : > { %783 = vrsqrt.f32 %v288_v24 }
 0x142   : > { %v782_v25 = vpop.eup %781 }
 0x143   : > { %v291_v27 = vmul.f32 %v782_v25, %v912_v28  ;;  %v361_v28 = vsub.s32 0, %v360_v38 }
 0x145   : > { %v299_v30 = vmul.f32 %v633_v26, %v291_v27  ;;  %v362_v41 = vrot.slane %v357_v39, %v361_v28 }
 0x146   : > { %v784_v31 = vpop.eup %783 }
 0x147   : > { %v307_v33 = vadd.f32 %v634_v29, %v299_v30  ;;  %v292_v34 = vmul.f32 %v784_v31, %v916_v32 }
 0x149   : > { %439 = vmatmul.mubr.f32.vlgmr.msra.gmra.mrb[0].mxu0 %v307_v33  ;;  %688 = vmatprep.mubr.f32.mxu1 %v307_v33  ;;  %v300_v35 = vmul.f32 %v633_v26, %v292_v34 }
 0x14a   : > { %444 = vmatprep.mubr.f32.mxu0 %v809_v4 }
 0x14b   : > { %v308_v36 = vadd.f32 %v634_v29, %v300_v35 }
 0x14d   : > { %445 = vmatmul.mubr.f32.gmra.mrb[2].mxu0 %v308_v36  ;;  %689 = vmatmul.mubr.f32.vlgmr.msra.gmra.mrb[0].mxu1 %v308_v36 }
 0x21c   : > { %v440_v32 = vpop.f32.mrb[0].mxu0 }
 0x21d   : > { %v441_v44 = vadd.f32 %v440_v32, %v362_v41  ;;  %v442_v45 = vpop.f32.mrb[1].mxu0 }
 0x21e   : > { %v443_v47 = vadd.f32 %v442_v45, %v366_v43 }
 0x21f   : > { %526 = vst [vmem:[%s264_s26] sm:$0xff] %v441_v44 }
 0x220   : > { %527 = vst [vmem:[%s264_s26 + $0x8] sm:$0xff] %v443_v47  ;;  %v446_v48 = vpop.f32.mrb[2].mxu0  ;;  %v690_v49 = vpop.f32.mrb[0].mxu1 }
 0x221   : > { %v447_v50 = vadd.f32 %v446_v48, %v362_v41  ;;  %v523_v51 = vadd.f32 %v690_v49, %v370_v46  ;;  %v448_v52 = vpop.f32.mrb[3].mxu0  ;;  %v517_v53 = vpop.f32.mrb[1].mxu1 }
 0x222   : > { %v449_v54 = vadd.f32 %v448_v52, %v366_v43  ;;  %v518_v55 = vadd.f32 %v517_v53, %v370_v46 }
 0x223   : > { %529 = vst [vmem:[%s264_s26 + $0x18] sm:$0xff] %v447_v50  ;;  %531 = vst [vmem:[%s264_s26 + $0x28] sm:$0xff] %v523_v51 }
 0x224   : > { %530 = vst [vmem:[%s264_s26 + $0x20] sm:$0xff] %v449_v54  ;;  %528 = vst [vmem:[%s264_s26 + $0x10] sm:$0xff] %v518_v55 }
 0x225 PF: > { %s15_s20 = sadd.s32 1, %s807_s20   ;;  %s1046_s18 = smov %s803_s19 }
 0x226   : > { %p12_p5 = scmp.ge.s32.totalorder %s15_s20, 4   ;;  %s1047_s19 = smov %s1049_s21 }
 0x228   :  { %14 = sbr.rel (!%p12_p5) target bundleno = 2 (0x2), region = 70 }

// kernel: music_encoder.11
= control target key start
LH: loop header
LB: loop body
LE: loop exit
PB: predicated region body
PF: predicated region fallthrough
CT: control target
= control target key end

     0   :  { %s1283_s24 = smov 0   ;;  %s1285_s25 = smov 0   ;;  %s1743_s0 = inlined_call_operand.vmem [shape: f32[2,16,128], index: 0, kind: input, shape index: {}]   ;;  %s1744_s1 = inlined_call_operand.vmem [shape: f32[1,128], index: 1, kind: input, shape index: {}]   ;;  %s1745_s2 = inlined_call_operand.vmem [shape: f32[1,128], index: 2, kind: input, shape index: {}]   ;;  %s1746_s3 = inlined_call_operand.vmem [shape: f32[128,512], index: 3, kind: input, shape index: {}]   ;;  %s1747_s4 = inlined_call_operand.vmem [shape: f32[1,512], index: 4, kind: input, shape index: {}]   ;;  %s1748_s5 = inlined_call_operand.vmem [shape: f32[512,128], index: 5, kind: input, shape index: {}]   ;;  %s1749_s6 = inlined_call_operand.vmem [shape: f32[1,128], index: 6, kind: input, shape index: {}]   ;;  %s1750_s7 = inlined_call_operand.vmem [shape: f32[2,16,128], index: 7, kind: output, shape index: {}]  }
   0x1   :  { %s1287_s26 = smov 0  }
   0x2 LB: > { %s29_s27 = sadd.s32 1, %s1236_s25  ;;  %p957_p0 = scmp.ge.s32.totalorder %s1240_s26, 1  ;;  %s1240_s26 = sphi %s1287_s26, %s17_s26   ;;  %s1236_s25 = sphi %s1285_s25, %s1752_s25   ;;  %s1232_s24 = sphi %s1283_s24, %s1751_s24  }
   0x3   : > { %p31_p1 = scmp.ge.s32.totalorder %s29_s27, 2  ;;  %p258_p2 = scmp.lt.s32.totalorder %s1240_s26, 3 }
   0x5   : > { %s1754_s27 = smov (%p31_p1, %s29_s27), 0  ;;  %p259_p3 = pnand %p957_p0, %p258_p2 }
   0x6   : > { %p299_p4 = scmp.lt.s32.totalorder (!%p259_p3), %s1232_s24, 1  ;;  %v362_v2 = vld [vmem:[%s1746_s3 + $0x8] sm:$0xff] (!%p259_p3)  ;;  %v364_v4 = vld [vmem:[%s1746_s3 + $0x18] sm:$0xff] (!%p259_p3)  ;;  %v361_v7 = vld [vmem:[%s1746_s3] sm:$0xff] (!%p259_p3) }
   0x7   : > { %262 = sbr.rel (%p259_p3) target bundleno = 789 (0x315), region = 48  ;;  %v366_v3 = vld [vmem:[%s1746_s3 + $0x28] sm:$0xff] (!%p259_p3)  ;;  %v368_v6 = vld [vmem:[%s1746_s3 + $0x38] sm:$0xff] (!%p259_p3)  ;;  %v365_v8 = vld [vmem:[%s1746_s3 + $0x20] sm:$0xff] (!%p259_p3) }
   0x8   : > { %v1045_v5 = vpack.c.bf16 (!%p259_p3), %v366_v3, %v362_v2  ;;  %v1077_v9 = vpack.c.bf16 (!%p259_p3), %v368_v6, %v364_v4  ;;  %v1047_v10 = vpack.c.bf16 (!%p259_p3), %v365_v8, %v361_v7  ;;  %v363_v11 = vld [vmem:[%s1746_s3 + $0x10] sm:$0xff] (!%p259_p3)  ;;  %v370_v13 = vld [vmem:[%s1746_s3 + $0x48] sm:$0xff] (!%p259_p3)  ;;  %v372_v16 = vld [vmem:[%s1746_s3 + $0x58] sm:$0xff] (!%p259_p3) }
   0x9   : > { %v367_v12 = vld [vmem:[%s1746_s3 + $0x30] sm:$0xff] (!%p259_p3)  ;;  %v374_v15 = vld [vmem:[%s1746_s3 + $0x68] sm:$0xff] (!%p259_p3)  ;;  %v376_v17 = vld [vmem:[%s1746_s3 + $0x78] sm:$0xff] (!%p259_p3) }
   0xa   : > { %1046 = vmatprep.subr.bf16.mxu0 (!%p259_p3), %v1045_v5  ;;  %v1079_v14 = vpack.c.bf16 (!%p259_p3), %v367_v12, %v363_v11  ;;  %1078 = vmatprep.subr.bf16.mxu1 (!%p259_p3), %v1077_v9  ;;  %v1049_v18 = vpack.c.bf16 (!%p259_p3), %v374_v15, %v370_v13  ;;  %v1081_v19 = vpack.c.bf16 (!%p259_p3), %v376_v17, %v372_v16  ;;  %v369_v20 = vld [vmem:[%s1746_s3 + $0x40] sm:$0xff] (!%p259_p3)  ;;  %v371_v22 = vld [vmem:[%s1746_s3 + $0x50] sm:$0xff] (!%p259_p3)  ;;  %v378_v25 = vld [vmem:[%s1746_s3 + $0x88] sm:$0xff] (!%p259_p3) }
   0xb   : > { %1048 = vmatpush1.bf16.msra.mxu0 (!%p259_p3), %v1047_v10  ;;  %v373_v21 = vld [vmem:[%s1746_s3 + $0x60] sm:$0xff] (!%p259_p3)  ;;  %v375_v24 = vld [vmem:[%s1746_s3 + $0x70] sm:$0xff] (!%p259_p3)  ;;  %v382_v26 = vld [vmem:[%s1746_s3 + $0xa8] sm:$0xff] (!%p259_p3) }
   0xc   : > { %1080 = vmatpush1.bf16.msra.mxu1 (!%p259_p3), %v1079_v14  ;;  %v1051_v23 = vpack.c.bf16 (!%p259_p3), %v373_v21, %v369_v20  ;;  %1050 = vmatprep.subr.bf16.mxu0 (!%p259_p3), %v1049_v18  ;;  %v1083_v27 = vpack.c.bf16 (!%p259_p3), %v375_v24, %v371_v22  ;;  %v1053_v28 = vpack.c.bf16 (!%p259_p3), %v382_v26, %v378_v25  ;;  %v380_v29 = vld [vmem:[%s1746_s3 + $0x98] sm:$0xff] (!%p259_p3)  ;;  %v377_v31 = vld [vmem:[%s1746_s3 + $0x80] sm:$0xff] (!%p259_p3)  ;;  %v379_v34 = vld [vmem:[%s1746_s3 + $0x90] sm:$0xff] (!%p259_p3)  ;;  %v1242_v24 = vmov (!%p259_p3), 0.0  }
   0xd   : > { %1082 = vmatprep.subr.bf16.mxu1 (!%p259_p3), %v1081_v19  ;;  %v384_v30 = vld [vmem:[%s1746_s3 + $0xb8] sm:$0xff] (!%p259_p3)  ;;  %v381_v33 = vld [vmem:[%s1746_s3 + $0xa0] sm:$0xff] (!%p259_p3)  ;;  %v383_v35 = vld [vmem:[%s1746_s3 + $0xb0] sm:$0xff] (!%p259_p3)  ;;  %511 = vmatprep.mubr.f32.mxu0 (!%p259_p3), %v1242_v24 }
   0xe   : > { %s1756_s24 = smov (!%p299_p4, %s1232_s24), 1  ;;  %v1085_v32 = vpack.c.bf16 %v384_v30, %v380_v29  ;;  %v1055_v36 = vpack.c.bf16 %v381_v33, %v377_v31  ;;  %v1087_v37 = vpack.c.bf16 %v383_v35, %v379_v34  ;;  %v386_v46 = vld [vmem:[%s1746_s3 + $0xc8] sm:$0xff]  ;;  %v388_v48 = vld [vmem:[%s1746_s3 + $0xd8] sm:$0xff]  ;;  %v385_v51 = vld [vmem:[%s1746_s3 + $0xc0] sm:$0xff]  ;;  %588 = vmatprep.mubr.f32.mxu1 %v1242_v24 }
   0xf   : > { %s967_s28 = sshll.u32 %s1756_s24, 4  ;;  %1052 = vmatpush1.bf16.msra.mxu0 %v1051_v23  ;;  %v390_v47 = vld [vmem:[%s1746_s3 + $0xe8] sm:$0xff]  ;;  %v392_v50 = vld [vmem:[%s1746_s3 + $0xf8] sm:$0xff]  ;;  %v389_v52 = vld [vmem:[%s1746_s3 + $0xe0] sm:$0xff] }
  0x10   : > { %s306_s8 = scalar_lea.vmem %s1743_s0, %s967_s28  ;;  %1084 = vmatpush1.bf16.msra.mxu1 %v1083_v27  ;;  %1054 = vmatprep.subr.bf16.mxu0 %v1053_v28  ;;  %v1057_v49 = vpack.c.bf16 %v390_v47, %v386_v46  ;;  %v1089_v53 = vpack.c.bf16 %v392_v50, %v388_v48  ;;  %v1059_v54 = vpack.c.bf16 %v389_v52, %v385_v51  ;;  %v387_v55 = vld [vmem:[%s1746_s3 + $0xd0] sm:$0xff]  ;;  %v394_v58 = vld [vmem:[%s1746_s3 + $0x108] sm:$0xff]  ;;  %v396_v60 = vld [vmem:[%s1746_s3 + $0x118] sm:$0xff]  ;;  %s316_s23 = scalar_lea.vmem %s1750_s7, %s967_s28 }
  0x11   : > { %v1309_v0 = vld [vmem:[%s306_s8] sm:$0xff]  ;;  %v1312_v1 = vld [vmem:[%s306_s8 + $0x8] sm:$0xff]  ;;  %1086 = vmatprep.subr.bf16.mxu1 %v1085_v32  ;;  %v391_v56 = vld [vmem:[%s1746_s3 + $0xf0] sm:$0xff] }
  0x12   : > { %322 = vadd.xlane.f32.xlu0 %v1309_v0  ;;  %v1091_v57 = vpack.c.bf16 %v391_v56, %v387_v55  ;;  %v398_v59 = vld [vmem:[%s1746_s3 + $0x128] sm:$0xff]  ;;  %v400_v62 = vld [vmem:[%s1746_s3 + $0x138] sm:$0xff]  ;;  %v393_v63 = vld [vmem:[%s1746_s3 + $0x100] sm:$0xff] }
  0x13   : > { %1056 = vmatpush1.bf16.msra.mxu0 %v1055_v36  ;;  %v1061_v61 = vpack.c.bf16 %v398_v59, %v394_v58  ;;  %v397_v2 = vld [vmem:[%s1746_s3 + $0x120] sm:$0xff]  ;;  %v1093_v3 = vpack.c.bf16 %v400_v62, %v396_v60  ;;  %v395_v5 = vld [vmem:[%s1746_s3 + $0x110] sm:$0xff]  ;;  %v402_v8 = vld [vmem:[%s1746_s3 + $0x148] sm:$0xff] }
  0x14   : > { %1088 = vmatpush1.bf16.msra.mxu1 %v1087_v37  ;;  %1058 = vmatprep.subr.bf16.mxu0 %v1057_v49  ;;  %v1063_v4 = vpack.c.bf16 %v397_v2, %v393_v63  ;;  %v399_v6 = vld [vmem:[%s1746_s3 + $0x130] sm:$0xff]  ;;  %v406_v9 = vld [vmem:[%s1746_s3 + $0x168] sm:$0xff]  ;;  %v404_v10 = vld [vmem:[%s1746_s3 + $0x158] sm:$0xff] }
  0x15   : > { %1090 = vmatprep.subr.bf16.mxu1 %v1089_v53  ;;  %v1095_v7 = vpack.c.bf16 %v399_v6, %v395_v5  ;;  %v1065_v11 = vpack.c.bf16 %v406_v9, %v402_v8  ;;  %v408_v12 = vld [vmem:[%s1746_s3 + $0x178] sm:$0xff]  ;;  %v401_v13 = vld [vmem:[%s1746_s3 + $0x140] sm:$0xff]  ;;  %v403_v17 = vld [vmem:[%s1746_s3 + $0x150] sm:$0xff] }
  0x16   : > { %324 = vadd.xlane.f32.xlu0 %v1312_v1  ;;  %v405_v14 = vld [vmem:[%s1746_s3 + $0x160] sm:$0xff]  ;;  %v1097_v15 = vpack.c.bf16 %v408_v12, %v404_v10  ;;  %v407_v18 = vld [vmem:[%s1746_s3 + $0x170] sm:$0xff]  ;;  %v410_v19 = vld [vmem:[%s1746_s3 + $0x188] sm:$0xff] }
  0x17   : > { %1060 = vmatpush1.bf16.msra.mxu0 %v1059_v54  ;;  %v1067_v16 = vpack.c.bf16 %v405_v14, %v401_v13  ;;  %v1099_v20 = vpack.c.bf16 %v407_v18, %v403_v17  ;;  %v414_v21 = vld [vmem:[%s1746_s3 + $0x1a8] sm:$0xff]  ;;  %v412_v22 = vld [vmem:[%s1746_s3 + $0x198] sm:$0xff]  ;;  %v409_v27 = vld [vmem:[%s1746_s3 + $0x180] sm:$0xff] }
  0x18   : > { %1092 = vmatpush1.bf16.msra.mxu1 %v1091_v57  ;;  %1062 = vmatprep.subr.bf16.mxu0 %v1061_v61  ;;  %v416_v23 = vld [vmem:[%s1746_s3 + $0x1b8] sm:$0xff]  ;;  %v1069_v25 = vpack.c.bf16 %v414_v21, %v410_v19  ;;  %v413_v28 = vld [vmem:[%s1746_s3 + $0x1a0] sm:$0xff]  ;;  %v411_v29 = vld [vmem:[%s1746_s3 + $0x190] sm:$0xff] }
  0x19   : > { %1094 = vmatprep.subr.bf16.mxu1 %v1093_v3  ;;  %v1101_v26 = vpack.c.bf16 %v416_v23, %v412_v22  ;;  %v1071_v30 = vpack.c.bf16 %v413_v28, %v409_v27  ;;  %v415_v31 = vld [vmem:[%s1746_s3 + $0x1b0] sm:$0xff]  ;;  %v418_v32 = vld [vmem:[%s1746_s3 + $0x1c8] sm:$0xff]  ;;  %v420_v36 = vld [vmem:[%s1746_s3 + $0x1d8] sm:$0xff] }
  0x1a   : > { %v422_v33 = vld [vmem:[%s1746_s3 + $0x1e8] sm:$0xff]  ;;  %v1103_v34 = vpack.c.bf16 %v415_v31, %v411_v29  ;;  %v424_v37 = vld [vmem:[%s1746_s3 + $0x1f8] sm:$0xff]  ;;  %v657_v47 = vld [vmem:[%s1748_s5 + $0x80] sm:$0xff] }
  0x1b   : > { %1064 = vmatpush1.bf16.msra.mxu0 %v1063_v4  ;;  %v1073_v35 = vpack.c.bf16 %v422_v33, %v418_v32  ;;  %v658_v48 = vld [vmem:[%s1748_s5 + $0x88] sm:$0xff]  ;;  %v689_v49 = vld [vmem:[%s1748_s5 + $0x180] sm:$0xff]  ;;  %v660_v6 = vld [vmem:[%s1748_s5 + $0x98] sm:$0xff] }
  0x1c   : > { %1096 = vmatpush1.bf16.msra.mxu1 %v1095_v7  ;;  %1066 = vmatprep.subr.bf16.mxu0 %v1065_v11  ;;  %v1109_v50 = vpack.c.bf16 %v658_v48, %v657_v47  ;;  %v690_v51 = vld [vmem:[%s1748_s5 + $0x188] sm:$0xff]  ;;  %v962_v60 = vld [vmem:[%s1744_s1] ss:$0 sm:$0xff]  ;;  %v691_v7 = vld [vmem:[%s1748_s5 + $0x190] sm:$0xff] }
  0x1d   : > { %1098 = vmatprep.subr.bf16.mxu1 %v1097_v15  ;;  %v1141_v52 = vpack.c.bf16 %v690_v51, %v689_v49  ;;  %v963_v61 = vld [vmem:[%s1745_s2] ss:$0 sm:$0xff]  ;;  %v642_v2 = vld [vmem:[%s1748_s5 + $0x8] sm:$0xff]  ;;  %v692_v8 = vld [vmem:[%s1748_s5 + $0x198] sm:$0xff] }
  0x1e   : > { %v641_v63 = vld [vmem:[%s1748_s5] sm:$0xff]  ;;  %v674_v4 = vld [vmem:[%s1748_s5 + $0x108] sm:$0xff]  ;;  %v643_v14 = vld [vmem:[%s1748_s5 + $0x10] sm:$0xff]  ;;  %v1145_v17 = vpack.c.bf16 %v692_v8, %v691_v7 }
  0x1f   : > { %1068 = vmatpush1.bf16.msra.mxu0 %v1067_v16  ;;  %v673_v3 = vld [vmem:[%s1748_s5 + $0x100] sm:$0xff]  ;;  %v1111_v12 = vpack.c.bf16 %v642_v2, %v641_v63  ;;  %v644_v15 = vld [vmem:[%s1748_s5 + $0x18] sm:$0xff]  ;;  %v675_v18 = vld [vmem:[%s1748_s5 + $0x110] sm:$0xff] }
  0x20   : > { %1100 = vmatpush1.bf16.msra.mxu1 %v1099_v20  ;;  %1070 = vmatprep.subr.bf16.mxu0 %v1069_v25  ;;  %v1143_v13 = vpack.c.bf16 %v674_v4, %v673_v3  ;;  %v661_v19 = vld [vmem:[%s1748_s5 + $0xa0] sm:$0xff]  ;;  %v662_v21 = vld [vmem:[%s1748_s5 + $0xa8] sm:$0xff]  ;;  %v680_v47 = vld [vmem:[%s1748_s5 + $0x138] sm:$0xff] }
  0x21   : > { %1102 = vmatprep.subr.bf16.mxu1 %v1101_v26  ;;  %v693_v22 = vld [vmem:[%s1748_s5 + $0x1a0] sm:$0xff]  ;;  %v694_v23 = vld [vmem:[%s1748_s5 + $0x1a8] sm:$0xff]  ;;  %v1115_v26 = vpack.c.bf16 %v644_v15, %v643_v14  ;;  %v1117_v29 = vpack.c.bf16 %v662_v21, %v661_v19  ;;  %v699_v63 = vld [vmem:[%s1748_s5 + $0x1d0] sm:$0xff] }
  0x22   : > { %v645_v28 = vld [vmem:[%s1748_s5 + $0x20] sm:$0xff]  ;;  %v646_v31 = vld [vmem:[%s1748_s5 + $0x28] sm:$0xff]  ;;  %v700_v3 = vld [vmem:[%s1748_s5 + $0x1d8] sm:$0xff] }
  0x23   : > { %1072 = vmatpush1.bf16.msra.mxu0 %v1071_v30  ;;  %v1149_v30 = vpack.c.bf16 %v694_v23, %v693_v22  ;;  %v678_v32 = vld [vmem:[%s1748_s5 + $0x128] sm:$0xff]  ;;  %v1119_v33 = vpack.c.bf16 %v646_v31, %v645_v28  ;;  %v665_v49 = vld [vmem:[%s1748_s5 + $0xc0] sm:$0xff]  ;;  %v651_v4 = vld [vmem:[%s1748_s5 + $0x50] sm:$0xff] }
  0x24   : > { %1104 = vmatpush1.bf16.msra.mxu1 %v1103_v34  ;;  %1074 = vmatprep.subr.bf16.mxu0 %v1073_v35  ;;  %v663_v35 = vld [vmem:[%s1748_s5 + $0xb0] sm:$0xff]  ;;  %v697_v51 = vld [vmem:[%s1748_s5 + $0x1c0] sm:$0xff]  ;;  %v684_v8 = vld [vmem:[%s1748_s5 + $0x158] sm:$0xff] }
  0x25   : > { %v683_v7 = vld [vmem:[%s1748_s5 + $0x150] sm:$0xff]  ;;  %v702_v14 = vld [vmem:[%s1748_s5 + $0x1e8] sm:$0xff]  ;;  %v653_v15 = vld [vmem:[%s1748_s5 + $0x60] sm:$0xff] }
  0x26   : > { %v686_v19 = vld [vmem:[%s1748_s5 + $0x168] sm:$0xff]  ;;  %v671_v21 = vld [vmem:[%s1748_s5 + $0xf0] sm:$0xff]  ;;  %v672_v22 = vld [vmem:[%s1748_s5 + $0xf8] sm:$0xff] }
  0x27   : > { %v703_v23 = vld [vmem:[%s1748_s5 + $0x1f0] sm:$0xff]  ;;  %v656_v28 = vld [vmem:[%s1748_s5 + $0x78] sm:$0xff] }
  0x28   : > { %v687_v31 = vld [vmem:[%s1748_s5 + $0x170] sm:$0xff] }
  0x9f   : > { %v323_v38 = vpop.xlane.xlu0 %322 }
  0xa0   : > { %v327_v39 = vmul.f32 0.0078125, %v323_v38  ;;  %v417_v38 = vld [vmem:[%s1746_s3 + $0x1c0] sm:$0xff] }
  0xa2   : > { %v1388_v40 = vsub.f32 %v1309_v0, %v327_v39  ;;  %v1105_v39 = vpack.c.bf16 %v424_v37, %v420_v36  ;;  %v664_v36 = vld [vmem:[%s1748_s5 + $0xb8] sm:$0xff]  ;;  %v695_v37 = vld [vmem:[%s1748_s5 + $0x1b0] sm:$0xff] }
  0xa3   : > { %v325_v41 = vpop.xlane.xlu0 %324 }
  0xa4   : > { %v328_v42 = vmul.f32 0.0078125, %v325_v41  ;;  %v331_v43 = vmul.f32 %v1388_v40, %v1388_v40  ;;  %v421_v41 = vld [vmem:[%s1746_s3 + $0x1e0] sm:$0xff]  ;;  %1106 = vmatprep.subr.bf16.mxu1 %v1105_v39  ;;  %v696_v39 = vld [vmem:[%s1748_s5 + $0x1b8] sm:$0xff] }
  0xa6   : > { %v1393_v44 = vsub.f32 %v1312_v1, %v328_v42  ;;  %333 = vadd.xlane.f32.xlu1 %v331_v43  ;;  %v419_v42 = vld [vmem:[%s1746_s3 + $0x1d0] sm:$0xff] }
  0xa7   : > { %v423_v43 = vld [vmem:[%s1746_s3 + $0x1f0] sm:$0xff] }
  0xa8   : > { %v332_v45 = vmul.f32 %v1393_v44, %v1393_v44  ;;  %v1107_v46 = vpack.c.bf16 %v423_v43, %v419_v42  ;;  %v648_v42 = vld [vmem:[%s1748_s5 + $0x38] sm:$0xff]  ;;  %v1153_v43 = vpack.c.bf16 %v696_v39, %v695_v37  ;;  %v425_v37 = vld [vmem:[%s1747_s4] sm:$0xf] }
  0xaa   : > { %335 = vadd.xlane.f32.xlu1 %v332_v45  ;;  %v1075_v45 = vpack.c.bf16 %v421_v41, %v417_v38  ;;  %1108 = vmatpush1.bf16.msra.mxu1 %v1107_v46  ;;  %v1121_v38 = vpack.c.bf16 %v664_v36, %v663_v35  ;;  %v647_v41 = vld [vmem:[%s1748_s5 + $0x30] sm:$0xff] }
  0xab   : > { %1142 = vmatprep.subr.bf16.mxu1 %v1141_v52  ;;  %v679_v46 = vld [vmem:[%s1748_s5 + $0x130] sm:$0xff] }
  0xac   : > { %1076 = vmatpush1.bf16.msra.mxu0 %v1075_v45  ;;  %v1123_v45 = vpack.c.bf16 %v648_v42, %v647_v41  ;;  %v1155_v48 = vpack.c.bf16 %v680_v47, %v679_v46 }
  0xad   : > { %1110 = vmatprep.subr.bf16.mxu0 %v1109_v50  ;;  %v666_v50 = vld [vmem:[%s1748_s5 + $0xc8] sm:$0xff] }
  0xae   : > { %v1125_v52 = vpack.c.bf16 %v666_v50, %v665_v49 }
 0x133   : > { %v334_v53 = vpop.xlane.xlu1 %333 }
 0x134   : > { %v337_v54 = vmul.f32 0.0078125, %v334_v53  ;;  %v698_v53 = vld [vmem:[%s1748_s5 + $0x1c8] sm:$0xff] }
 0x136   : > { %v339_v55 = vadd.f32 1e-05, %v337_v54  ;;  %v649_v54 = vld [vmem:[%s1748_s5 + $0x40] sm:$0xff] }
 0x137   : > { %v336_v56 = vpop.xlane.xlu1 %335 }
 0x138   : > { %1198 = vrsqrt.f32 %v339_v55  ;;  %v338_v57 = vmul.f32 0.0078125, %v336_v56  ;;  %v650_v55 = vld [vmem:[%s1748_s5 + $0x48] sm:$0xff]  ;;  %v1157_v56 = vpack.c.bf16 %v698_v53, %v697_v51 }
 0x13a   : > { %v340_v58 = vadd.f32 1e-05, %v338_v57  ;;  %v1127_v57 = vpack.c.bf16 %v650_v55, %v649_v54 }
 0x13c   : > { %1200 = vrsqrt.f32 %v340_v58  ;;  %v681_v58 = vld [vmem:[%s1748_s5 + $0x140] sm:$0xff] }
 0x142   : > { %v1199_v59 = vpop.eup %1198 }
 0x143   : > { %v343_v62 = vmul.f32 %v1199_v59, %v1388_v40  ;;  %v659_v40 = vld [vmem:[%s1748_s5 + $0x90] sm:$0xff]  ;;  %v682_v59 = vld [vmem:[%s1748_s5 + $0x148] sm:$0xff] }
 0x144   : > { %v1113_v16 = vpack.c.bf16 %v660_v6, %v659_v40  ;;  %v652_v40 = vld [vmem:[%s1748_s5 + $0x58] sm:$0xff] }
 0x145   : > { %v351_v5 = vmul.f32 %v962_v60, %v343_v62  ;;  %v668_v62 = vld [vmem:[%s1748_s5 + $0xd8] sm:$0xff]  ;;  %v1131_v6 = vpack.c.bf16 %v652_v40, %v651_v4 }
 0x146   : > { %v1201_v9 = vpop.eup %1200 }
 0x147   : > { %v359_v10 = vadd.f32 %v963_v61, %v351_v5  ;;  %v344_v11 = vmul.f32 %v1201_v9, %v1393_v44  ;;  %v676_v44 = vld [vmem:[%s1748_s5 + $0x118] sm:$0xff]  ;;  %v1161_v5 = vpack.c.bf16 %v700_v3, %v699_v63  ;;  %v1163_v9 = vpack.c.bf16 %v684_v8, %v683_v7 }
 0x148   : > { %v1147_v27 = vpack.c.bf16 %v676_v44, %v675_v18  ;;  %v685_v44 = vld [vmem:[%s1748_s5 + $0x160] sm:$0xff] }
 0x149   : > { %512 = vmatmul.mubr.f32.vlgmr.msra.gmra.mrb[0].mxu0 %v359_v10  ;;  %589 = vmatmul.mubr.f32.vlgmr.msra.gmra.mrb[0].mxu1 %v359_v10  ;;  %v352_v20 = vmul.f32 %v962_v60, %v344_v11  ;;  %v1159_v60 = vpack.c.bf16 %v682_v59, %v681_v58  ;;  %v669_v10 = vld [vmem:[%s1748_s5 + $0xe0] sm:$0xff]  ;;  %v670_v11 = vld [vmem:[%s1748_s5 + $0xe8] sm:$0xff] }
 0x14a   : > { %517 = vmatprep.mubr.f32.mxu0 %v1242_v24  ;;  %594 = vmatprep.mubr.f32.mxu1 %v1242_v24  ;;  %v677_v24 = vld [vmem:[%s1748_s5 + $0x120] sm:$0xff] }
 0x14b   : > { %v360_v25 = vadd.f32 %v963_v61, %v352_v20  ;;  %1112 = vmatpush3.bf16.msra.mxu0 %v1111_v12  ;;  %1144 = vmatpush3.bf16.msra.mxu1 %v1143_v13  ;;  %v1151_v34 = vpack.c.bf16 %v678_v32, %v677_v24  ;;  %v667_v61 = vld [vmem:[%s1748_s5 + $0xd0] sm:$0xff]  ;;  %v701_v12 = vld [vmem:[%s1748_s5 + $0x1e0] sm:$0xff]  ;;  %v1133_v13 = vpack.c.bf16 %v670_v11, %v669_v10  ;;  %v688_v24 = vld [vmem:[%s1748_s5 + $0x178] sm:$0xff] }
 0x14c   : > { %1114 = vmatprep.subr.bf16.mxu0 %v1113_v16  ;;  %1146 = vmatprep.subr.bf16.mxu1 %v1145_v17  ;;  %v1129_v2 = vpack.c.bf16 %v668_v62, %v667_v61  ;;  %v654_v16 = vld [vmem:[%s1748_s5 + $0x68] sm:$0xff]  ;;  %v1165_v17 = vpack.c.bf16 %v702_v14, %v701_v12  ;;  %v1167_v20 = vpack.c.bf16 %v686_v19, %v685_v44 }
 0x14d   : > { %518 = vmatmul.mubr.f32.gmra.mrb[2].mxu0 %v360_v25  ;;  %595 = vmatmul.mubr.f32.gmra.mrb[2].mxu1 %v360_v25  ;;  %v1135_v18 = vpack.c.bf16 %v654_v16, %v653_v15  ;;  %v1137_v25 = vpack.c.bf16 %v672_v22, %v671_v21  ;;  %v1171_v32 = vpack.c.bf16 %v688_v24, %v687_v31 }
 0x14f   : > { %1116 = vmatpush3.bf16.msra.mxu0 %v1115_v26  ;;  %1148 = vmatpush3.bf16.msra.mxu1 %v1147_v27  ;;  %v704_v26 = vld [vmem:[%s1748_s5 + $0x1f8] sm:$0xff]  ;;  %v655_v27 = vld [vmem:[%s1748_s5 + $0x70] sm:$0xff] }
 0x150   : > { %1118 = vmatprep.subr.bf16.mxu0 %v1117_v29  ;;  %1150 = vmatprep.subr.bf16.mxu1 %v1149_v30  ;;  %v1169_v29 = vpack.c.bf16 %v704_v26, %v703_v23  ;;  %v1139_v30 = vpack.c.bf16 %v656_v28, %v655_v27 }
 0x153   : > { %1120 = vmatpush3.bf16.msra.mxu0 %v1119_v33  ;;  %1152 = vmatpush3.bf16.msra.mxu1 %v1151_v34  ;;  %v427_v33 = vlaneseq }
 0x154   : > { %1122 = vmatprep.subr.bf16.mxu0 %v1121_v38  ;;  %1154 = vmatprep.subr.bf16.mxu1 %v1153_v43 }
 0x155   : > { %v428_v34 = vshrl.u32 %v427_v33, 7 }
 0x157   : > { %1124 = vmatpush3.bf16.msra.mxu0 %v1123_v45  ;;  %1156 = vmatpush3.bf16.msra.mxu1 %v1155_v48  ;;  %v429_v35 = vsub.s32 0, %v428_v34  ;;  %v437_v36 = vsub.s32 2, %v428_v34  ;;  %v433_v38 = vsub.s32 1, %v428_v34  ;;  %v441_v39 = vsub.s32 3, %v428_v34 }
 0x158   : > { %1126 = vmatprep.subr.bf16.mxu0 %v1125_v52  ;;  %1158 = vmatprep.subr.bf16.mxu1 %v1157_v56 }
 0x159   : > { %v430_v41 = vrot.slane %v425_v37, %v429_v35  ;;  %v438_v42 = vrot.slane %v425_v37, %v437_v36  ;;  %v434_v43 = vrot.slane %v425_v37, %v433_v38  ;;  %v442_v45 = vrot.slane %v425_v37, %v441_v39 }
 0x15b   : > { %1128 = vmatpush3.bf16.msra.mxu0 %v1127_v57  ;;  %1160 = vmatpush3.bf16.msra.mxu1 %v1159_v60 }
 0x15c   : > { %1130 = vmatprep.subr.bf16.mxu0 %v1129_v2  ;;  %1162 = vmatprep.subr.bf16.mxu1 %v1161_v5 }
 0x15f   : > { %1132 = vmatpush3.bf16.msra.mxu0 %v1131_v6  ;;  %1164 = vmatpush3.bf16.msra.mxu1 %v1163_v9 }
 0x160   : > { %1134 = vmatprep.subr.bf16.mxu0 %v1133_v13  ;;  %1166 = vmatprep.subr.bf16.mxu1 %v1165_v17 }
 0x163   : > { %1136 = vmatpush3.bf16.msra.mxu0 %v1135_v18  ;;  %1168 = vmatpush3.bf16.msra.mxu1 %v1167_v20 }
 0x164   : > { %1138 = vmatprep.subr.bf16.mxu0 %v1137_v25  ;;  %1170 = vmatprep.subr.bf16.mxu1 %v1169_v29 }
 0x167   : > { %1140 = vmatpush3.bf16.msra.mxu0 %v1139_v30  ;;  %1172 = vmatpush3.bf16.msra.mxu1 %v1171_v32 }
 0x21c   : > { %v513_v46 = vpop.f32.mrb[0].mxu0  ;;  %v590_v47 = vpop.f32.mrb[0].mxu1 }
 0x21d   : > { %v514_v48 = vadd.f32 %v513_v46, %v430_v41  ;;  %v591_v49 = vadd.f32 %v590_v47, %v438_v42  ;;  %v515_v50 = vpop.f32.mrb[1].mxu0  ;;  %v592_v51 = vpop.f32.mrb[1].mxu1 }
 0x21e   : > { %v516_v52 = vadd.f32 %v515_v50, %v434_v43  ;;  %v593_v53 = vadd.f32 %v592_v51, %v442_v45 }
 0x21f   : > { %v609_v54 = vmul.f32 0.70710677, %v514_v48  ;;  %v611_v55 = vmul.f32 0.70710677, %v591_v49  ;;  %v601_v15 = vmul.f32 0.5, %v514_v48  ;;  %v603_v44 = vmul.f32 0.5, %v591_v49 }
 0x220   : > { %v610_v56 = vmul.f32 0.70710677, %v516_v52  ;;  %v612_v57 = vmul.f32 0.70710677, %v593_v53  ;;  %v519_v58 = vpop.f32.mrb[2].mxu0  ;;  %v596_v59 = vpop.f32.mrb[2].mxu1 }
 0x221   : > { %1202 = verf.f32 %v609_v54  ;;  %v520_v60 = vadd.f32 %v519_v58, %v430_v41  ;;  %v597_v61 = vadd.f32 %v596_v59, %v438_v42  ;;  %v521_v62 = vpop.f32.mrb[3].mxu0  ;;  %v598_v63 = vpop.f32.mrb[3].mxu1  ;;  %v602_v13 = vmul.f32 0.5, %v516_v52  ;;  %v964_v41 = vld [vmem:[%s1749_s6] ss:$0 sm:$0xff] }
 0x222   : > { %1204 = verf.f32 %v611_v55  ;;  %v522_v2 = vadd.f32 %v521_v62, %v434_v43  ;;  %v599_v3 = vadd.f32 %v598_v63, %v442_v45  ;;  %v604_v16 = vmul.f32 0.5, %v593_v53 }
 0x223   : > { %1206 = verf.f32 %v610_v56  ;;  %v613_v4 = vmul.f32 0.70710677, %v520_v60  ;;  %v615_v40 = vmul.f32 0.70710677, %v597_v61  ;;  %v605_v31 = vmul.f32 0.5, %v520_v60 }
 0x224   : > { %1208 = verf.f32 %v612_v57  ;;  %v614_v5 = vmul.f32 0.70710677, %v522_v2  ;;  %v616_v6 = vmul.f32 0.70710677, %v599_v3  ;;  %v606_v29 = vmul.f32 0.5, %v522_v2 }
 0x225   : > { %1210 = verf.f32 %v613_v4  ;;  %v608_v24 = vmul.f32 0.5, %v599_v3  ;;  %v607_v33 = vmul.f32 0.5, %v597_v61 }
 0x226   : > { %1212 = verf.f32 %v615_v40 }
 0x227   : > { %1214 = verf.f32 %v614_v5 }
 0x228   : > { %1216 = verf.f32 %v616_v6 }
 0x22b   : > { %v1203_v7 = vpop.eup %1202 }
 0x22c   : > { %v1205_v8 = vpop.eup %1204  ;;  %v625_v10 = vadd.f32 1.0, %v1203_v7 }
 0x22d   : > { %v1207_v9 = vpop.eup %1206  ;;  %v627_v12 = vadd.f32 1.0, %v1205_v8 }
 0x22e   : > { %v1209_v11 = vpop.eup %1208  ;;  %v626_v14 = vadd.f32 1.0, %v1207_v9  ;;  %v633_v21 = vmul.f32 %v625_v10, %v601_v15 }
 0x22f   : > { %v628_v17 = vadd.f32 1.0, %v1209_v11  ;;  %v1211_v18 = vpop.eup %1210  ;;  %v635_v25 = vmul.f32 %v627_v12, %v603_v44 }
 0x230   : > { %v634_v19 = vmul.f32 %v626_v14, %v602_v13  ;;  %v1213_v20 = vpop.eup %1212  ;;  %v629_v26 = vadd.f32 1.0, %v1211_v18 }
 0x231   : > { %v636_v22 = vmul.f32 %v628_v17, %v604_v16  ;;  %v1215_v23 = vpop.eup %1214  ;;  %v631_v28 = vadd.f32 1.0, %v1213_v20 }
 0x232   : > { %776 = vmatprep.mubr.f32.mxu0 %v634_v19  ;;  %v1217_v27 = vpop.eup %1216  ;;  %v630_v30 = vadd.f32 1.0, %v1215_v23  ;;  %v637_v36 = vmul.f32 %v629_v26, %v605_v31 }
 0x233   : > { %851 = vmatprep.mubr.f32.mxu1 %v636_v22  ;;  %777 = vmatmul.mubr.f32.vlgmr.msra.gmra.mrb[4].mxu0 %v633_v21  ;;  %v632_v32 = vadd.f32 1.0, %v1217_v27  ;;  %v639_v37 = vmul.f32 %v631_v28, %v607_v33 }
 0x234   : > { %852 = vmatmul.mubr.f32.vlgmr.msra.gmra.mrb[4].mxu1 %v635_v25  ;;  %v638_v34 = vmul.f32 %v630_v30, %v606_v29 }
 0x235   : > { %v640_v35 = vmul.f32 %v632_v32, %v608_v24 }
 0x236   : > { %781 = vmatprep.mubr.f32.mxu0 %v638_v34 }
 0x237   : > { %856 = vmatprep.mubr.f32.mxu1 %v640_v35  ;;  %782 = vmatmul.mubr.f32.gmra.mrb[6].mxu0 %v637_v36 }
 0x238   : > { %857 = vmatmul.mubr.f32.gmra.mrb[6].mxu1 %v639_v37 }
 0x306   : > { %v1001_v38 = vpop.f32.mrb[4].mxu0 }
 0x307   : > { %v1039_v39 = vpop.f32.mrb[4].mxu1  ;;  %v1002_v42 = vpop.f32.mrb[5].mxu0 }
 0x308   : > { %v1003_v43 = vadd.f32 %v1002_v42, %v1001_v38  ;;  %v1040_v45 = vpop.f32.mrb[5].mxu1 }
 0x309   : > { %v1041_v46 = vadd.f32 %v1040_v45, %v1039_v39 }
 0x30a   : > { %v779_v47 = vadd.f32 %v1003_v43, %v964_v41  ;;  %v1004_v48 = vpop.f32.mrb[6].mxu0 }
 0x30b   : > { %v1042_v50 = vpop.f32.mrb[6].mxu1  ;;  %v1005_v51 = vpop.f32.mrb[7].mxu0 }
 0x30c   : > { %v854_v49 = vadd.f32 %v1041_v46, %v779_v47  ;;  %v1006_v52 = vadd.f32 %v1005_v51, %v1004_v48  ;;  %v1043_v53 = vpop.f32.mrb[7].mxu1 }
 0x30d   : > { %v1044_v55 = vadd.f32 %v1043_v53, %v1042_v50 }
 0x30e   : > { %v862_v54 = vadd.f32 %v854_v49, %v1309_v0  ;;  %v784_v56 = vadd.f32 %v1006_v52, %v964_v41 }
 0x310   : > { %864 = vst [vmem:[%s316_s23] sm:$0xff] %v862_v54  ;;  %v859_v57 = vadd.f32 %v1044_v55, %v784_v56 }
 0x312   : > { %v863_v58 = vadd.f32 %v859_v57, %v1312_v1 }
 0x314   : > { %865 = vst [vmem:[%s316_s23 + $0x8] sm:$0xff] %v863_v58 }
 0x315 PF: > { %s17_s26 = sadd.s32 1, %s1240_s26   ;;  %s1751_s24 = smov %s1236_s25 }
 0x316   : > { %p14_p5 = scmp.ge.s32.totalorder %s17_s26, 4   ;;  %s1752_s25 = smov %s1754_s27 }
 0x318   :  { %16 = sbr.rel (!%p14_p5) target bundleno = 2 (0x2), region = 78 }

// kernel: music_encoder.8
= control target key start
LH: loop header
LB: loop body
LE: loop exit
PB: predicated region body
PF: predicated region fallthrough
CT: control target
= control target key end

     0   :  { %9 = vsyncpa [#allocation3], 0  ;;  %s1929_s0 = inlined_call_operand.hbm [shape: f32[2,16,1536], index: 0, kind: input, shape index: {}]   ;;  %s1930_s1 = inlined_call_operand.vmem [shape: f32[1,16,128], index: 1, kind: input, shape index: {}]   ;;  %s1931_s2 = inlined_call_operand.hbm [shape: f32[1536,128], index: 2, kind: input, shape index: {}]   ;;  %s1932_s3 = inlined_call_operand.vmem [shape: f32[1,128], index: 3, kind: input, shape index: {}]   ;;  %s1933_s4 = inlined_call_operand.vmem [shape: f32[2,16,128], index: 4, kind: output, shape index: {}]  }
   0x1   :  { %11 = vsyncpa [#allocation3 + $0x1], 0 }
   0x2   :  { %12 = vsyncpa [#allocation5], 0  ;;  %s1736_s15 = smov 0   ;;  %s1738_s16 = smov 0  }
   0x3   :  { %s1740_s17 = smov 0   ;;  %s1742_s18 = smov 0  }
   0x4   :  { %s1744_s19 = smov 0   ;;  %s1746_s20 = smov 0  }
   0x5 LB: > { %s1083_s21 = sadd.s32 4294967295, %s1703_s20   ;;  %p52_p0 = scmp.ne.s32.totalorder %s1687_s16, %s1683_s15  ;;  %s1703_s20 = sphi %s1746_s20, %s18_s20   ;;  %s1699_s19 = sphi %s1744_s19, %s1950_s19   ;;  %s1695_s18 = sphi %s1742_s18, %s1949_s18   ;;  %s1691_s17 = sphi %s1740_s17, %s1948_s17   ;;  %s1687_s16 = sphi %s1738_s16, %s1947_s16   ;;  %s1683_s15 = sphi %s1736_s15, %s1946_s15  }
   0x6   : > { %p1766_p1 = scmp.eq.s32.totalorder %s1083_s21, 0  ;;  %p1085_p2 = scmp.ge.s32.totalorder %s1703_s20, 1 }
   0x7   : > { %p159_p3 = scmp.lt.s32.totalorder %s1703_s20, 3  ;;  %s1705_s25 = smov [#allocation4]  }
   0x8   : > { %s1938_s22 = scalar_select %p1766_p1, 1, 0 }
   0x9   : > { %p1774_p4 = por %p1766_p1, %p52_p0  ;;  %p1778_p5 = pnand %p1085_p2, %p159_p3 }
   0xa   : > { %s180_s26 = sshll.u32 %s1705_s25, 4  ;;  %s30_s28 = sadd.s32 1, %s1699_s19  ;;  %s181_s26 = int_to_ptr.vmem [resolvable:$true] %s180_s26 }
   0xb   : > { %s1939_s23 = scalar_select %p1774_p4, 1, 0 }
   0xc   : > { %s1940_s24 = scalar_select %p1778_p5, 1, 0 }
   0xd   : > { %p1527_p6 = pneg %p1778_p5  ;;  %s1591_s5 = scalar_lea.hbm %s1931_s2, 24576 }
   0xe   : > { %p1592_p8 = scmp.ne.s32.totalorder %s1931_s2, %s1591_s5  ;;  %p1598_p12 = scmp.lt.u32.totalorder %s1591_s5, %s1931_s2 }
   0xf   : > { %p1786_p7 = pnand %p1527_p6, %p1766_p1 }
  0x11   : > { %p1593_p9 = pneg %p1786_p7 }
  0x13   : > { %p1594_p10 = pnand %p1593_p9, %p1592_p8 }
  0x15   : > { %p1595_p11 = pneg %p1594_p10 }
  0x17   : > { %p1600_p13 = pnand %p1598_p12, %p1595_p11 }
  0x19   : > { %1603 = shalt.err (!%p1600_p13)
}
  0x1a   : > { %s1604_s10 = scalar_lea.vmem %s181_s26, 24576  ;;  %p1612_p6 = scmp.lt.s32.totalorder %s181_s26, %s181_s26 }
  0x1b   : > { %p1605_p0 = scmp.ne.s32.totalorder %s181_s26, %s1604_s10  ;;  %p1613_p1 = scmp.lt.s32.totalorder %s1604_s10, %s1604_s10 }
  0x1d   : > { %p1607_p2 = pnand %p1605_p0, %p1593_p9  ;;  %p1614_p4 = por %p1613_p1, %p1612_p6 }
  0x1f   : > { %p1608_p3 = pneg %p1607_p2 }
  0x21   : > { %p1615_p5 = pnand %p1614_p4, %p1608_p3 }
  0x23   : > { %1618 = shalt.err (!%p1615_p5)
}
  0x24   : > { %s1706_s11 = smov 128   ;;  %s1707_s12 = smov 8  }
  0x25   : > { %1530 = dma.hbm_to_vmem [thread:$0]  (!%p1786_p7), %s1931_s2, 24576, %s181_s26, [#allocation5], %s1706_s11, %s1706_s11, %s1707_s12  }
  0x26   : > { %p32_p1 = scmp.ge.s32.totalorder %s30_s28, 2  ;;  %s39_s15 = sadd.s32 1, %s1691_s17 }
  0x27   : > { %p46_p4 = scmp.ne.s32.totalorder %s1691_s17, %s1687_s16  ;;  %p47_p5 = scmp.eq.s32.totalorder %s1703_s20, 0 }
  0x28   : > { %s1952_s28 = smov (%p32_p1, %s30_s28), 0  ;;  %p1536_p9 = scmp.lt.s32.totalorder %s1703_s20, 2 }
  0x29   : > { %p48_p8 = por %p47_p5, %p46_p4  ;;  %s34_s21 = ssub.s32 %s1699_s19, %s1952_s28 }
  0x2a   : > { %s197_s25 = sand.u32 1, %s1691_s17   ;;  %p37_p10 = scmp.eq.s32.totalorder %s34_s21, 0 }
  0x2b   : > { %s1518_s29 = smul.u32 192, %s197_s25  ;;  %p1817_p11 = pnand %p1536_p9, %p48_p8 }
  0x2c   : > { %s1822_s26 = scalar_select %p37_p10, %s1691_s17, %s39_s15  }
  0x2d   : > { %s1519_s27 = smul.u32 3072, %s1699_s19  ;;  %s201_s5 = scalar_lea.vmem [#allocation2], %s1518_s29 }
  0x2e   : > { %s211_s6 = sshll.u32 %s201_s5, 4  ;;  %s1832_s10 = scalar_lea.sflag [#allocation3], %s197_s25  ;;  %s1830_s6 = int_to_ptr.vmem [resolvable:$true] %s211_s6 }
  0x2f   : > { %s1828_s9 = scalar_lea.hbm %s1929_s0, %s1519_s27  ;;  %p1621_p12 = pneg %p1817_p11 }
  0x30   : > { %s1619_s11 = scalar_lea.hbm %s1828_s9, 3072  ;;  %s1624_s14 = scalar_lea.hbm %s1929_s0, 6144 }
  0x31   : > { %p1620_p7 = scmp.ne.s32.totalorder %s1828_s9, %s1619_s11  ;;  %p1625_p2 = scmp.lt.u32.totalorder %s1828_s9, %s1929_s0 }
  0x32   : > { %p1626_p3 = scmp.lt.u32.totalorder %s1624_s14, %s1619_s11  ;;  %p1628_p1 = scmp.lt.u32.totalorder %s1619_s11, %s1828_s9 }
  0x33   : > { %p1622_p13 = pnand %p1621_p12, %p1620_p7 }
  0x34   : > { %p1627_p6 = por %p1626_p3, %p1625_p2 }
  0x35   : > { %p1623_p0 = pneg %p1622_p13 }
  0x36   : > { %p1629_p4 = por %p1628_p1, %p1627_p6 }
  0x38   : > { %p1630_p5 = pnand %p1629_p4, %p1623_p0 }
  0x3a   : > { %1633 = shalt.err (!%p1630_p5)
}
  0x3b   : > { %s1634_s25 = scalar_lea.vmem %s1830_s6, 3072  ;;  %s1708_s29 = smov [#allocation2]  }
  0x3c   : > { %p1635_p8 = scmp.ne.s32.totalorder %s1830_s6, %s1634_s25  ;;  %s1639_s27 = sshll.u32 %s1708_s29, 4  ;;  %s1640_s27 = int_to_ptr.vmem [resolvable:$false] %s1639_s27 }
  0x3d   : > { %s1641_s5 = scalar_lea.vmem %s1640_s27, 6144  ;;  %p1642_p7 = scmp.lt.s32.totalorder %s1830_s6, %s1640_s27 }
  0x3e   : > { %p1637_p9 = pnand %p1635_p8, %p1621_p12  ;;  %p1643_p13 = scmp.lt.s32.totalorder %s1641_s5, %s1634_s25 }
  0x40   : > { %p1638_p10 = pneg %p1637_p9  ;;  %p1644_p2 = por %p1643_p13, %p1642_p7 }
  0x42   : > { %p1645_p3 = pnand %p1644_p2, %p1638_p10 }
  0x44   : > { %1648 = shalt.err (!%p1645_p3)
}
  0x45   : > { %s1709_s7 = smov 1536   ;;  %s1710_s8 = smov 96  }
  0x46   : > { %1534 = dma.hbm_to_vmem [thread:$0]  (!%p1817_p11), %s1828_s9, 3072, %s1830_s6, %s1832_s10, %s1709_s7, %s1709_s7, %s1710_s8  }
  0x47   : > { %p1943_p12 = scmp.ne.s32.totalorder %s1940_s24, 0 }
  0x48   : > { %s225_s11 = sand.u32 (!%p1943_p12), 1, %s1687_s16   ;;  %p1944_p0 = scmp.ne.s32.totalorder (!%p1943_p12), %s1939_s23, 0 }
  0x49   : > { %223 = sbr.rel (%p1943_p12) target bundleno = 409 (0x199), region = 36  ;;  %s226_s13 = scalar_lea.sflag (!%p1943_p12), [#allocation3], %s225_s11 }
  0x4a   : > { %s1520_s12 = smul.u32 (!%p1943_p12), 192, %s225_s11 }
  0x4c   : > { %s1863_s14 = scalar_lea.vmem (!%p1943_p12), [#allocation2], %s1520_s12 }
  0x50   : > { %1674 = dma.done.wait (%p1944_p0), %s226_s13, 3072  }
  0x51   : > { %1676 = vsyncadd (%p1944_p0), %s226_s13, 4294964224  ;;  %p1945_p6 = scmp.ne.s32.totalorder %s1938_s22, 0 }
  0x53   : > { %1678 = dma.done.wait (%p1945_p6), [#allocation5], 24576  }
  0x54   : > { %1680 = vsyncadd (%p1945_p6), [#allocation5], 4294942720  ;;  %v324_v0 = vld [vmem:[#allocation4 + $0x80] sm:$0xff]  ;;  %v325_v1 = vld [vmem:[#allocation4 + $0x88] sm:$0xff]  ;;  %p275_p11 = scmp.lt.s32.totalorder %s1695_s18, 1 }
  0x55   : > { %v308_v2 = vld [vmem:[#allocation4] sm:$0xff]  ;;  %v1326_v3 = vpack.c.bf16 %v325_v1, %v324_v0  ;;  %v309_v4 = vld [vmem:[#allocation4 + $0x8] sm:$0xff]  ;;  %v326_v11 = vld [vmem:[#allocation4 + $0x90] sm:$0xff] }
  0x56   : > { %v356_v5 = vld [vmem:[#allocation4 + $0x180] sm:$0xff]  ;;  %v357_v6 = vld [vmem:[#allocation4 + $0x188] sm:$0xff]  ;;  %v1328_v7 = vpack.c.bf16 %v309_v4, %v308_v2  ;;  %v327_v13 = vld [vmem:[#allocation4 + $0x98] sm:$0xff]  ;;  %s1954_s18 = smov (!%p275_p11, %s1695_s18), 1 }
  0x57   : > { %v1358_v8 = vpack.c.bf16 %v357_v6, %v356_v5  ;;  %v340_v9 = vld [vmem:[#allocation4 + $0x100] sm:$0xff]  ;;  %v341_v10 = vld [vmem:[#allocation4 + $0x108] sm:$0xff]  ;;  %1327 = vmatprep.subr.bf16.mxu0 %v1326_v3  ;;  %v310_v14 = vld [vmem:[#allocation4 + $0x10] sm:$0xff]  ;;  %v1330_v16 = vpack.c.bf16 %v327_v13, %v326_v11  ;;  %s1097_s24 = sshll.u32 %s1954_s18, 4 }
  0x58   : > { %v1360_v12 = vpack.c.bf16 %v341_v10, %v340_v9  ;;  %v311_v15 = vld [vmem:[#allocation4 + $0x18] sm:$0xff]  ;;  %1329 = vmatpush3.bf16.msra.mxu0 %v1328_v7  ;;  %v358_v18 = vld [vmem:[#allocation4 + $0x190] sm:$0xff]  ;;  %v328_v23 = vld [vmem:[#allocation4 + $0xa0] sm:$0xff]  ;;  %s282_s15 = scalar_lea.vmem %s1933_s4, %s1097_s24 }
  0x59   : > { %1359 = vmatprep.subr.bf16.mxu1 %v1358_v8  ;;  %v1332_v17 = vpack.c.bf16 %v311_v15, %v310_v14  ;;  %v359_v19 = vld [vmem:[#allocation4 + $0x198] sm:$0xff]  ;;  %v342_v20 = vld [vmem:[#allocation4 + $0x110] sm:$0xff]  ;;  %v329_v24 = vld [vmem:[#allocation4 + $0xa8] sm:$0xff]  ;;  %1331 = vmatprep.subr.bf16.mxu0 %v1330_v16 }
  0x5a   : > { %1361 = vmatpush3.bf16.msra.mxu1 %v1360_v12  ;;  %v1362_v21 = vpack.c.bf16 %v359_v19, %v358_v18  ;;  %v343_v22 = vld [vmem:[#allocation4 + $0x118] sm:$0xff]  ;;  %v1334_v26 = vpack.c.bf16 %v329_v24, %v328_v23  ;;  %v312_v27 = vld [vmem:[#allocation4 + $0x20] sm:$0xff]  ;;  %v313_v28 = vld [vmem:[#allocation4 + $0x28] sm:$0xff] }
  0x5b   : > { %v1364_v25 = vpack.c.bf16 %v343_v22, %v342_v20  ;;  %v360_v29 = vld [vmem:[#allocation4 + $0x1a0] sm:$0xff]  ;;  %v361_v30 = vld [vmem:[#allocation4 + $0x1a8] sm:$0xff]  ;;  %v1336_v33 = vpack.c.bf16 %v313_v28, %v312_v27  ;;  %v330_v35 = vld [vmem:[#allocation4 + $0xb0] sm:$0xff] }
  0x5c   : > { %1363 = vmatprep.subr.bf16.mxu1 %v1362_v21  ;;  %v344_v31 = vld [vmem:[#allocation4 + $0x120] sm:$0xff]  ;;  %v345_v32 = vld [vmem:[#allocation4 + $0x128] sm:$0xff]  ;;  %1333 = vmatpush3.bf16.msra.mxu0 %v1332_v17  ;;  %v1366_v34 = vpack.c.bf16 %v361_v30, %v360_v29  ;;  %v331_v36 = vld [vmem:[#allocation4 + $0xb8] sm:$0xff] }
  0x5d   : > { %v314_v37 = vld [vmem:[#allocation4 + $0x30] sm:$0xff]  ;;  %1335 = vmatprep.subr.bf16.mxu0 %v1334_v26  ;;  %v1368_v38 = vpack.c.bf16 %v345_v32, %v344_v31  ;;  %v1338_v39 = vpack.c.bf16 %v331_v36, %v330_v35  ;;  %v315_v40 = vld [vmem:[#allocation4 + $0x38] sm:$0xff]  ;;  %v332_v46 = vld [vmem:[#allocation4 + $0xc0] sm:$0xff] }
  0x5e   : > { %1365 = vmatpush3.bf16.msra.mxu1 %v1364_v25  ;;  %v362_v41 = vld [vmem:[#allocation4 + $0x1b0] sm:$0xff]  ;;  %v363_v42 = vld [vmem:[#allocation4 + $0x1b8] sm:$0xff]  ;;  %v333_v47 = vld [vmem:[#allocation4 + $0xc8] sm:$0xff]  ;;  %v1340_v48 = vpack.c.bf16 %v315_v40, %v314_v37 }
  0x5f   : > { %1367 = vmatprep.subr.bf16.mxu1 %v1366_v34  ;;  %v1370_v43 = vpack.c.bf16 %v363_v42, %v362_v41  ;;  %v346_v44 = vld [vmem:[#allocation4 + $0x130] sm:$0xff]  ;;  %v347_v45 = vld [vmem:[#allocation4 + $0x138] sm:$0xff]  ;;  %v364_v49 = vld [vmem:[#allocation4 + $0x1c0] sm:$0xff]  ;;  %v1342_v52 = vpack.c.bf16 %v333_v47, %v332_v46 }
  0x60   : > { %1337 = vmatpush3.bf16.msra.mxu0 %v1336_v33  ;;  %v365_v50 = vld [vmem:[#allocation4 + $0x1c8] sm:$0xff]  ;;  %v1372_v51 = vpack.c.bf16 %v347_v45, %v346_v44  ;;  %v316_v53 = vld [vmem:[#allocation4 + $0x40] sm:$0xff]  ;;  %v334_v58 = vld [vmem:[#allocation4 + $0xd0] sm:$0xff] }
  0x61   : > { %1339 = vmatprep.subr.bf16.mxu0 %v1338_v39  ;;  %v317_v54 = vld [vmem:[#allocation4 + $0x48] sm:$0xff]  ;;  %v348_v55 = vld [vmem:[#allocation4 + $0x140] sm:$0xff]  ;;  %v1374_v56 = vpack.c.bf16 %v365_v50, %v364_v49  ;;  %v335_v59 = vld [vmem:[#allocation4 + $0xd8] sm:$0xff] }
  0x62   : > { %1369 = vmatpush3.bf16.msra.mxu1 %v1368_v38  ;;  %v349_v57 = vld [vmem:[#allocation4 + $0x148] sm:$0xff]  ;;  %v366_v60 = vld [vmem:[#allocation4 + $0x1d0] sm:$0xff]  ;;  %v367_v61 = vld [vmem:[#allocation4 + $0x1d8] sm:$0xff]  ;;  %v1344_v62 = vpack.c.bf16 %v317_v54, %v316_v53  ;;  %v1346_v0 = vpack.c.bf16 %v335_v59, %v334_v58 }
  0x63   : > { %1371 = vmatprep.subr.bf16.mxu1 %v1370_v43  ;;  %v1376_v63 = vpack.c.bf16 %v349_v57, %v348_v55  ;;  %v318_v1 = vld [vmem:[#allocation4 + $0x50] sm:$0xff]  ;;  %v319_v2 = vld [vmem:[#allocation4 + $0x58] sm:$0xff]  ;;  %v1378_v4 = vpack.c.bf16 %v367_v61, %v366_v60  ;;  %v336_v6 = vld [vmem:[#allocation4 + $0xe0] sm:$0xff] }
  0x64   : > { %1341 = vmatpush3.bf16.msra.mxu0 %v1340_v48  ;;  %v350_v3 = vld [vmem:[#allocation4 + $0x150] sm:$0xff]  ;;  %v351_v5 = vld [vmem:[#allocation4 + $0x158] sm:$0xff]  ;;  %v337_v7 = vld [vmem:[#allocation4 + $0xe8] sm:$0xff]  ;;  %v1348_v10 = vpack.c.bf16 %v319_v2, %v318_v1 }
  0x65   : > { %1343 = vmatprep.subr.bf16.mxu0 %v1342_v52  ;;  %v368_v8 = vld [vmem:[#allocation4 + $0x1e0] sm:$0xff]  ;;  %v369_v9 = vld [vmem:[#allocation4 + $0x1e8] sm:$0xff]  ;;  %v1380_v13 = vpack.c.bf16 %v351_v5, %v350_v3  ;;  %v1350_v14 = vpack.c.bf16 %v337_v7, %v336_v6  ;;  %v338_v19 = vld [vmem:[#allocation4 + $0xf0] sm:$0xff] }
  0x66   : > { %1373 = vmatpush3.bf16.msra.mxu1 %v1372_v51  ;;  %v320_v11 = vld [vmem:[#allocation4 + $0x60] sm:$0xff]  ;;  %v321_v12 = vld [vmem:[#allocation4 + $0x68] sm:$0xff]  ;;  %v1382_v18 = vpack.c.bf16 %v369_v9, %v368_v8  ;;  %v339_v20 = vld [vmem:[#allocation4 + $0xf8] sm:$0xff] }
  0x67   : > { %1375 = vmatprep.subr.bf16.mxu1 %v1374_v56  ;;  %v352_v15 = vld [vmem:[#allocation4 + $0x160] sm:$0xff]  ;;  %v353_v16 = vld [vmem:[#allocation4 + $0x168] sm:$0xff]  ;;  %v287_v21 = vld [vmem:[%s1863_s14 + $0x18] sm:$0xff]  ;;  %v1352_v24 = vpack.c.bf16 %v321_v12, %v320_v11  ;;  %v1354_v26 = vpack.c.bf16 %v339_v20, %v338_v19 }
  0x68   : > { %1345 = vmatpush3.bf16.msra.mxu0 %v1344_v62  ;;  %v285_v17 = vld [vmem:[%s1863_s14 + $0x8] sm:$0xff]  ;;  %v370_v22 = vld [vmem:[#allocation4 + $0x1f0] sm:$0xff]  ;;  %v371_v23 = vld [vmem:[#allocation4 + $0x1f8] sm:$0xff]  ;;  %646 = vmatprep.mubr.f32.mxu1 %v287_v21  ;;  %v1384_v25 = vpack.c.bf16 %v353_v16, %v352_v15 }
  0x69   : > { %1347 = vmatprep.subr.bf16.mxu0 %v1346_v0  ;;  %571 = vmatprep.mubr.f32.mxu0 %v285_v17  ;;  %v322_v27 = vld [vmem:[#allocation4 + $0x70] sm:$0xff]  ;;  %v323_v28 = vld [vmem:[#allocation4 + $0x78] sm:$0xff]  ;;  %v1386_v30 = vpack.c.bf16 %v371_v23, %v370_v22  ;;  %v388_v32 = vld [vmem:[#allocation4 + $0x280] sm:$0xff] }
  0x6a   : > { %1377 = vmatpush3.bf16.msra.mxu1 %v1376_v63  ;;  %v354_v29 = vld [vmem:[#allocation4 + $0x170] sm:$0xff]  ;;  %v355_v31 = vld [vmem:[#allocation4 + $0x178] sm:$0xff]  ;;  %v389_v33 = vld [vmem:[#allocation4 + $0x288] sm:$0xff]  ;;  %v1356_v36 = vpack.c.bf16 %v323_v28, %v322_v27 }
  0x6b   : > { %1379 = vmatprep.subr.bf16.mxu1 %v1378_v4  ;;  %v420_v34 = vld [vmem:[#allocation4 + $0x380] sm:$0xff]  ;;  %v421_v35 = vld [vmem:[#allocation4 + $0x388] sm:$0xff]  ;;  %v1388_v37 = vpack.c.bf16 %v355_v31, %v354_v29  ;;  %v1390_v38 = vpack.c.bf16 %v389_v33, %v388_v32  ;;  %v390_v44 = vld [vmem:[#allocation4 + $0x290] sm:$0xff] }
  0x6c   : > { %1349 = vmatpush3.bf16.msra.mxu0 %v1348_v10  ;;  %v372_v39 = vld [vmem:[#allocation4 + $0x200] sm:$0xff]  ;;  %v373_v40 = vld [vmem:[#allocation4 + $0x208] sm:$0xff]  ;;  %v1422_v42 = vpack.c.bf16 %v421_v35, %v420_v34  ;;  %v391_v45 = vld [vmem:[#allocation4 + $0x298] sm:$0xff] }
  0x6d   : > { %1351 = vmatprep.subr.bf16.mxu0 %v1350_v14  ;;  %v404_v41 = vld [vmem:[#allocation4 + $0x300] sm:$0xff]  ;;  %v405_v43 = vld [vmem:[#allocation4 + $0x308] sm:$0xff]  ;;  %v422_v46 = vld [vmem:[#allocation4 + $0x390] sm:$0xff]  ;;  %v1392_v49 = vpack.c.bf16 %v373_v40, %v372_v39  ;;  %v1394_v52 = vpack.c.bf16 %v391_v45, %v390_v44 }
  0x6e   : > { %1381 = vmatpush3.bf16.msra.mxu1 %v1380_v13  ;;  %v423_v47 = vld [vmem:[#allocation4 + $0x398] sm:$0xff]  ;;  %v284_v48 = vld [vmem:[%s1863_s14] sm:$0xff]  ;;  %v286_v50 = vld [vmem:[%s1863_s14 + $0x10] sm:$0xff]  ;;  %v1424_v51 = vpack.c.bf16 %v405_v43, %v404_v41 }
  0x6f   : > { %1383 = vmatprep.subr.bf16.mxu1 %v1382_v18  ;;  %v374_v53 = vld [vmem:[#allocation4 + $0x210] sm:$0xff]  ;;  %v375_v54 = vld [vmem:[#allocation4 + $0x218] sm:$0xff]  ;;  %v1426_v56 = vpack.c.bf16 %v423_v47, %v422_v46  ;;  %v392_v58 = vld [vmem:[#allocation4 + $0x2a0] sm:$0xff] }
  0x70   : > { %1353 = vmatpush3.bf16.msra.mxu0 %v1352_v24  ;;  %v406_v55 = vld [vmem:[#allocation4 + $0x310] sm:$0xff]  ;;  %v407_v57 = vld [vmem:[#allocation4 + $0x318] sm:$0xff]  ;;  %v393_v59 = vld [vmem:[#allocation4 + $0x2a8] sm:$0xff]  ;;  %v1396_v62 = vpack.c.bf16 %v375_v54, %v374_v53 }
  0x71   : > { %1355 = vmatprep.subr.bf16.mxu0 %v1354_v26  ;;  %v424_v60 = vld [vmem:[#allocation4 + $0x3a0] sm:$0xff]  ;;  %v425_v61 = vld [vmem:[#allocation4 + $0x3a8] sm:$0xff]  ;;  %v1428_v63 = vpack.c.bf16 %v407_v57, %v406_v55  ;;  %v1398_v0 = vpack.c.bf16 %v393_v59, %v392_v58  ;;  %v394_v6 = vld [vmem:[#allocation4 + $0x2b0] sm:$0xff] }
  0x72   : > { %1385 = vmatpush3.bf16.msra.mxu1 %v1384_v25  ;;  %v376_v1 = vld [vmem:[#allocation4 + $0x220] sm:$0xff]  ;;  %v377_v2 = vld [vmem:[#allocation4 + $0x228] sm:$0xff]  ;;  %v1430_v4 = vpack.c.bf16 %v425_v61, %v424_v60  ;;  %v395_v7 = vld [vmem:[#allocation4 + $0x2b8] sm:$0xff] }
  0x73   : > { %1387 = vmatprep.subr.bf16.mxu1 %v1386_v30  ;;  %v408_v3 = vld [vmem:[#allocation4 + $0x320] sm:$0xff]  ;;  %v409_v5 = vld [vmem:[#allocation4 + $0x328] sm:$0xff]  ;;  %v426_v8 = vld [vmem:[#allocation4 + $0x3b0] sm:$0xff]  ;;  %v1400_v10 = vpack.c.bf16 %v377_v2, %v376_v1  ;;  %v1402_v15 = vpack.c.bf16 %v395_v7, %v394_v6 }
  0x74   : > { %1357 = vmatpush3.bf16.msra.mxu0 %v1356_v36  ;;  %v427_v9 = vld [vmem:[#allocation4 + $0x3b8] sm:$0xff]  ;;  %v378_v11 = vld [vmem:[#allocation4 + $0x230] sm:$0xff]  ;;  %v1432_v14 = vpack.c.bf16 %v409_v5, %v408_v3  ;;  %v297_v17 = vld [vmem:[%s1863_s14 + $0x68] sm:$0xff] }
  0x75   : > { %1391 = vmatprep.subr.bf16.mxu0 %v1390_v38  ;;  %v379_v12 = vld [vmem:[#allocation4 + $0x238] sm:$0xff]  ;;  %v410_v13 = vld [vmem:[#allocation4 + $0x330] sm:$0xff]  ;;  %v296_v18 = vld [vmem:[%s1863_s14 + $0x60] sm:$0xff]  ;;  %v1434_v19 = vpack.c.bf16 %v427_v9, %v426_v8 }
  0x76   : > { %1389 = vmatpush3.bf16.msra.mxu1 %v1388_v37  ;;  %v411_v16 = vld [vmem:[#allocation4 + $0x338] sm:$0xff]  ;;  %v396_v20 = vld [vmem:[#allocation4 + $0x2c0] sm:$0xff]  ;;  %v397_v21 = vld [vmem:[#allocation4 + $0x2c8] sm:$0xff]  ;;  %v1404_v25 = vpack.c.bf16 %v379_v12, %v378_v11 }
  0x77   : > { %1423 = vmatprep.subr.bf16.mxu1 %v1422_v42  ;;  %572 = vmatmul.mubr.f32.vlgmr.msra.gmra.mrb[0].mxu0 %v284_v48  ;;  %v299_v22 = vld [vmem:[%s1863_s14 + $0x78] sm:$0xff]  ;;  %v428_v23 = vld [vmem:[#allocation4 + $0x3c0] sm:$0xff]  ;;  %v429_v24 = vld [vmem:[#allocation4 + $0x3c8] sm:$0xff]  ;;  %v1436_v29 = vpack.c.bf16 %v411_v16, %v410_v13  ;;  %v1406_v30 = vpack.c.bf16 %v397_v21, %v396_v20 }
  0x78   : > { %1393 = vmatpush3.bf16.msra.mxu0 %v1392_v49  ;;  %576 = vmatprep.mubr.f32.mxu0 %v297_v17  ;;  %v380_v26 = vld [vmem:[#allocation4 + $0x240] sm:$0xff]  ;;  %v381_v27 = vld [vmem:[#allocation4 + $0x248] sm:$0xff]  ;;  %v298_v28 = vld [vmem:[%s1863_s14 + $0x70] sm:$0xff]  ;;  %v1438_v34 = vpack.c.bf16 %v429_v24, %v428_v23 }
  0x79   : > { %647 = vmatmul.mubr.f32.vlgmr.msra.gmra.mrb[0].mxu1 %v286_v50  ;;  %1395 = vmatprep.subr.bf16.mxu0 %v1394_v52  ;;  %v412_v31 = vld [vmem:[#allocation4 + $0x340] sm:$0xff]  ;;  %v413_v32 = vld [vmem:[#allocation4 + $0x348] sm:$0xff]  ;;  %v398_v35 = vld [vmem:[#allocation4 + $0x2d0] sm:$0xff]  ;;  %v1408_v40 = vpack.c.bf16 %v381_v27, %v380_v26 }
  0x7a   : > { %1425 = vmatpush3.bf16.msra.mxu1 %v1424_v51  ;;  %651 = vmatprep.mubr.f32.mxu1 %v299_v22  ;;  %v289_v33 = vld [vmem:[%s1863_s14 + $0x28] sm:$0xff]  ;;  %v399_v36 = vld [vmem:[#allocation4 + $0x2d8] sm:$0xff]  ;;  %v430_v38 = vld [vmem:[#allocation4 + $0x3d0] sm:$0xff]  ;;  %v1440_v41 = vpack.c.bf16 %v413_v32, %v412_v31 }
  0x7b   : > { %1427 = vmatprep.subr.bf16.mxu1 %v1426_v56  ;;  %577 = vmatmul.mubr.f32.gmra.mrb[2].mxu0 %v296_v18  ;;  %v291_v37 = vld [vmem:[%s1863_s14 + $0x38] sm:$0xff]  ;;  %v1410_v42 = vpack.c.bf16 %v399_v36, %v398_v35  ;;  %v382_v43 = vld [vmem:[#allocation4 + $0x250] sm:$0xff]  ;;  %v400_v48 = vld [vmem:[#allocation4 + $0x2e0] sm:$0xff] }
  0x7c   : > { %1397 = vmatpush3.bf16.msra.mxu0 %v1396_v62  ;;  %v431_v39 = vld [vmem:[#allocation4 + $0x3d8] sm:$0xff]  ;;  %721 = vmatprep.mubr.f32.mxu0 %v289_v33  ;;  %v414_v45 = vld [vmem:[#allocation4 + $0x350] sm:$0xff]  ;;  %v401_v49 = vld [vmem:[#allocation4 + $0x2e8] sm:$0xff] }
  0x7d   : > { %1399 = vmatprep.subr.bf16.mxu0 %v1398_v0  ;;  %652 = vmatmul.mubr.f32.gmra.mrb[2].mxu1 %v298_v28  ;;  %v383_v44 = vld [vmem:[#allocation4 + $0x258] sm:$0xff]  ;;  %v1442_v46 = vpack.c.bf16 %v431_v39, %v430_v38  ;;  %v432_v50 = vld [vmem:[#allocation4 + $0x3e0] sm:$0xff]  ;;  %v433_v51 = vld [vmem:[#allocation4 + $0x3e8] sm:$0xff]  ;;  %v1414_v54 = vpack.c.bf16 %v401_v49, %v400_v48 }
  0x7e   : > { %1429 = vmatpush3.bf16.msra.mxu1 %v1428_v63  ;;  %796 = vmatprep.mubr.f32.mxu1 %v291_v37  ;;  %v415_v47 = vld [vmem:[#allocation4 + $0x358] sm:$0xff]  ;;  %v1412_v52 = vpack.c.bf16 %v383_v44, %v382_v43  ;;  %v384_v55 = vld [vmem:[#allocation4 + $0x260] sm:$0xff]  ;;  %v385_v56 = vld [vmem:[#allocation4 + $0x268] sm:$0xff]  ;;  %v1446_v58 = vpack.c.bf16 %v433_v51, %v432_v50 }
  0x7f   : > { %1431 = vmatprep.subr.bf16.mxu1 %v1430_v4  ;;  %v1444_v53 = vpack.c.bf16 %v415_v47, %v414_v45  ;;  %v416_v57 = vld [vmem:[#allocation4 + $0x360] sm:$0xff]  ;;  %v417_v59 = vld [vmem:[#allocation4 + $0x368] sm:$0xff]  ;;  %v402_v60 = vld [vmem:[#allocation4 + $0x2f0] sm:$0xff]  ;;  %v1416_v0 = vpack.c.bf16 %v385_v56, %v384_v55 }
  0x80   : > { %1401 = vmatpush3.bf16.msra.mxu0 %v1400_v10  ;;  %v403_v61 = vld [vmem:[#allocation4 + $0x2f8] sm:$0xff]  ;;  %v434_v62 = vld [vmem:[#allocation4 + $0x3f0] sm:$0xff]  ;;  %v1448_v1 = vpack.c.bf16 %v417_v59, %v416_v57  ;;  %v452_v8 = vld [vmem:[#allocation4 + $0x480] sm:$0xff] }
  0x81   : > { %1403 = vmatprep.subr.bf16.mxu0 %v1402_v15  ;;  %v435_v63 = vld [vmem:[#allocation4 + $0x3f8] sm:$0xff]  ;;  %v1418_v2 = vpack.c.bf16 %v403_v61, %v402_v60  ;;  %v386_v3 = vld [vmem:[#allocation4 + $0x270] sm:$0xff]  ;;  %v453_v9 = vld [vmem:[#allocation4 + $0x488] sm:$0xff] }
  0x82   : > { %1433 = vmatpush3.bf16.msra.mxu1 %v1432_v14  ;;  %v387_v4 = vld [vmem:[#allocation4 + $0x278] sm:$0xff]  ;;  %v418_v5 = vld [vmem:[#allocation4 + $0x370] sm:$0xff]  ;;  %v1450_v6 = vpack.c.bf16 %v435_v63, %v434_v62  ;;  %v484_v10 = vld [vmem:[#allocation4 + $0x580] sm:$0xff]  ;;  %v1454_v14 = vpack.c.bf16 %v453_v9, %v452_v8 }
  0x83   : > { %1435 = vmatprep.subr.bf16.mxu1 %v1434_v19  ;;  %v419_v7 = vld [vmem:[#allocation4 + $0x378] sm:$0xff]  ;;  %v485_v11 = vld [vmem:[#allocation4 + $0x588] sm:$0xff]  ;;  %v1420_v12 = vpack.c.bf16 %v387_v4, %v386_v3  ;;  %v436_v15 = vld [vmem:[#allocation4 + $0x400] sm:$0xff] }
  0x84   : > { %1405 = vmatpush3.bf16.msra.mxu0 %v1404_v25  ;;  %v1452_v13 = vpack.c.bf16 %v419_v7, %v418_v5  ;;  %v437_v16 = vld [vmem:[#allocation4 + $0x408] sm:$0xff]  ;;  %v288_v17 = vld [vmem:[%s1863_s14 + $0x20] sm:$0xff]  ;;  %v1486_v18 = vpack.c.bf16 %v485_v11, %v484_v10  ;;  %v290_v21 = vld [vmem:[%s1863_s14 + $0x30] sm:$0xff] }
  0x85   : > { %1407 = vmatprep.subr.bf16.mxu0 %v1406_v30  ;;  %v468_v19 = vld [vmem:[#allocation4 + $0x500] sm:$0xff]  ;;  %v469_v20 = vld [vmem:[#allocation4 + $0x508] sm:$0xff]  ;;  %v454_v22 = vld [vmem:[#allocation4 + $0x490] sm:$0xff]  ;;  %v1456_v24 = vpack.c.bf16 %v437_v16, %v436_v15 }
  0x86   : > { %1437 = vmatpush3.bf16.msra.mxu1 %v1436_v29  ;;  %v455_v23 = vld [vmem:[#allocation4 + $0x498] sm:$0xff]  ;;  %v301_v25 = vld [vmem:[%s1863_s14 + $0x88] sm:$0xff]  ;;  %v486_v26 = vld [vmem:[#allocation4 + $0x590] sm:$0xff]  ;;  %v1488_v28 = vpack.c.bf16 %v469_v20, %v468_v19 }
  0x87   : > { %1439 = vmatprep.subr.bf16.mxu1 %v1438_v34  ;;  %v487_v27 = vld [vmem:[#allocation4 + $0x598] sm:$0xff]  ;;  %v438_v29 = vld [vmem:[#allocation4 + $0x410] sm:$0xff]  ;;  %v1458_v32 = vpack.c.bf16 %v455_v23, %v454_v22  ;;  %v456_v34 = vld [vmem:[#allocation4 + $0x4a0] sm:$0xff] }
  0x88   : > { %1409 = vmatpush3.bf16.msra.mxu0 %v1408_v40  ;;  %v439_v30 = vld [vmem:[#allocation4 + $0x418] sm:$0xff]  ;;  %v470_v31 = vld [vmem:[#allocation4 + $0x510] sm:$0xff]  ;;  %v457_v35 = vld [vmem:[#allocation4 + $0x4a8] sm:$0xff]  ;;  %v1490_v37 = vpack.c.bf16 %v487_v27, %v486_v26 }
  0x89   : > { %1411 = vmatprep.subr.bf16.mxu0 %v1410_v42  ;;  %v471_v33 = vld [vmem:[#allocation4 + $0x518] sm:$0xff]  ;;  %v488_v38 = vld [vmem:[#allocation4 + $0x5a0] sm:$0xff]  ;;  %v489_v39 = vld [vmem:[#allocation4 + $0x5a8] sm:$0xff]  ;;  %v1462_v44 = vpack.c.bf16 %v457_v35, %v456_v34 }
  0x8a   : > { %1441 = vmatpush3.bf16.msra.mxu1 %v1440_v41  ;;  %v303_v36 = vld [vmem:[%s1863_s14 + $0x98] sm:$0xff]  ;;  %v300_v40 = vld [vmem:[%s1863_s14 + $0x80] sm:$0xff]  ;;  %v1460_v41 = vpack.c.bf16 %v439_v30, %v438_v29  ;;  %v302_v42 = vld [vmem:[%s1863_s14 + $0x90] sm:$0xff]  ;;  %v1492_v43 = vpack.c.bf16 %v471_v33, %v470_v31  ;;  %v1494_v48 = vpack.c.bf16 %v489_v39, %v488_v38 }
  0x8b   : > { %1443 = vmatprep.subr.bf16.mxu1 %v1442_v46  ;;  %v440_v45 = vld [vmem:[#allocation4 + $0x420] sm:$0xff]  ;;  %v441_v46 = vld [vmem:[#allocation4 + $0x428] sm:$0xff]  ;;  %v458_v50 = vld [vmem:[#allocation4 + $0x4b0] sm:$0xff] }
  0x8c   : > { %1413 = vmatpush3.bf16.msra.mxu0 %v1412_v52  ;;  %v472_v47 = vld [vmem:[#allocation4 + $0x520] sm:$0xff]  ;;  %v473_v49 = vld [vmem:[#allocation4 + $0x528] sm:$0xff]  ;;  %v459_v51 = vld [vmem:[#allocation4 + $0x4b8] sm:$0xff]  ;;  %v1464_v55 = vpack.c.bf16 %v441_v46, %v440_v45 }
  0x8d   : > { %1415 = vmatprep.subr.bf16.mxu0 %v1414_v54  ;;  %v490_v52 = vld [vmem:[#allocation4 + $0x5b0] sm:$0xff]  ;;  %v293_v54 = vld [vmem:[%s1863_s14 + $0x48] sm:$0xff]  ;;  %v295_v56 = vld [vmem:[%s1863_s14 + $0x58] sm:$0xff]  ;;  %v1496_v57 = vpack.c.bf16 %v473_v49, %v472_v47 }
  0x8e   : > { %1445 = vmatpush3.bf16.msra.mxu1 %v1444_v53  ;;  %v491_v53 = vld [vmem:[#allocation4 + $0x5b8] sm:$0xff]  ;;  %v442_v59 = vld [vmem:[#allocation4 + $0x430] sm:$0xff]  ;;  %v493_v3 = vld [vmem:[#allocation4 + $0x5c8] sm:$0xff] }
  0x8f   : > { %1447 = vmatprep.subr.bf16.mxu1 %v1446_v58  ;;  %v1466_v58 = vpack.c.bf16 %v459_v51, %v458_v50  ;;  %v443_v60 = vld [vmem:[#allocation4 + $0x438] sm:$0xff]  ;;  %v474_v61 = vld [vmem:[#allocation4 + $0x530] sm:$0xff]  ;;  %v1498_v62 = vpack.c.bf16 %v491_v53, %v490_v52  ;;  %v444_v7 = vld [vmem:[#allocation4 + $0x440] sm:$0xff] }
  0x90   : > { %1417 = vmatpush3.bf16.msra.mxu0 %v1416_v0  ;;  %v475_v63 = vld [vmem:[#allocation4 + $0x538] sm:$0xff]  ;;  %v460_v0 = vld [vmem:[#allocation4 + $0x4c0] sm:$0xff]  ;;  %v1468_v4 = vpack.c.bf16 %v443_v60, %v442_v59  ;;  %v445_v8 = vld [vmem:[#allocation4 + $0x448] sm:$0xff] }
  0x91   : > { %1419 = vmatprep.subr.bf16.mxu0 %v1418_v2  ;;  %v492_v2 = vld [vmem:[#allocation4 + $0x5c0] sm:$0xff]  ;;  %v1500_v5 = vpack.c.bf16 %v475_v63, %v474_v61  ;;  %v477_v11 = vld [vmem:[#allocation4 + $0x548] sm:$0xff]  ;;  %v495_v15 = vld [vmem:[#allocation4 + $0x5d8] sm:$0xff]  ;;  %v1472_v16 = vpack.c.bf16 %v445_v8, %v444_v7 }
  0x92   : > { %1449 = vmatpush3.bf16.msra.mxu1 %v1448_v1  ;;  %v461_v1 = vld [vmem:[#allocation4 + $0x4c8] sm:$0xff]  ;;  %v476_v9 = vld [vmem:[#allocation4 + $0x540] sm:$0xff]  ;;  %v1502_v10 = vpack.c.bf16 %v493_v3, %v492_v2  ;;  %v446_v19 = vld [vmem:[#allocation4 + $0x450] sm:$0xff] }
  0x93   : > { %1451 = vmatprep.subr.bf16.mxu1 %v1450_v6  ;;  %v1470_v6 = vpack.c.bf16 %v461_v1, %v460_v0  ;;  %v447_v20 = vld [vmem:[#allocation4 + $0x458] sm:$0xff]  ;;  %v496_v26 = vld [vmem:[#allocation4 + $0x5e0] sm:$0xff]  ;;  %v497_v27 = vld [vmem:[#allocation4 + $0x5e8] sm:$0xff] }
  0x94   : > { %1421 = vmatpush3.bf16.msra.mxu0 %v1420_v12  ;;  %v462_v12 = vld [vmem:[#allocation4 + $0x4d0] sm:$0xff]  ;;  %v479_v23 = vld [vmem:[#allocation4 + $0x558] sm:$0xff]  ;;  %v448_v31 = vld [vmem:[#allocation4 + $0x460] sm:$0xff]  ;;  %v1510_v34 = vpack.c.bf16 %v497_v27, %v496_v26 }
  0x95   : > { %1455 = vmatprep.subr.bf16.mxu0 %v1454_v14  ;;  %v494_v14 = vld [vmem:[#allocation4 + $0x5d0] sm:$0xff]  ;;  %v480_v33 = vld [vmem:[#allocation4 + $0x560] sm:$0xff]  ;;  %v481_v35 = vld [vmem:[#allocation4 + $0x568] sm:$0xff] }
  0x96   : > { %1453 = vmatpush3.bf16.msra.mxu1 %v1452_v13  ;;  %v463_v13 = vld [vmem:[#allocation4 + $0x4d8] sm:$0xff]  ;;  %v1506_v22 = vpack.c.bf16 %v495_v15, %v494_v14  ;;  %v498_v38 = vld [vmem:[#allocation4 + $0x5f0] sm:$0xff]  ;;  %v292_v50 = vld [vmem:[%s1863_s14 + $0x40] sm:$0xff] }
  0x97   : > { %1487 = vmatprep.subr.bf16.mxu1 %v1486_v18  ;;  %722 = vmatmul.mubr.f32.vlgmr.msra.gmra.mrb[4].mxu0 %v288_v17  ;;  %v1504_v17 = vpack.c.bf16 %v477_v11, %v476_v9  ;;  %v1474_v18 = vpack.c.bf16 %v463_v13, %v462_v12  ;;  %v499_v39 = vld [vmem:[#allocation4 + $0x5f8] sm:$0xff]  ;;  %v482_v46 = vld [vmem:[#allocation4 + $0x570] sm:$0xff]  ;;  %v305_v52 = vld [vmem:[%s1863_s14 + $0xa8] sm:$0xff] }
  0x98   : > { %1457 = vmatpush3.bf16.msra.mxu0 %v1456_v24  ;;  %726 = vmatprep.mubr.f32.mxu0 %v301_v25  ;;  %v464_v24 = vld [vmem:[#allocation4 + $0x4e0] sm:$0xff]  ;;  %v465_v25 = vld [vmem:[#allocation4 + $0x4e8] sm:$0xff]  ;;  %v1514_v45 = vpack.c.bf16 %v499_v39, %v498_v38  ;;  %v483_v47 = vld [vmem:[#allocation4 + $0x578] sm:$0xff] }
  0x99   : > { %797 = vmatmul.mubr.f32.vlgmr.msra.gmra.mrb[4].mxu1 %v290_v21  ;;  %1459 = vmatprep.subr.bf16.mxu0 %v1458_v32  ;;  %v478_v21 = vld [vmem:[#allocation4 + $0x550] sm:$0xff]  ;;  %v1478_v30 = vpack.c.bf16 %v465_v25, %v464_v24  ;;  %v449_v32 = vld [vmem:[#allocation4 + $0x468] sm:$0xff]  ;;  %v1516_v49 = vpack.c.bf16 %v483_v47, %v482_v46  ;;  %v307_v53 = vld [vmem:[%s1863_s14 + $0xb8] sm:$0xff] }
  0x9a   : > { %1489 = vmatpush3.bf16.msra.mxu1 %v1488_v28  ;;  %801 = vmatprep.mubr.f32.mxu1 %v303_v36  ;;  %v1476_v28 = vpack.c.bf16 %v447_v20, %v446_v19  ;;  %v1508_v29 = vpack.c.bf16 %v479_v23, %v478_v21  ;;  %v466_v36 = vld [vmem:[#allocation4 + $0x4f0] sm:$0xff] }
  0x9b   : > { %727 = vmatmul.mubr.f32.gmra.mrb[6].mxu0 %v300_v40  ;;  %1491 = vmatprep.subr.bf16.mxu1 %v1490_v37  ;;  %v467_v37 = vld [vmem:[#allocation4 + $0x4f8] sm:$0xff]  ;;  %v1480_v40 = vpack.c.bf16 %v449_v32, %v448_v31  ;;  %v294_v51 = vld [vmem:[%s1863_s14 + $0x50] sm:$0xff] }
  0x9c   : > { %1461 = vmatpush3.bf16.msra.mxu0 %v1460_v41  ;;  %871 = vmatprep.mubr.f32.mxu0 %v293_v54  ;;  %v1512_v41 = vpack.c.bf16 %v481_v35, %v480_v33  ;;  %v304_v54 = vld [vmem:[%s1863_s14 + $0xa0] sm:$0xff] }
  0x9d   : > { %802 = vmatmul.mubr.f32.gmra.mrb[6].mxu1 %v302_v42  ;;  %1463 = vmatprep.subr.bf16.mxu0 %v1462_v44  ;;  %v1482_v42 = vpack.c.bf16 %v467_v37, %v466_v36  ;;  %v451_v44 = vld [vmem:[#allocation4 + $0x478] sm:$0xff]  ;;  %v957_v33 = vld [vmem:[%s1930_s1] sm:$0xff] }
  0x9e   : > { %1493 = vmatpush3.bf16.msra.mxu1 %v1492_v43  ;;  %946 = vmatprep.mubr.f32.mxu1 %v295_v56  ;;  %v450_v43 = vld [vmem:[#allocation4 + $0x470] sm:$0xff] }
  0x9f   : > { %1495 = vmatprep.subr.bf16.mxu1 %v1494_v48  ;;  %v1484_v48 = vpack.c.bf16 %v451_v44, %v450_v43 }
  0xa0   : > { %1465 = vmatpush3.bf16.msra.mxu0 %v1464_v55  ;;  %v306_v55 = vld [vmem:[%s1863_s14 + $0xb0] sm:$0xff] }
  0xa1   : > { %1467 = vmatprep.subr.bf16.mxu0 %v1466_v58 }
  0xa2   : > { %1497 = vmatpush3.bf16.msra.mxu1 %v1496_v57  ;;  %v1094_v57 = vld [vmem:[%s1932_s3] ss:$0 sm:$0xff] }
  0xa3   : > { %1499 = vmatprep.subr.bf16.mxu1 %v1498_v62 }
  0xa4   : > { %1469 = vmatpush3.bf16.msra.mxu0 %v1468_v4 }
  0xa5   : > { %1471 = vmatprep.subr.bf16.mxu0 %v1470_v6 }
  0xa6   : > { %1501 = vmatpush3.bf16.msra.mxu1 %v1500_v5 }
  0xa7   : > { %1503 = vmatprep.subr.bf16.mxu1 %v1502_v10 }
  0xa8   : > { %1473 = vmatpush3.bf16.msra.mxu0 %v1472_v16 }
  0xa9   : > { %1475 = vmatprep.subr.bf16.mxu0 %v1474_v18 }
  0xaa   : > { %1505 = vmatpush3.bf16.msra.mxu1 %v1504_v17 }
  0xab   : > { %1507 = vmatprep.subr.bf16.mxu1 %v1506_v22 }
  0xac   : > { %1477 = vmatpush3.bf16.msra.mxu0 %v1476_v28 }
  0xad   : > { %1479 = vmatprep.subr.bf16.mxu0 %v1478_v30 }
  0xae   : > { %1509 = vmatpush3.bf16.msra.mxu1 %v1508_v29 }
  0xaf   : > { %1511 = vmatprep.subr.bf16.mxu1 %v1510_v34 }
  0xb0   : > { %1481 = vmatpush3.bf16.msra.mxu0 %v1480_v40 }
  0xb1   : > { %1483 = vmatprep.subr.bf16.mxu0 %v1482_v42  ;;  %v958_v42 = vld [vmem:[%s1930_s1 + $0x8] sm:$0xff] }
  0xb2   : > { %1513 = vmatpush3.bf16.msra.mxu1 %v1512_v41 }
  0xb3   : > { %1515 = vmatprep.subr.bf16.mxu1 %v1514_v45 }
  0xb4   : > { %1485 = vmatpush3.bf16.msra.mxu0 %v1484_v48 }
  0xb6   : > { %1517 = vmatpush3.bf16.msra.mxu1 %v1516_v49 }
  0xb7   : > { %872 = vmatmul.mubr.f32.vlgmr.msra.gmra.mrb[8].mxu0 %v292_v50 }
  0xb8   : > { %876 = vmatprep.mubr.f32.mxu0 %v305_v52 }
  0xb9   : > { %947 = vmatmul.mubr.f32.vlgmr.msra.gmra.mrb[8].mxu1 %v294_v51 }
  0xba   : > { %951 = vmatprep.mubr.f32.mxu1 %v307_v53 }
  0xbb   : > { %877 = vmatmul.mubr.f32.gmra.mrb[10].mxu0 %v304_v54 }
  0xbd   : > { %952 = vmatmul.mubr.f32.gmra.mrb[10].mxu1 %v306_v55 }
 0x14a   : > { %v1130_v56 = vpop.f32.mrb[0].mxu0 }
 0x14b   : > { %v1131_v58 = vpop.f32.mrb[1].mxu0 }
 0x14c   : > { %v1168_v59 = vpop.f32.mrb[0].mxu1  ;;  %v1132_v60 = vadd.f32 %v1131_v58, %v1130_v56 }
 0x14d   : > { %v1169_v61 = vpop.f32.mrb[1].mxu1 }
 0x14e   : > { %v1170_v62 = vadd.f32 %v1169_v61, %v1168_v59  ;;  %v574_v63 = vadd.f32 %v1132_v60, %v1094_v57  ;;  %v1133_v1 = vpop.f32.mrb[2].mxu0 }
 0x14f   : > { %v1134_v2 = vpop.f32.mrb[3].mxu0 }
 0x150   : > { %v649_v0 = vadd.f32 %v1170_v62, %v574_v63  ;;  %v1135_v3 = vadd.f32 %v1134_v2, %v1133_v1  ;;  %v1171_v4 = vpop.f32.mrb[2].mxu1 }
 0x151   : > { %v1172_v6 = vpop.f32.mrb[3].mxu1 }
 0x152   : > { %v579_v5 = vadd.f32 %v1135_v3, %v1094_v57  ;;  %v1173_v7 = vadd.f32 %v1172_v6, %v1171_v4 }
 0x154   : > { %v654_v8 = vadd.f32 %v1173_v7, %v579_v5 }
 0x16a   : > { %v1206_v9 = vpop.f32.mrb[4].mxu0 }
 0x16b   : > { %v1207_v10 = vpop.f32.mrb[5].mxu0 }
 0x16c   : > { %v1244_v11 = vpop.f32.mrb[4].mxu1  ;;  %v1208_v12 = vadd.f32 %v1207_v10, %v1206_v9 }
 0x16d   : > { %v1245_v13 = vpop.f32.mrb[5].mxu1 }
 0x16e   : > { %v1246_v14 = vadd.f32 %v1245_v13, %v1244_v11  ;;  %v724_v15 = vadd.f32 %v1208_v12, %v649_v0  ;;  %v1209_v16 = vpop.f32.mrb[6].mxu0 }
 0x16f   : > { %v1210_v17 = vpop.f32.mrb[7].mxu0 }
 0x170   : > { %v1247_v18 = vpop.f32.mrb[6].mxu1  ;;  %v799_v19 = vadd.f32 %v1246_v14, %v724_v15  ;;  %v1211_v20 = vadd.f32 %v1210_v17, %v1209_v16 }
 0x171   : > { %v1248_v21 = vpop.f32.mrb[7].mxu1 }
 0x172   : > { %v1249_v22 = vadd.f32 %v1248_v21, %v1247_v18  ;;  %v729_v23 = vadd.f32 %v1211_v20, %v654_v8 }
 0x174   : > { %v804_v24 = vadd.f32 %v1249_v22, %v729_v23 }
 0x18a   : > { %v1282_v25 = vpop.f32.mrb[8].mxu0 }
 0x18b   : > { %v1283_v26 = vpop.f32.mrb[9].mxu0 }
 0x18c   : > { %v1320_v27 = vpop.f32.mrb[8].mxu1  ;;  %v1284_v28 = vadd.f32 %v1283_v26, %v1282_v25 }
 0x18d   : > { %v1321_v29 = vpop.f32.mrb[9].mxu1 }
 0x18e   : > { %v1322_v30 = vadd.f32 %v1321_v29, %v1320_v27  ;;  %v874_v31 = vadd.f32 %v1284_v28, %v799_v19  ;;  %v1285_v32 = vpop.f32.mrb[10].mxu0 }
 0x18f   : > { %v1286_v34 = vpop.f32.mrb[11].mxu0 }
 0x190   : > { %v1323_v35 = vpop.f32.mrb[10].mxu1  ;;  %v949_v36 = vadd.f32 %v1322_v30, %v874_v31  ;;  %v1287_v37 = vadd.f32 %v1286_v34, %v1285_v32 }
 0x191   : > { %v1324_v38 = vpop.f32.mrb[11].mxu1 }
 0x192   : > { %v1325_v39 = vadd.f32 %v1324_v38, %v1323_v35  ;;  %v959_v40 = vadd.f32 %v957_v33, %v949_v36  ;;  %v879_v41 = vadd.f32 %v1287_v37, %v804_v24 }
 0x194   : > { %961 = vst [vmem:[%s282_s15] sm:$0xff] %v959_v40  ;;  %v954_v43 = vadd.f32 %v1325_v39, %v879_v41 }
 0x196   : > { %v960_v44 = vadd.f32 %v958_v42, %v954_v43 }
 0x198   : > { %962 = vst [vmem:[%s282_s15 + $0x8] sm:$0xff] %v960_v44 }
 0x199 PF: > { %s18_s20 = sadd.s32 1, %s1703_s20   ;;  %s1946_s15 = smov %s1687_s16 }
 0x19a   : > { %p15_p1 = scmp.ge.s32.totalorder %s18_s20, 4   ;;  %s1947_s16 = smov %s1691_s17 }
 0x19b   : > { %s1948_s17 = smov %s1822_s26  ;;  %s1949_s18 = smov %s1699_s19 }
 0x19c   : > { %s1950_s19 = smov %s1952_s28  ;;  %17 = sbr.rel (!%p15_p1) target bundleno = 5 (0x5), region = 83 }
 0x1a3   :  { %993 = vsyncpa [#allocation3], 1 }
 0x1a4   :  { %995 = vsyncpa [#allocation3 + $0x1], 1 }
 0x1a5   :  { %996 = vsyncpa [#allocation5], 1 }

// kernel: music_encoder.15
= control target key start
LH: loop header
LB: loop body
LE: loop exit
PB: predicated region body
PF: predicated region fallthrough
CT: control target
= control target key end

     0   :  { %8 = vsyncpa [#allocation3], 0  ;;  %s828_s0 = inlined_call_operand.vmem [shape: f32[2,16,128], index: 0, kind: input, shape index: {}]   ;;  %s829_s1 = inlined_call_operand.vmem [shape: f32[128,128], index: 1, kind: input, shape index: {}]   ;;  %s830_s2 = inlined_call_operand.vmem [shape: f32[1,128], index: 2, kind: input, shape index: {}]   ;;  %s831_s3 = inlined_call_operand.hbm [shape: f32[2,16,128], index: 3, kind: output, shape index: {}]  }
   0x1   :  { %10 = vsyncpa [#allocation3 + $0x1], 0  ;;  %s658_s12 = smov 0   ;;  %s660_s13 = smov 0  }
   0x2   :  { %s662_s14 = smov 0   ;;  %s664_s15 = smov 0  }
   0x3   :  { %s666_s16 = smov 0   ;;  %s668_s17 = smov 0  }
   0x4 LB: > { %s397_s18 = sadd.s32 4294967295, %s633_s17   ;;  %s398_s19 = sadd.s32 4294967294, %s633_s17   ;;  %s633_s17 = sphi %s668_s17, %s16_s17   ;;  %s629_s16 = sphi %s666_s16, %s838_s16   ;;  %s625_s15 = sphi %s664_s15, %s837_s15   ;;  %s621_s14 = sphi %s662_s14, %s836_s14   ;;  %s617_s13 = sphi %s660_s13, %s835_s13   ;;  %s613_s12 = sphi %s658_s12, %s834_s12  }
   0x5   : > { %s28_s20 = sadd.s32 1, %s629_s16  ;;  %s107_s21 = sadd.s32 1, %s621_s14 }
   0x6   : > { %p30_p0 = scmp.ge.s32.totalorder %s28_s20, 2  ;;  %p117_p1 = scmp.ne.s32.totalorder %s621_s14, %s617_s13 }
   0x7   : > { %p118_p2 = scmp.eq.s32.totalorder %s397_s18, 1  ;;  %p123_p3 = scmp.ne.s32.totalorder %s617_s13, %s613_s12 }
   0x8   : > { %s840_s20 = smov (%p30_p0, %s28_s20), 0  ;;  %p124_p5 = scmp.eq.s32.totalorder %s398_s19, 1 }
   0x9   : > { %p698_p4 = por %p118_p2, %p117_p1  ;;  %s102_s23 = ssub.s32 %s629_s16, %s840_s20 }
   0xa   : > { %p401_p6 = scmp.ge.s32.totalorder %s633_s17, 1  ;;  %p105_p7 = scmp.eq.s32.totalorder %s102_s23, 0 }
   0xb   : > { %p705_p8 = por %p124_p5, %p123_p3  ;;  %p161_p9 = scmp.lt.s32.totalorder %s633_s17, 3 }
   0xc   : > { %s711_s25 = scalar_select %p105_p7, %s621_s14, %s107_s21  }
   0xd   : > { %p162_p10 = pnand %p401_p6, %p161_p9 }
   0xe   : > { %v202_v0 = vld [vmem:[%s829_s1] sm:$0xff] (!%p162_p10)  ;;  %v203_v1 = vld [vmem:[%s829_s1 + $0x8] sm:$0xff] (!%p162_p10)  ;;  %v204_v2 = vld [vmem:[%s829_s1 + $0x10] sm:$0xff] (!%p162_p10)  ;;  %p190_p11 = scmp.lt.s32.totalorder (!%p162_p10), %s625_s15, 1  ;;  %s186_s30 = sand.u32 (!%p162_p10), 1, %s617_s13  }
   0xf   : > { %165 = sbr.rel (%p162_p10) target bundleno = 279 (0x117), region = 32  ;;  %v466_v3 = vpack.c.bf16 (!%p162_p10), %v203_v1, %v202_v0  ;;  %v205_v4 = vld [vmem:[%s829_s1 + $0x18] sm:$0xff] (!%p162_p10)  ;;  %v206_v6 = vld [vmem:[%s829_s1 + $0x20] sm:$0xff] (!%p162_p10)  ;;  %v207_v7 = vld [vmem:[%s829_s1 + $0x28] sm:$0xff] (!%p162_p10)  ;;  %s402_s4 = sshll.u32 (!%p162_p10), %s186_s30, 4 }
  0x10   : > { %v470_v5 = vpack.c.bf16 (!%p162_p10), %v205_v4, %v204_v2  ;;  %v474_v8 = vpack.c.bf16 (!%p162_p10), %v207_v7, %v206_v6  ;;  %v208_v9 = vld [vmem:[%s829_s1 + $0x30] sm:$0xff] (!%p162_p10)  ;;  %v209_v10 = vld [vmem:[%s829_s1 + $0x38] sm:$0xff] (!%p162_p10)  ;;  %v210_v13 = vld [vmem:[%s829_s1 + $0x40] sm:$0xff] (!%p162_p10)  ;;  %s188_s7 = scalar_lea.vmem (!%p162_p10), [#allocation2], %s402_s4  ;;  %s412_s9 = sshll.u32 (!%p162_p10), %s625_s15, 8 }
  0x11   : > { %467 = vmatprep.subr.bf16.mxu0 (!%p162_p10), %v466_v3  ;;  %v478_v12 = vpack.c.bf16 (!%p162_p10), %v209_v10, %v208_v9  ;;  %v211_v14 = vld [vmem:[%s829_s1 + $0x48] sm:$0xff] (!%p162_p10)  ;;  %v212_v16 = vld [vmem:[%s829_s1 + $0x50] sm:$0xff] (!%p162_p10)  ;;  %v213_v17 = vld [vmem:[%s829_s1 + $0x58] sm:$0xff] (!%p162_p10)  ;;  %s318_s8 = sshll.u32 (!%p162_p10), %s188_s7, 4  ;;  %s775_s8 = int_to_ptr.vmem [resolvable:$true] %s318_s8 }
  0x12   : > { %469 = vmatpush3.bf16.msra.mxu0 (!%p162_p10), %v466_v3  ;;  %v482_v15 = vpack.c.bf16 (!%p162_p10), %v211_v14, %v210_v13  ;;  %v486_v18 = vpack.c.bf16 (!%p162_p10), %v213_v17, %v212_v16  ;;  %v214_v19 = vld [vmem:[%s829_s1 + $0x60] sm:$0xff] (!%p162_p10)  ;;  %v215_v20 = vld [vmem:[%s829_s1 + $0x68] sm:$0xff] (!%p162_p10)  ;;  %v216_v22 = vld [vmem:[%s829_s1 + $0x70] sm:$0xff] (!%p162_p10)  ;;  %s555_s19 = scalar_lea.vmem (!%p162_p10), %s775_s8, 256 }
  0x13   : > { %471 = vmatprep.subr.bf16.mxu0 (!%p162_p10), %v470_v5  ;;  %v490_v21 = vpack.c.bf16 (!%p162_p10), %v215_v20, %v214_v19  ;;  %v217_v23 = vld [vmem:[%s829_s1 + $0x78] sm:$0xff] (!%p162_p10)  ;;  %v405_v26 = vld [vmem:[%s830_s2] ss:$0 sm:$0xff] (!%p162_p10)  ;;  %p556_p12 = scmp.ne.s32.totalorder (!%p162_p10), %s775_s8, %s555_s19 }
  0x14   : > { %v494_v24 = vpack.c.bf16 (!%p162_p10), %v217_v23, %v216_v22 }
  0x15   : > { %p557_p13 = pnand (!%p162_p10), %p556_p12, %p698_p4 }
  0x16   : > { %s191_s11 = scalar_select %p190_p11, %s625_s15, 1  ;;  %473 = vmatpush3.bf16.msra.mxu0 %v470_v5 }
  0x17   : > { %475 = vmatprep.subr.bf16.mxu0 %v474_v8  ;;  %p558_p0 = pneg %p557_p13  ;;  %s635_s15 = smov [#allocation2]  }
  0x18   : > { %s411_s18 = sshll.u32 %s191_s11, 4  ;;  %s780_s11 = scalar_lea.hbm %s831_s3, %s412_s9 }
  0x19   : > { %s736_s23 = scalar_lea.vmem %s828_s0, %s411_s18  ;;  %s782_s18 = scalar_lea.sflag [#allocation3], %s186_s30 }
  0x1a   : > { %v200_v11 = vld [vmem:[%s736_s23] sm:$0xff]  ;;  %477 = vmatpush3.bf16.msra.mxu0 %v474_v8  ;;  %v201_v25 = vld [vmem:[%s736_s23 + $0x8] sm:$0xff]  ;;  %s559_s21 = sshll.u32 %s635_s15, 4  ;;  %s560_s21 = int_to_ptr.vmem [resolvable:$false] %s559_s21 }
  0x1b   : > { %463 = vmatprep.mubr.f32.mxu0 %v200_v11  ;;  %479 = vmatprep.subr.bf16.mxu0 %v478_v12  ;;  %s561_s26 = scalar_lea.vmem %s560_s21, 512  ;;  %p562_p1 = scmp.lt.s32.totalorder %s775_s8, %s560_s21 }
  0x1c   : > { %p563_p2 = scmp.lt.s32.totalorder %s561_s26, %s555_s19 }
  0x1e   : > { %481 = vmatpush3.bf16.msra.mxu0 %v478_v12  ;;  %p564_p3 = por %p563_p2, %p562_p1 }
  0x1f   : > { %483 = vmatprep.subr.bf16.mxu0 %v482_v15 }
  0x20   : > { %p565_p5 = pnand %p564_p3, %p558_p0 }
  0x22   : > { %485 = vmatpush3.bf16.msra.mxu0 %v482_v15 }
  0x23   : > { %487 = vmatprep.subr.bf16.mxu0 %v486_v18 }
  0x26   : > { %489 = vmatpush3.bf16.msra.mxu0 %v486_v18 }
  0x27   : > { %491 = vmatprep.subr.bf16.mxu0 %v490_v21 }
  0x2a   : > { %493 = vmatpush3.bf16.msra.mxu0 %v490_v21 }
  0x2b   : > { %495 = vmatprep.subr.bf16.mxu0 %v494_v24 }
  0x2e   : > { %497 = vmatpush3.bf16.msra.mxu0 %v494_v24 }
  0x31   : > { %464 = vmatmul.mubr.f32.vlgmr.msra.gmra.mrb[0].mxu0 %v201_v25 }
 0x104   : > { %v465_v27 = vpop.f32.mrb[0].mxu0 }
 0x105   : > { %v297_v28 = vadd.f32 %v465_v27, %v405_v26  ;;  %v291_v29 = vpop.f32.mrb[1].mxu0 }
 0x106   : > { %v292_v30 = vadd.f32 %v405_v26, %v291_v29 }
 0x107   : > { %301 = vst [vmem:[%s188_s7 + $0x8] sm:$0xff] %v297_v28 }
 0x108   : > { %300 = vst [vmem:[%s188_s7] sm:$0xff] %v292_v30 }
 0x109   : > { %568 = shalt.err (!%p565_p5)
}
 0x10a   : > { %s569_s27 = scalar_lea.hbm %s780_s11, 256  ;;  %s573_s30 = scalar_lea.hbm %s831_s3, 512 }
 0x10b   : > { %p570_p6 = scmp.ne.s32.totalorder %s780_s11, %s569_s27  ;;  %p574_p10 = scmp.lt.u32.totalorder %s780_s11, %s831_s3 }
 0x10c   : > { %p575_p11 = scmp.lt.u32.totalorder %s573_s30, %s569_s27  ;;  %p577_p13 = scmp.lt.u32.totalorder %s569_s27, %s780_s11 }
 0x10d   : > { %p571_p7 = pnand %p570_p6, %p698_p4 }
 0x10e   : > { %p576_p12 = por %p575_p11, %p574_p10 }
 0x10f   : > { %p572_p9 = pneg %p571_p7 }
 0x110   : > { %p578_p0 = por %p577_p13, %p576_p12 }
 0x112   : > { %p579_p1 = pnand %p578_p0, %p572_p9 }
 0x114   : > { %582 = shalt.err (!%p579_p1)
}
 0x115   : > { %s636_s6 = smov 128   ;;  %s637_s7 = smov 8  }
 0x116   : > { %498 = dma.vmem_to_hbm [thread:$0]  (%p698_p4), %s775_s8, 256, %s780_s11, %s782_s18, %s636_s6, %s636_s6, %s637_s7  }
 0x117 PF: > { %p504_p2 = scmp.ge.s32.totalorder %s633_s17, 2  ;;  %s333_s9 = sand.u32 1, %s613_s12  }
 0x118   : > { %s334_s23 = scalar_lea.sflag [#allocation3], %s333_s9 }
 0x119   : > { %p501_p3 = pnand %p504_p2, %p705_p8 }
 0x11b   : > { %608 = dma.done.wait (!%p501_p3), %s334_s23, 256  }
 0x11c   : > { %610 = vsyncadd (!%p501_p3), %s334_s23, 4294967040  ;;  %s16_s17 = sadd.s32 1, %s633_s17   ;;  %s834_s12 = smov %s617_s13 }
 0x11d   : > { %p13_p5 = scmp.ge.s32.totalorder %s16_s17, 4   ;;  %s835_s13 = smov %s621_s14 }
 0x11e   : > { %s836_s14 = smov %s711_s25  ;;  %s837_s15 = smov %s629_s16 }
 0x11f   : > { %s838_s16 = smov %s840_s20  ;;  %15 = sbr.rel (!%p13_p5) target bundleno = 4 (0x4), region = 67 }
 0x126   :  { %339 = vsyncpa [#allocation3], 1 }
 0x127   :  { %341 = vsyncpa [#allocation3 + $0x1], 1 }

// kernel: music_encoder.10
= control target key start
LH: loop header
LB: loop body
LE: loop exit
PB: predicated region body
PF: predicated region fallthrough
CT: control target
= control target key end

     0   :  { %s3688_s21 = smov 0   ;;  %s3690_s22 = smov 0   ;;  %s4142_s0 = inlined_call_operand.vmem [shape: f32[2,16,384], index: 0, kind: input, shape index: {}, may-alias: {0,1,2}]   ;;  %s4143_s1 = inlined_call_operand.vmem [shape: f32[2,16,384], index: 1, kind: input, shape index: {}, may-alias: {0,1,2}]   ;;  %s4144_s2 = inlined_call_operand.vmem [shape: f32[2,16,384], index: 2, kind: input, shape index: {}, may-alias: {0,1,2}]   ;;  %s4145_s3 = inlined_call_operand.vmem [shape: f32[2,16,128], index: 3, kind: input, shape index: {}]   ;;  %s4146_s4 = inlined_call_operand.vmem [shape: f32[128,128], index: 4, kind: input, shape index: {}]   ;;  %s4147_s5 = inlined_call_operand.vmem [shape: f32[1,128], index: 5, kind: input, shape index: {}]   ;;  %s4148_s6 = inlined_call_operand.vmem [shape: f32[2,16,128], index: 6, kind: output, shape index: {}]  }
   0x1   :  { %s3692_s23 = smov 0   ;;  %s3694_s24 = smov 0  }
   0x2   :  { %s3696_s25 = smov 0  }
   0x3 LB: > { %s35_s26 = sadd.s32 1, %s3641_s24  ;;  %p51_p1 = scmp.ne.s32.totalorder %s3633_s22, %s3629_s21  ;;  %s3645_s25 = sphi %s3696_s25, %s16_s25   ;;  %s3641_s24 = sphi %s3694_s24, %s4155_s24   ;;  %s3637_s23 = sphi %s3692_s23, %s4154_s23   ;;  %s3633_s22 = sphi %s3690_s22, %s4153_s22   ;;  %s3629_s21 = sphi %s3688_s21, %s4152_s21  }
   0x4   : > { %p37_p0 = scmp.ge.s32.totalorder %s35_s26, 2  ;;  %p52_p2 = scmp.eq.s32.totalorder %s3645_s25, 0 }
   0x5   : > { %s44_s29 = sadd.s32 1, %s3633_s22  ;;  %p3164_p5 = scmp.ge.s32.totalorder %s3645_s25, 2 }
   0x6   : > { %s4157_s26 = smov (%p37_p0, %s35_s26), 0  ;;  %p3719_p3 = por %p52_p2, %p51_p1 }
   0x7   : > { %s39_s28 = ssub.s32 %s3641_s24, %s4157_s26  ;;  %245 = sbr.rel (%p3164_p5) target bundleno = 35 (0x23), region = 24 }
   0x8   : > { %p42_p4 = scmp.eq.s32.totalorder %s39_s28, 0 }
   0xa   : > { %s3727_s30 = scalar_select %p42_p4, %s3633_s22, %s44_s29  }
   0xe   : > { %248 = sbr.rel (!%p3719_p3) target bundleno = 21 (0x15), region = 28  ;;  %s250_s7 = sand.u32 (%p3719_p3), 1, %s3633_s22  }
   0xf   : > { %s3480_s8 = smul.u32 (%p3719_p3), 48, %s3641_s24  ;;  %s3165_s9 = sshll.u32 (%p3719_p3), %s250_s7, 4 }
  0x10   : > { %s252_s13 = scalar_lea.vmem (%p3719_p3), [#allocation5], %s3165_s9 }
  0x11   : > { %s258_s12 = scalar_lea.vmem (%p3719_p3), %s4142_s0, %s3480_s8 }
  0x12   : > { %v288_v0 = vld [vmem:[%s258_s12] sm:$0xff] (%p3719_p3)  ;;  %v290_v1 = vld [vmem:[%s258_s12 + $0x18] sm:$0xff] (%p3719_p3) }
  0x13   : > { %289 = vst [vmem:[%s252_s13] sm:$0xff] (%p3719_p3), %v288_v0  ;;  %291 = vst [vmem:[%s252_s13 + $0x8] sm:$0xff] (%p3719_p3), %v290_v1 }
  0x15 PF: > { %297 = sbr.rel (!%p3719_p3) target bundleno = 28 (0x1c), region = 66  ;;  %s299_s14 = sand.u32 (%p3719_p3), 1, %s3633_s22  }
  0x16   : > { %s3168_s15 = smul.u32 (%p3719_p3), 48, %s3641_s24  ;;  %s3167_s16 = sshll.u32 (%p3719_p3), %s299_s14, 4 }
  0x17   : > { %s301_s20 = scalar_lea.vmem (%p3719_p3), [#allocation6], %s3167_s16 }
  0x18   : > { %s3049_s19 = scalar_lea.vmem (%p3719_p3), %s4143_s1, %s3168_s15 }
  0x19   : > { %v3169_v2 = vld [vmem:[%s3049_s19 + $0x8] sm:$0xff] (%p3719_p3)  ;;  %v3170_v3 = vld [vmem:[%s3049_s19 + $0x20] sm:$0xff] (%p3719_p3) }
  0x1a   : > { %341 = vst [vmem:[%s301_s20] sm:$0xff] (%p3719_p3), %v3169_v2  ;;  %343 = vst [vmem:[%s301_s20 + $0x8] sm:$0xff] (%p3719_p3), %v3170_v3 }
  0x1c PF: > { %349 = sbr.rel (!%p3719_p3) target bundleno = 35 (0x23), region = 104  ;;  %s351_s28 = sand.u32 (%p3719_p3), 1, %s3633_s22  }
  0x1d   : > { %s3172_s29 = smul.u32 (%p3719_p3), 48, %s3641_s24  ;;  %s3171_s7 = sshll.u32 (%p3719_p3), %s351_s28, 4 }
  0x1e   : > { %s353_s11 = scalar_lea.vmem (%p3719_p3), [#allocation7], %s3171_s7 }
  0x1f   : > { %s3057_s10 = scalar_lea.vmem (%p3719_p3), %s4144_s2, %s3172_s29 }
  0x20   : > { %v3173_v4 = vld [vmem:[%s3057_s10 + $0x10] sm:$0xff] (%p3719_p3)  ;;  %v3174_v5 = vld [vmem:[%s3057_s10 + $0x28] sm:$0xff] (%p3719_p3) }
  0x21   : > { %393 = vst [vmem:[%s353_s11] sm:$0xff] (%p3719_p3), %v3173_v4  ;;  %395 = vst [vmem:[%s353_s11 + $0x8] sm:$0xff] (%p3719_p3), %v3174_v5 }
  0x23 PF: > { %p3175_p6 = scmp.ge.s32.totalorder %s3645_s25, 1  ;;  %p413_p7 = scmp.lt.s32.totalorder %s3645_s25, 3 }
  0x25   : > { %p414_p8 = pnand %p3175_p6, %p413_p7 }
  0x26   : > { %s420_s27 = sand.u32 (!%p414_p8), 1, %s3629_s21   ;;  %vm534_vm0 = vcmask (!%p414_p8), 261120   ;;  %vm517_vm2 = vcmask (!%p414_p8), 7168   ;;  %v3647_v12 = vmov (!%p414_p8), -1e+30   ;;  %v1555_v13 = vlaneseq (!%p414_p8)  ;;  %s3650_s21 = smov (!%p414_p8), 96  }
  0x27   : > { %417 = sbr.rel (%p414_p8) target bundleno = 2104 (0x838), region = 146  ;;  %s3754_s12 = sshll.u32 (!%p414_p8), %s420_s27, 4  ;;  %vm3758_vm1 = vmpackc.low (!%p414_p8), %vm534_vm0, %vm534_vm0  ;;  %518 = vst.msk [vmem:[#allocation3] sm:$0xff] (!%p414_p8), %vm517_vm2, %v3647_v12  ;;  %vm1661_vm4 = vcmask (!%p414_p8), 130048   ;;  %v3648_v25 = vmov (!%p414_p8), 0   ;;  %v3649_v27 = vmov (!%p414_p8), 0.0  }
  0x28   : > { %s429_s13 = scalar_lea.vmem (!%p414_p8), [#allocation6], %s3754_s12  ;;  %s422_s14 = scalar_lea.vmem (!%p414_p8), [#allocation5], %s3754_s12  ;;  %519 = vst.msk [vmem:[#allocation3 + $0x8] sm:$0xff] (!%p414_p8), %vm517_vm2, %v3647_v12  ;;  %520 = vst.msk [vmem:[#allocation3 + $0x10] sm:$0xff] (!%p414_p8), %vm517_vm2, %v3647_v12  ;;  %v3784_v14 = vshrl.u32 (!%p414_p8), %v1555_v13, 7  ;;  %v3786_v15 = vand.u32 (!%p414_p8), 127, %v1555_v13  ;;  %3527 = vset.pattern.permute.xlu1 (!%p414_p8), %v3648_v25  ;;  %3538 = vset.pattern.permute.xlu0 (!%p414_p8), %v3648_v25 }
  0x29   : > { %v1551_v7 = vld [vmem:[%s429_s13] sm:$0xff] (!%p414_p8)  ;;  %v1552_v8 = vld [vmem:[%s429_s13 + $0x8] sm:$0xff] (!%p414_p8)  ;;  %521 = vst.msk [vmem:[#allocation3 + $0x18] sm:$0xff] (!%p414_p8), %vm517_vm2, %v3647_v12  ;;  %522 = vst.msk [vmem:[#allocation3 + $0x20] sm:$0xff] (!%p414_p8), %vm517_vm2, %v3647_v12  ;;  %s436_s15 = scalar_lea.vmem (!%p414_p8), [#allocation7], %s3754_s12  ;;  %s3651_s16 = smov (!%p414_p8), 64  }
  0x2a   : > { %v3764_v9 = vld [vmem:[%s422_s14] sm:$0xff] (!%p414_p8)  ;;  %v3400_v10 = vpack.c.bf16 (!%p414_p8), %v1552_v8, %v1551_v7  ;;  %v3772_v11 = vld [vmem:[%s422_s14 + $0x8] sm:$0xff] (!%p414_p8)  ;;  %523 = vst.msk [vmem:[#allocation3 + $0x28] sm:$0xff] (!%p414_p8), %vm517_vm2, %v3647_v12  ;;  %524 = vst.msk [vmem:[#allocation3 + $0x30] sm:$0xff] (!%p414_p8), %vm517_vm2, %v3647_v12  ;;  %v3789_v16 = vadd.s32 (!%p414_p8), 8, %v3784_v14  ;;  %vm1565_vm3 = vcmp.le.s32.totalorder (!%p414_p8), %v3786_v15, %v3784_v14  ;;  %v3803_v26 = vpack.i.bf16 (!%p414_p8), %v1552_v8, %v1551_v7  ;;  %s3652_s17 = smov (!%p414_p8), 32  }
  0x2b   : > { %3304 = vmatprep.mubr.msk.f32.mxu1 (!%p414_p8), %vm534_vm0, %v3764_v9  ;;  %525 = vst.msk [vmem:[#allocation3 + $0x38] sm:$0xff] (!%p414_p8), %vm517_vm2, %v3647_v12  ;;  %526 = vst.msk [vmem:[#allocation4] sm:$0xff] (!%p414_p8), %vm517_vm2, %v3649_v27  ;;  %v3844_v36 = vld [vmem:[%s436_s15] sm:$0xff] (!%p414_p8)  ;;  %v3846_v37 = vld [vmem:[%s436_s15 + $0x8] sm:$0xff] (!%p414_p8)  ;;  %p492_p9 = scmp.lt.s32.totalorder (!%p414_p8), %s3637_s23, 1 }
  0x2c   : > { %3402 = vmatprep.subr.msk.bf16.mxu1 (!%p414_p8), %vm3758_vm1, %v3400_v10  ;;  %vm1566_vm5 = vcmp.le.s32.totalorder (!%p414_p8), %v3786_v15, %v3789_v16  ;;  %527 = vst.msk [vmem:[#allocation4 + $0x8] sm:$0xff] (!%p414_p8), %vm517_vm2, %v3649_v27  ;;  %528 = vst.msk [vmem:[#allocation4 + $0x10] sm:$0xff] (!%p414_p8), %vm517_vm2, %v3649_v27  ;;  %v3406_v38 = vpack.c.bf16 (!%p414_p8), %v3846_v37, %v3844_v36 }
  0x2d   : > { %3405 = vmatpush3.bf16.xpose.msk.msra.mxu1 (!%p414_p8), %vm3758_vm1, %v3400_v10  ;;  %529 = vst.msk [vmem:[#allocation4 + $0x18] sm:$0xff] (!%p414_p8), %vm517_vm2, %v3649_v27  ;;  %530 = vst.msk [vmem:[#allocation4 + $0x20] sm:$0xff] (!%p414_p8), %vm517_vm2, %v3649_v27 }
  0x2e   : > { %531 = vst.msk [vmem:[#allocation4 + $0x28] sm:$0xff] %vm517_vm2, %v3649_v27  ;;  %532 = vst.msk [vmem:[#allocation4 + $0x30] sm:$0xff] %vm517_vm2, %v3649_v27  ;;  %v3823_v28 = vld [vmem:[#allocation3] sm:$0xff]  ;;  %3407 = vmatprep.subr.bf16.mxu1 %v3406_v38  ;;  %s4159_s23 = smov (!%p492_p9, %s3637_s23), 1 }
  0x2f   : > { %533 = vst.msk [vmem:[#allocation4 + $0x38] sm:$0xff] %vm517_vm2, %v3649_v27  ;;  %v3828_v31 = vld [vmem:[#allocation3 + $0x8] sm:$0xff] }
  0x30   : > { %535 = vst.msk [vmem:[#allocation2] sm:$0xff] %vm534_vm0, %v3649_v27  ;;  %536 = vst.msk [vmem:[#allocation2 + $0x8] sm:$0xff] %vm534_vm0, %v3649_v27  ;;  %v3894_v10 = vld [vmem:[#allocation3 + $0x20] sm:$0xff] }
  0x31   : > { %537 = vst.msk [vmem:[#allocation2 + $0x10] sm:$0xff] %vm534_vm0, %v3649_v27  ;;  %538 = vst.msk [vmem:[#allocation2 + $0x18] sm:$0xff] %vm534_vm0, %v3649_v27  ;;  %v3892_v8 = vld [vmem:[#allocation3 + $0x28] sm:$0xff] }
  0x32   : > { %539 = vst.msk [vmem:[#allocation2 + $0x20] sm:$0xff] %vm534_vm0, %v3649_v27  ;;  %540 = vst.msk [vmem:[#allocation2 + $0x28] sm:$0xff] %vm534_vm0, %v3649_v27 }
  0x33   : > { %541 = vst.msk [vmem:[#allocation2 + $0x30] sm:$0xff] %vm534_vm0, %v3649_v27  ;;  %542 = vst.msk [vmem:[#allocation2 + $0x38] sm:$0xff] %vm534_vm0, %v3649_v27 }
  0x34   : > { %3305 = vmatmul.mubr.msk.f32.vlgmr.msra.gmra.mrb[0].mxu1 %vm534_vm0, %v3772_v11 }
  0x35   : > { %3409 = vmatpush3.bf16.msra.mxu1 %v3406_v38 }
 0x107   : > { %v3306_v17 = vpop.f32.mrb[0].mxu1 }
 0x108   : > { %v1646_v18 = vpop.f32.mrb[1].mxu1  ;;  %v1656_v19 = vmul.f32 0.17677669, %v3306_v17 }
 0x109   : > { %v1655_v20 = vmul.f32 0.17677669, %v1646_v18 }
 0x10a   : > { %v1658_v23 = vsel %vm1566_vm5, %v1656_v19, -1e+30 }
 0x10b   : > { %v1657_v21 = vsel %vm1565_vm3, %v1655_v20, -1e+30  ;;  %v1665_v24 = vsel %vm1661_vm4, %v1658_v23, -inf  ;;  %v3909_v20 = vpack.i.bf16 %v3846_v37, %v3844_v36 }
 0x10c   : > { %v1662_v22 = vsel %vm1661_vm4, %v1657_v21, -inf }
 0x10d   : > { %1663 = vmax.xlane.f32.xlu0 %v1662_v22 }
 0x111   : > { %1666 = vmax.xlane.f32.xlu0 %v1665_v24 }
 0x127   : > { %3529 = vrot.lane.b32.xlu0 %v3803_v26, %s3650_s21 }
 0x19a   : > { %v1664_v29 = vpop.xlane.xlu0 %1663 }
 0x19b   : > { %v3826_v30 = vmax.f32 %v3823_v28, %v1664_v29 }
 0x19d   : > { %v1670_v32 = vsub.f32 %v3823_v28, %v3826_v30  ;;  %1806 = vst.msk [vmem:[#allocation3] sm:$0xff] %vm517_vm2, %v3826_v30  ;;  %1678 = vperm.xlu1 %3527, %v3826_v30  }
 0x19e   : > { %v1667_v33 = vpop.xlane.xlu0 %1666 }
 0x19f   : > { %v3836_v34 = vmax.f32 %v3828_v31, %v1667_v33 }
 0x1a1   : > { %v1671_v35 = vsub.f32 %v3828_v31, %v3836_v34  ;;  %1807 = vst.msk [vmem:[#allocation3 + $0x8] sm:$0xff] %vm517_vm2, %v3836_v34  ;;  %1683 = vperm.xlu1 %3527, %v3836_v34   ;;  %v1692_v31 = vld [vmem:[#allocation4] sm:$0xff] }
 0x1a2   : > { %v3530_v39 = vpop.permute.xlu0 %3529 }
 0x1a3   : > { %v3532_v40 = vunpack.i.h.bf16 %v3530_v39  ;;  %v3531_v41 = vunpack.i.l.bf16 %v3530_v39 }
 0x1a5   : > { %3534 = vrot.lane.b32.xlu1 %v3803_v26, %s3651_s16  ;;  %v3410_v42 = vpack.c.bf16 %v3532_v40, %v3531_v41 }
 0x1a7   : > { %3412 = vmatprep.subr.msk.bf16.mxu1 %vm3758_vm1, %v3410_v42 }
 0x1a9   : > { %1808 = vrot.lane.b32.xlu1 %v3764_v9, %s3650_s21 }
 0x1ad   : > { %1810 = vrot.lane.b32.xlu1 %v3772_v11, %s3650_s21 }
 0x1b1   : > { %2061 = vrot.lane.b32.xlu1 %v3764_v9, %s3651_s16 }
 0x1b5   : > { %2063 = vrot.lane.b32.xlu1 %v3772_v11, %s3651_s16 }
 0x21c   : > { %v1679_v43 = vpop.permute.xlu1 %1678 }
 0x21d   : > { %v1686_v44 = vsub.f32 %v1657_v21, %v1679_v43 }
 0x21f   : > { %v1688_v45 = vmul.f32 1.442695, %v1686_v44 }
 0x220   : > { %v1684_v46 = vpop.permute.xlu1 %1683 }
 0x221   : > { %3559 = vpow2.f32 %v1688_v45  ;;  %v1687_v47 = vsub.f32 %v1658_v23, %v1684_v46 }
 0x223   : > { %v1690_v48 = vmul.f32 1.442695, %v1687_v47 }
 0x224   : > { %v3535_v49 = vpop.permute.xlu1 %3534 }
 0x225   : > { %3561 = vpow2.f32 %v1690_v48  ;;  %v3537_v50 = vunpack.i.h.bf16 %v3535_v49  ;;  %v3536_v51 = vunpack.i.l.bf16 %v3535_v49 }
 0x227   : > { %v3420_v54 = vpack.c.bf16 %v3537_v50, %v3536_v51  ;;  %v3949_v50 = vld [vmem:[#allocation3 + $0x18] sm:$0xff] }
 0x228   : > { %v1809_v52 = vpop.permute.xlu1 %1808 }
 0x22b   : > { %v3862_v53 = vpop.eup %3559 }
 0x22c   : > { %3311 = vmatprep.mubr.msk.f32.mxu1 %vm1661_vm4, %v3862_v53  ;;  %v1811_v56 = vpop.permute.xlu1 %1810 }
 0x22f   : > { %v3866_v55 = vpop.eup %3561 }
 0x230   : > { %3312 = vmatmul.mubr.msk.f32.vlgmr.msra.gmra.mrb[2].mxu1 %vm1661_vm4, %v3866_v55  ;;  %v2062_v57 = vpop.permute.xlu1 %2061 }
 0x231   : > { %3415 = vmatpush3.bf16.xpose.msk.msra.mxu1 %vm3758_vm1, %v3410_v42  ;;  %3318 = vmatprep.mubr.msk.f32.mxu1 %vm534_vm0, %v1809_v52 }
 0x232   : > { %3422 = vmatprep.subr.msk.bf16.mxu1 %vm3758_vm1, %v3420_v54 }
 0x234   : > { %v2064_v58 = vpop.permute.xlu1 %2063 }
 0x238   : > { %3319 = vmatmul.mubr.msk.f32.vlgmr.msra.gmra.mrb[4].mxu1 %vm534_vm0, %v1811_v56 }
 0x239   : > { %3425 = vmatpush3.bf16.xpose.msk.msra.mxu1 %vm3758_vm1, %v3420_v54  ;;  %3332 = vmatprep.mubr.msk.f32.mxu1 %vm534_vm0, %v2062_v57  ;;  %v3956_v54 = vld [vmem:[#allocation3 + $0x10] sm:$0xff] }
 0x240   : > { %3333 = vmatmul.mubr.msk.f32.vlgmr.msra.gmra.mrb[6].mxu1 %vm534_vm0, %v2064_v58 }
 0x303   : > { %v3880_v59 = vpop.f32.mrb[2].mxu1 }
 0x304   : > { %v3882_v60 = vpop.f32.mrb[3].mxu1 }
 0x30b   : > { %v3320_v61 = vpop.f32.mrb[4].mxu1 }
 0x30c   : > { %v1890_v62 = vpop.f32.mrb[5].mxu1  ;;  %v1900_v22 = vmul.f32 0.17677669, %v3320_v61 }
 0x30d   : > { %v1899_v25 = vmul.f32 0.17677669, %v1890_v62 }
 0x30e   : > { %v3927_v23 = vsel %vm1566_vm5, %v1900_v22, -1e+30 }
 0x30f   : > { %v1909_v24 = vsel %vm1661_vm4, %v3927_v23, -inf }
 0x313   : > { %v3334_v63 = vpop.f32.mrb[6].mxu1 }
 0x314   : > { %v2153_v0 = vmul.f32 0.17677669, %v3334_v63  ;;  %v2143_v1 = vpop.f32.mrb[7].mxu1 }
 0x315   : > { %v2152_v2 = vmul.f32 0.17677669, %v2143_v1 }
 0x316   : > { %v2155_v3 = vsel %vm1566_vm5, %v2153_v0, -1e+30 }
 0x317   : > { %v2162_v4 = vsel %vm1661_vm4, %v2155_v3, -inf  ;;  %v2154_v5 = vsel %vm1565_vm3, %v2152_v2, -1e+30 }
 0x318   : > { %2163 = vmax.xlane.f32.xlu0 %v2162_v4  ;;  %v2159_v7 = vsel %vm1661_vm4, %v2154_v5, -inf }
 0x319   : > { %2160 = vmax.xlane.f32.xlu1 %v2159_v7  ;;  %v3979_v7 = vld [vmem:[#allocation3 + $0x30] sm:$0xff] }
 0x3a5   : > { %v2164_v12 = vpop.xlane.xlu0 %2163 }
 0x3a6   : > { %v3897_v13 = vmax.f32 %v3892_v8, %v2164_v12  ;;  %v2161_v17 = vpop.xlane.xlu1 %2160 }
 0x3a7   : > { %v3900_v18 = vmax.f32 %v3894_v10, %v2161_v17 }
 0x3a8   : > { %v2168_v19 = vsub.f32 %v3892_v8, %v3897_v13  ;;  %2311 = vst.msk [vmem:[#allocation3 + $0x28] sm:$0xff] %vm517_vm2, %v3897_v13  ;;  %2180 = vperm.xlu1 %3527, %v3897_v13   ;;  %v1938_v13 = vld [vmem:[#allocation4 + $0x18] sm:$0xff] }
 0x3a9   : > { %v2167_v21 = vsub.f32 %v3894_v10, %v3900_v18  ;;  %2310 = vst.msk [vmem:[#allocation3 + $0x20] sm:$0xff] %vm517_vm2, %v3900_v18  ;;  %2175 = vperm.xlu0 %3538, %v3900_v18  }
 0x3ac   : > { %3540 = vrot.lane.b32.xlu1 %v3909_v20, %s3651_s16 }
 0x3b0   : > { %3545 = vrot.lane.b32.xlu1 %v3803_v26, %s3652_s17  ;;  %v3934_v26 = vsel %vm1565_vm3, %v1899_v25, -1e+30 }
 0x3b4   : > { %2312 = vrot.lane.b32.xlu1 %v3764_v9, %s3652_s17  ;;  %v1906_v9 = vsel %vm1661_vm4, %v3934_v26, -inf }
 0x3b8   : > { %2314 = vrot.lane.b32.xlu1 %v3772_v11, %s3652_s17 }
 0x3c8   : > { %1910 = vmax.xlane.f32.xlu0 %v1909_v24 }
 0x3dc   : > { %1907 = vmax.xlane.f32.xlu1 %v1906_v9 }
 0x427   : > { %v2181_v11 = vpop.permute.xlu1 %2180 }
 0x428   : > { %v2184_v27 = vsub.f32 %v2155_v3, %v2181_v11  ;;  %v2176_v29 = vpop.permute.xlu0 %2175 }
 0x429   : > { %v2183_v33 = vsub.f32 %v2154_v5, %v2176_v29  ;;  %v3977_v5 = vld [vmem:[#allocation3 + $0x38] sm:$0xff] }
 0x42a   : > { %v2187_v36 = vmul.f32 1.442695, %v2184_v27 }
 0x42b   : > { %v2185_v37 = vmul.f32 1.442695, %v2183_v33  ;;  %v3541_v38 = vpop.permute.xlu1 %3540 }
 0x42c   : > { %v3543_v39 = vunpack.i.h.bf16 %v3541_v38  ;;  %v3542_v40 = vunpack.i.l.bf16 %v3541_v38 }
 0x42d   : > { %3563 = vpow2.f32 %v2185_v37 }
 0x42e   : > { %3565 = vpow2.f32 %v2187_v36  ;;  %v3426_v41 = vpack.c.bf16 %v3543_v39, %v3542_v40  ;;  %v1696_v36 = vsel %vm1661_vm4, %v3862_v53, 0.0 }
 0x42f   : > { %v3546_v42 = vpop.permute.xlu1 %3545 }
 0x430   : > { %3427 = vmatprep.subr.bf16.mxu1 %v3426_v41  ;;  %v3548_v43 = vunpack.i.h.bf16 %v3546_v42  ;;  %v3547_v44 = vunpack.i.l.bf16 %v3546_v42 }
 0x431   : > { %3429 = vmatpush3.bf16.msra.mxu1 %v3426_v41 }
 0x432   : > { %v3430_v45 = vpack.c.bf16 %v3548_v43, %v3547_v44 }
 0x433   : > { %v2313_v47 = vpop.permute.xlu1 %2312 }
 0x434   : > { %3432 = vmatprep.subr.msk.bf16.mxu1 %vm3758_vm1, %v3430_v45 }
 0x437   : > { %v3940_v46 = vpop.eup %3563  ;;  %v2315_v49 = vpop.permute.xlu1 %2314 }
 0x438   : > { %v3566_v48 = vpop.eup %3565  ;;  %3339 = vmatprep.mubr.msk.f32.mxu1 %vm1661_vm4, %v3940_v46  ;;  %v2194_v39 = vsel %vm1661_vm4, %v3940_v46, 0.0 }
 0x439   : > { %3340 = vmatmul.mubr.msk.f32.vlgmr.msra.gmra.mrb[8].mxu1 %vm1661_vm4, %v3566_v48 }
 0x43a   : > { %3435 = vmatpush3.bf16.xpose.msk.msra.mxu1 %vm3758_vm1, %v3430_v45  ;;  %3346 = vmatprep.mubr.msk.f32.mxu1 %vm534_vm0, %v2313_v47 }
 0x441   : > { %3347 = vmatmul.mubr.msk.f32.vlgmr.msra.gmra.mrb[10].mxu1 %vm534_vm0, %v2315_v49 }
 0x455   : > { %v1911_v51 = vpop.xlane.xlu0 %1910 }
 0x456   : > { %v3952_v52 = vmax.f32 %v3949_v50, %v1911_v51 }
 0x458   : > { %2060 = vst.msk [vmem:[#allocation3 + $0x18] sm:$0xff] %vm517_vm2, %v3952_v52 }
 0x469   : > { %v1908_v56 = vpop.xlane.xlu1 %1907 }
 0x46a   : > { %v3959_v6 = vmax.f32 %v3956_v54, %v1908_v56 }
 0x46c   : > { %2059 = vst.msk [vmem:[#allocation3 + $0x10] sm:$0xff] %vm517_vm2, %v3959_v6 }
 0x50c   : > { %v3963_v57 = vpop.f32.mrb[8].mxu1 }
 0x50d   : > { %v3965_v58 = vpop.f32.mrb[9].mxu1 }
 0x514   : > { %v3348_v61 = vpop.f32.mrb[10].mxu1 }
 0x515   : > { %v2404_v62 = vmul.f32 0.17677669, %v3348_v61  ;;  %v2394_v63 = vpop.f32.mrb[11].mxu1 }
 0x516   : > { %v2403_v0 = vmul.f32 0.17677669, %v2394_v63 }
 0x517   : > { %v2406_v1 = vsel %vm1566_vm5, %v2404_v62, -1e+30 }
 0x518   : > { %v2413_v2 = vsel %vm1661_vm4, %v2406_v1, -inf  ;;  %v2405_v3 = vsel %vm1565_vm3, %v2403_v0, -1e+30 }
 0x519   : > { %2414 = vmax.xlane.f32.xlu0 %v2413_v2  ;;  %v2410_v4 = vsel %vm1661_vm4, %v2405_v3, -inf  ;;  %v1914_v2 = vsub.f32 %v3956_v54, %v3959_v6  ;;  %v1937_v54 = vld [vmem:[#allocation4 + $0x10] sm:$0xff] }
 0x51a   : > { %2411 = vmax.xlane.f32.xlu1 %v2410_v4  ;;  %v1915_v4 = vsub.f32 %v3949_v50, %v3952_v52  ;;  %v2169_v50 = vmul.f32 1.442695, %v2167_v21 }
 0x52b   : > { %1922 = vperm.xlu1 %3527, %v3959_v6  }
 0x52f   : > { %1927 = vperm.xlu0 %3538, %v3952_v52  }
 0x5a6   : > { %v2415_v16 = vpop.xlane.xlu0 %2414 }
 0x5a7   : > { %v3982_v12 = vmax.f32 %v3977_v5, %v2415_v16  ;;  %v2412_v17 = vpop.xlane.xlu1 %2411  ;;  %v1916_v16 = vmul.f32 1.442695, %v1914_v2 }
 0x5a8   : > { %v3985_v14 = vmax.f32 %v3979_v7, %v2412_v17  ;;  %v1918_v17 = vmul.f32 1.442695, %v1915_v4  ;;  %v2442_v4 = vld [vmem:[#allocation4 + $0x38] sm:$0xff] }
 0x5a9   : > { %v2419_v15 = vsub.f32 %v3977_v5, %v3982_v12  ;;  %2562 = vst.msk [vmem:[#allocation3 + $0x38] sm:$0xff] %vm517_vm2, %v3982_v12  ;;  %2431 = vperm.xlu0 %3538, %v3982_v12   ;;  %v2703_v5 = vld [vmem:[%s4146_s4 + $0x20] sm:$0xff]  ;;  %v2704_v12 = vld [vmem:[%s4146_s4 + $0x28] sm:$0xff] }
 0x5aa   : > { %v2418_v22 = vsub.f32 %v3979_v7, %v3985_v14  ;;  %2561 = vst.msk [vmem:[#allocation3 + $0x30] sm:$0xff] %vm517_vm2, %v3985_v14  ;;  %2426 = vperm.xlu1 %3527, %v3985_v14  }
 0x5ab   : > { %v1923_v24 = vpop.permute.xlu1 %1922 }
 0x5ac   : > { %v1930_v25 = vsub.f32 %v3934_v26, %v1923_v24 }
 0x5ae   : > { %v1932_v9 = vmul.f32 1.442695, %v1930_v25  ;;  %3550 = vrot.lane.b32.xlu1 %v3909_v20, %s3650_s21  ;;  %v1928_v11 = vpop.permute.xlu0 %1927  ;;  %s3242_s21 = sshll.u32 %s4159_s23, 4 }
 0x5af   : > { %v1931_v29 = vsub.f32 %v3927_v23, %v1928_v11  ;;  %v1699_v23 = vsel %vm1661_vm4, %v3866_v55, 0.0  ;;  %s509_s29 = scalar_lea.vmem %s4148_s6, %s3242_s21 }
 0x5b0   : > { %3567 = vpow2.f32 %v1932_v9 }
 0x5b1   : > { %v1934_v33 = vmul.f32 1.442695, %v1931_v29  ;;  %v2191_v29 = vld [vmem:[#allocation4 + $0x28] sm:$0xff] }
 0x5b2   : > { %3555 = vrot.lane.b32.xlu1 %v3909_v20, %s3652_s17  ;;  %v2197_v20 = vsel %vm1661_vm4, %v3566_v48, 0.0  ;;  %s499_s17 = scalar_lea.vmem %s4145_s3, %s3242_s21 }
 0x5b3   : > { %3569 = vpow2.f32 %v1934_v33 }
 0x5ba   : > { %v3568_v27 = vpop.eup %3567 }
 0x5bb   : > { %3325 = vmatprep.mubr.msk.f32.mxu0 %vm1661_vm4, %v3568_v27  ;;  %v1941_v26 = vsel %vm1661_vm4, %v3568_v27, 0.0 }
 0x5bd   : > { %v3570_v37 = vpop.eup %3569 }
 0x5be   : > { %v1944_v38 = vsel %vm1661_vm4, %v3570_v37, 0.0 }
 0x5c8   : > { %1697 = vadd.xlane.f32.xlu0 %v1696_v36  ;;  %v1693_v36 = vld [vmem:[#allocation4 + $0x8] sm:$0xff] }
 0x5cc   : > { %1942 = vadd.xlane.f32.xlu0 %v1941_v26 }
 0x5d0   : > { %1945 = vadd.xlane.f32.xlu0 %v1944_v38 }
 0x5d4   : > { %2198 = vadd.xlane.f32.xlu0 %v2197_v20 }
 0x5d6   : > { %1700 = vadd.xlane.f32.xlu1 %v1699_v23  ;;  %v2190_v23 = vld [vmem:[#allocation4 + $0x20] sm:$0xff] }
 0x5da   : > { %2195 = vadd.xlane.f32.xlu1 %v2194_v39 }
 0x628   : > { %v2432_v53 = vpop.permute.xlu0 %2431 }
 0x629   : > { %v2435_v40 = vsub.f32 %v2406_v1, %v2432_v53  ;;  %v2427_v41 = vpop.permute.xlu1 %2426  ;;  %v1672_v1 = vmul.f32 1.442695, %v1670_v32  ;;  %v2171_v32 = vmul.f32 1.442695, %v2168_v19 }
 0x62a   : > { %v2434_v42 = vsub.f32 %v2405_v3, %v2427_v41  ;;  %v1674_v3 = vmul.f32 1.442695, %v1671_v35 }
 0x62b   : > { %v2438_v43 = vmul.f32 1.442695, %v2435_v40 }
 0x62c   : > { %v2436_v44 = vmul.f32 1.442695, %v2434_v42  ;;  %v2420_v42 = vmul.f32 1.442695, %v2418_v22 }
 0x62d   : > { %3571 = vpow2.f32 %v2438_v43  ;;  %v3551_v45 = vpop.permute.xlu1 %3550 }
 0x62e   : > { %3573 = vpow2.f32 %v2436_v44  ;;  %v3553_v47 = vunpack.i.h.bf16 %v3551_v45  ;;  %v3552_v48 = vunpack.i.l.bf16 %v3551_v45 }
 0x62f   : > { %3575 = vpow2.f32 %v1672_v1 }
 0x630   : > { %v3416_v49 = vpack.c.bf16 %v3553_v47, %v3552_v48  ;;  %3577 = vpow2.f32 %v1674_v3  ;;  %v2595_v47 = vld [vmem:[%s4146_s4] sm:$0xff]  ;;  %v2596_v48 = vld [vmem:[%s4146_s4 + $0x8] sm:$0xff] }
 0x631   : > { %v3556_v51 = vpop.permute.xlu1 %3555  ;;  %3579 = vpow2.f32 %v1916_v16  ;;  %v3440_v14 = vpack.c.bf16 %v2596_v48, %v2595_v47  ;;  %v2441_v16 = vld [vmem:[#allocation4 + $0x30] sm:$0xff]  ;;  %v1953_v48 = vld [vmem:[#allocation2 + $0x18] sm:$0xff] }
 0x632   : > { %v3558_v56 = vunpack.i.h.bf16 %v3556_v51  ;;  %v3557_v55 = vunpack.i.l.bf16 %v3556_v51  ;;  %3417 = vmatprep.subr.bf16.mxu0 %v3416_v49  ;;  %3581 = vpow2.f32 %v1918_v17  ;;  %v2597_v51 = vld [vmem:[%s4146_s4 + $0x10] sm:$0xff] }
 0x633   : > { %3419 = vmatpush3.bf16.msra.mxu0 %v3416_v49  ;;  %3583 = vpow2.f32 %v2171_v32 }
 0x634   : > { %v3436_v61 = vpack.c.bf16 %v3558_v56, %v3557_v55  ;;  %3585 = vpow2.f32 %v2169_v50  ;;  %v2598_v56 = vld [vmem:[%s4146_s4 + $0x18] sm:$0xff] }
 0x635   : > { %v3444_v55 = vpack.c.bf16 %v2598_v56, %v2597_v51 }
 0x636   : > { %3326 = vmatmul.mubr.msk.f32.vlgmr.msra.gmra.mrb[0].mxu0 %vm1661_vm4, %v3570_v37  ;;  %3437 = vmatprep.subr.bf16.mxu0 %v3436_v61 }
 0x637   : > { %v3572_v46 = vpop.eup %3571  ;;  %3439 = vmatpush3.bf16.msra.mxu0 %v3436_v61 }
 0x638   : > { %v3574_v62 = vpop.eup %3573  ;;  %v2448_v63 = vsel %vm1661_vm4, %v3572_v46, 0.0  ;;  %3441 = vmatprep.subr.bf16.mxu0 %v3440_v14 }
 0x639   : > { %2449 = vadd.xlane.f32.xlu0 %v2448_v63  ;;  %3353 = vmatprep.mubr.msk.f32.mxu0 %vm1661_vm4, %v3574_v62  ;;  %v2445_v0 = vsel %vm1661_vm4, %v3574_v62, 0.0  ;;  %v3576_v24 = vpop.eup %3575 }
 0x63a   : > { %2446 = vadd.xlane.f32.xlu1 %v2445_v0  ;;  %3354 = vmatmul.mubr.msk.f32.vlgmr.msra.gmra.mrb[2].mxu0 %vm1661_vm4, %v3572_v46  ;;  %v3578_v28 = vpop.eup %3577  ;;  %v1694_v35 = vmul.f32 %v3576_v24, %v1692_v31  ;;  %v2422_v46 = vmul.f32 1.442695, %v2419_v15  ;;  %v3448_v15 = vpack.c.bf16 %v2704_v12, %v2703_v5 }
 0x63b   : > { %v3580_v30 = vpop.eup %3579  ;;  %v1695_v37 = vmul.f32 %v3578_v28, %v1693_v36  ;;  %3443 = vmatpush3.bf16.msra.mxu0 %v3440_v14 }
 0x63c   : > { %v3582_v34 = vpop.eup %3581  ;;  %v1939_v25 = vmul.f32 %v3580_v30, %v1937_v54  ;;  %3445 = vmatprep.subr.bf16.mxu0 %v3444_v55 }
 0x63d   : > { %v1940_v9 = vmul.f32 %v3582_v34, %v1938_v13  ;;  %v3584_v11 = vpop.eup %3583 }
 0x63e   : > { %v2193_v18 = vmul.f32 %v3584_v11, %v2191_v29  ;;  %v3586_v38 = vpop.eup %3585 }
 0x63f   : > { %v2192_v40 = vmul.f32 %v3586_v38, %v2190_v23  ;;  %3447 = vmatpush3.bf16.msra.mxu0 %v3444_v55  ;;  %v2456_v55 = vld [vmem:[#allocation2 + $0x30] sm:$0xff] }
 0x640   : > { %3449 = vmatprep.subr.bf16.mxu0 %v3448_v15 }
 0x64b   : > { %1711 = vperm.xlu1 %3527, %v3576_v24  }
 0x64f   : > { %1716 = vperm.xlu0 %3538, %v3578_v28   ;;  %1956 = vperm.xlu1 %3527, %v3580_v30  }
 0x653   : > { %1961 = vperm.xlu1 %3527, %v3582_v34   ;;  %v1707_v34 = vld [vmem:[#allocation2] sm:$0xff] }
 0x655   : > { %v1698_v52 = vpop.xlane.xlu0 %1697 }
 0x656   : > { %v1702_v6 = vadd.f32 %v1698_v52, %v1694_v35  ;;  %v1708_v52 = vld [vmem:[#allocation2 + $0x8] sm:$0xff] }
 0x658   : > { %1705 = vst.msk [vmem:[#allocation4] sm:$0xff] %vm517_vm2, %v1702_v6 }
 0x659   : > { %v1943_v8 = vpop.xlane.xlu0 %1942 }
 0x65a   : > { %v1947_v19 = vadd.f32 %v1943_v8, %v1939_v25 }
 0x65c   : > { %1949 = vst.msk [vmem:[#allocation4 + $0x10] sm:$0xff] %vm517_vm2, %v1947_v19 }
 0x65d   : > { %v1946_v27 = vpop.xlane.xlu0 %1945 }
 0x65e   : > { %v1948_v33 = vadd.f32 %v1946_v27, %v1940_v9 }
 0x65f   : > { %v2579_v10 = vld [vmem:[#allocation4] sm:$0xff] }
 0x660   : > { %1950 = vst.msk [vmem:[#allocation4 + $0x18] sm:$0xff] %vm517_vm2, %v1948_v33  ;;  %3587 = vrcp.f32 %v2579_v10 }
 0x661   : > { %v2199_v21 = vpop.xlane.xlu0 %2198 }
 0x662   : > { %v2201_v26 = vadd.f32 %v2199_v21, %v2193_v18 }
 0x663   : > { %v1701_v20 = vpop.xlane.xlu1 %1700  ;;  %v2687_v53 = vld [vmem:[#allocation4 + $0x10] sm:$0xff] }
 0x664   : > { %2203 = vst.msk [vmem:[#allocation4 + $0x28] sm:$0xff] %vm517_vm2, %v2201_v26  ;;  %v1703_v39 = vadd.f32 %v1701_v20, %v1695_v37  ;;  %3589 = vrcp.f32 %v2687_v53  ;;  %v2705_v26 = vld [vmem:[%s4146_s4 + $0x30] sm:$0xff]  ;;  %v2706_v37 = vld [vmem:[%s4146_s4 + $0x38] sm:$0xff]  ;;  %v2206_v53 = vld [vmem:[#allocation2 + $0x28] sm:$0xff] }
 0x665   : > { %3591 = vpow2.f32 %v2420_v42 }
 0x666   : > { %1706 = vst.msk [vmem:[#allocation4 + $0x8] sm:$0xff] %vm517_vm2, %v1703_v39  ;;  %v3452_v39 = vpack.c.bf16 %v2706_v37, %v2705_v26 }
 0x667   : > { %v2196_v41 = vpop.xlane.xlu1 %2195  ;;  %v2688_v49 = vld [vmem:[#allocation4 + $0x18] sm:$0xff] }
 0x668   : > { %v2200_v43 = vadd.f32 %v2196_v41, %v2192_v40  ;;  %v2811_v40 = vld [vmem:[%s4146_s4 + $0x48] sm:$0xff] }
 0x66a   : > { %v3588_v44 = vpop.eup %3587  ;;  %2202 = vst.msk [vmem:[#allocation4 + $0x20] sm:$0xff] %vm517_vm2, %v2200_v43 }
 0x66b   : > { %2585 = vperm.xlu0 %3538, %v3588_v44   ;;  %v2795_v63 = vld [vmem:[#allocation4 + $0x28] sm:$0xff] }
 0x66d   : > { %v2580_v45 = vld [vmem:[#allocation4 + $0x8] sm:$0xff] }
 0x66e   : > { %3593 = vrcp.f32 %v2580_v45  ;;  %v3590_v22 = vpop.eup %3589 }
 0x66f   : > { %2209 = vperm.xlu0 %3538, %v3586_v38   ;;  %v3592_v61 = vpop.eup %3591 }
 0x670   : > { %v2443_v28 = vmul.f32 %v3592_v61, %v2441_v16 }
 0x671   : > { %v2794_v7 = vld [vmem:[#allocation4 + $0x20] sm:$0xff] }
 0x672   : > { %3595 = vrcp.f32 %v2794_v7  ;;  %v1952_v7 = vld [vmem:[#allocation2 + $0x10] sm:$0xff] }
 0x673   : > { %2693 = vperm.xlu0 %3538, %v3590_v22   ;;  %3597 = vrcp.f32 %v2688_v49  ;;  %v2457_v49 = vld [vmem:[#allocation2 + $0x38] sm:$0xff] }
 0x674   : > { %3599 = vpow2.f32 %v2422_v46 }
 0x675   : > { %3601 = vrcp.f32 %v2795_v63 }
 0x677   : > { %2460 = vperm.xlu0 %3538, %v3592_v61  }
 0x678   : > { %v3594_v62 = vpop.eup %3593 }
 0x679   : > { %2590 = vperm.xlu1 %3527, %v3594_v62  }
 0x67c   : > { %v3596_v0 = vpop.eup %3595 }
 0x67d   : > { %2214 = vperm.xlu1 %3527, %v3584_v11   ;;  %2800 = vperm.xlu0 %3538, %v3596_v0   ;;  %v3598_v1 = vpop.eup %3597 }
 0x67e   : > { %v3600_v2 = vpop.eup %3599 }
 0x67f   : > { %v3602_v3 = vpop.eup %3601  ;;  %v2444_v17 = vmul.f32 %v3600_v2, %v2442_v4  ;;  %v2813_v4 = vld [vmem:[%s4146_s4 + $0x58] sm:$0xff] }
 0x681   : > { %2698 = vperm.xlu1 %3527, %v3598_v1  }
 0x685   : > { %2465 = vperm.xlu1 %3527, %v3600_v2  }
 0x689   : > { %2805 = vperm.xlu1 %3527, %v3602_v3  }
 0x6c6   : > { %v2450_v24 = vpop.xlane.xlu0 %2449 }
 0x6c7   : > { %v2452_v30 = vadd.f32 %v2450_v24, %v2444_v17  ;;  %v2447_v32 = vpop.xlane.xlu1 %2446 }
 0x6c8   : > { %v2451_v31 = vadd.f32 %v2447_v32, %v2443_v28 }
 0x6c9   : > { %2454 = vst.msk [vmem:[#allocation4 + $0x38] sm:$0xff] %vm517_vm2, %v2452_v30 }
 0x6ca   : > { %2453 = vst.msk [vmem:[#allocation4 + $0x30] sm:$0xff] %vm517_vm2, %v2451_v31 }
 0x6cb   : > { %v1712_v35 = vpop.permute.xlu1 %1711 }
 0x6cc   : > { %v1719_v50 = vmul.f32 %v1712_v35, %v1707_v34  ;;  %v2917_v34 = vld [vmem:[%s4146_s4 + $0x60] sm:$0xff]  ;;  %v2918_v35 = vld [vmem:[%s4146_s4 + $0x68] sm:$0xff] }
 0x6ce   : > { %v1802_v54 = vadd.f32 %v3882_v60, %v1719_v50  ;;  %v1717_v6 = vpop.permute.xlu0 %1716  ;;  %v2205_v60 = vld [vmem:[#allocation2 + $0x20] sm:$0xff]  ;;  %v3464_v50 = vpack.c.bf16 %v2918_v35, %v2917_v34 }
 0x6cf   : > { %v1720_v25 = vmul.f32 %v1717_v6, %v1708_v52  ;;  %v1957_v36 = vpop.permute.xlu1 %1956  ;;  %v2919_v6 = vld [vmem:[%s4146_s4 + $0x70] sm:$0xff] }
 0x6d0   : > { %1804 = vst.msk [vmem:[#allocation2] sm:$0xff] %vm534_vm0, %v1802_v54  ;;  %v2902_v8 = vld [vmem:[#allocation4 + $0x38] sm:$0xff]  ;;  %v1964_v22 = vmul.f32 %v1957_v36, %v1952_v7  ;;  %v3231_v36 = vld [vmem:[%s4147_s5] ss:$0 sm:$0xff] }
 0x6d1   : > { %v1803_v13 = vadd.f32 %v3880_v59, %v1720_v25  ;;  %3603 = vrcp.f32 %v2902_v8  ;;  %v2901_v19 = vld [vmem:[#allocation4 + $0x30] sm:$0xff]  ;;  %v2920_v25 = vld [vmem:[%s4146_s4 + $0x78] sm:$0xff] }
 0x6d2   : > { %3605 = vrcp.f32 %v2901_v19 }
 0x6d3   : > { %1805 = vst.msk [vmem:[#allocation2 + $0x8] sm:$0xff] %vm534_vm0, %v1803_v13  ;;  %v1962_v21 = vpop.permute.xlu1 %1961  ;;  %v3468_v13 = vpack.c.bf16 %v2920_v25, %v2919_v6 }
 0x6d4   : > { %v1965_v14 = vmul.f32 %v1962_v21, %v1953_v48 }
 0x6d7   : > { %v2577_v29 = vld [vmem:[#allocation2] sm:$0xff] }
 0x6da   : > { %v2578_v38 = vld [vmem:[#allocation2 + $0x8] sm:$0xff] }
 0x6db   : > { %v3604_v9 = vpop.eup %3603 }
 0x6dc   : > { %v3606_v11 = vpop.eup %3605  ;;  %2912 = vperm.xlu1 %3527, %v3604_v9  }
 0x6dd   : > { %2907 = vperm.xlu0 %3538, %v3606_v11  }
 0x6ea   : > { %v2586_v27 = vpop.permute.xlu0 %2585 }
 0x6eb   : > { %v2593_v33 = vmul.f32 %v2586_v27, %v2577_v29 }
 0x6ed   : > { %3364 = vmatprep.mubr.msk.f32.mxu0 %vm534_vm0, %v2593_v33 }
 0x6ee   : > { %v2210_v10 = vpop.permute.xlu0 %2209 }
 0x6ef   : > { %v2217_v18 = vmul.f32 %v2210_v10, %v2205_v60  ;;  %v2567_v60 = vld [vmem:[%s499_s17 + $0x8] sm:$0xff]  ;;  %v2566_v10 = vld [vmem:[%s499_s17] sm:$0xff] }
 0x6f1   : > { %v2306_v59 = vadd.f32 %v3965_v58, %v2217_v18  ;;  %v2810_v58 = vld [vmem:[%s4146_s4 + $0x40] sm:$0xff]  ;;  %v2576_v18 = vadd.f32 %v3231_v36, %v2567_v60 }
 0x6f2   : > { %v3456_v43 = vpack.c.bf16 %v2811_v40, %v2810_v58  ;;  %v2694_v47 = vpop.permute.xlu0 %2693 }
 0x6f3   : > { %2308 = vst.msk [vmem:[#allocation2 + $0x20] sm:$0xff] %vm534_vm0, %v2306_v59  ;;  %v2575_v59 = vadd.f32 %v3231_v36, %v2566_v10 }
 0x6f6   : > { %v2461_v61 = vpop.permute.xlu0 %2460 }
 0x6f8   : > { %v2591_v20 = vpop.permute.xlu1 %2590 }
 0x6f9   : > { %v2594_v23 = vmul.f32 %v2591_v20, %v2578_v38 }
 0x6fa   : > { %v2791_v28 = vld [vmem:[#allocation2 + $0x20] sm:$0xff] }
 0x6fb   : > { %3365 = vmatmul.mubr.msk.f32.vlgmr.msra.gmra.mrb[4].mxu0 %vm534_vm0, %v2594_v23 }
 0x6fc   : > { %v2215_v41 = vpop.permute.xlu1 %2214  ;;  %3451 = vmatpush3.bf16.msra.mxu0 %v3448_v15  ;;  %v2812_v15 = vld [vmem:[%s4146_s4 + $0x50] sm:$0xff]  ;;  %v2801_v16 = vpop.permute.xlu0 %2800 }
 0x6fd   : > { %v2218_v42 = vmul.f32 %v2215_v41, %v2206_v53  ;;  %3453 = vmatprep.subr.bf16.mxu0 %v3452_v39  ;;  %v3460_v32 = vpack.c.bf16 %v2813_v4, %v2812_v15  ;;  %v2808_v31 = vmul.f32 %v2801_v16, %v2791_v28 }
 0x6ff   : > { %v2307_v44 = vadd.f32 %v3963_v57, %v2218_v42  ;;  %v2468_v57 = vmul.f32 %v2461_v61, %v2456_v55 }
 0x700   : > { %3455 = vmatpush3.bf16.msra.mxu0 %v3452_v39  ;;  %v2699_v45 = vpop.permute.xlu1 %2698 }
 0x701   : > { %2309 = vst.msk [vmem:[#allocation2 + $0x28] sm:$0xff] %vm534_vm0, %v2307_v44  ;;  %3457 = vmatprep.subr.bf16.mxu0 %v3456_v43 }
 0x704   : > { %v2466_v51 = vpop.permute.xlu1 %2465 }
 0x705   : > { %v2469_v0 = vmul.f32 %v2466_v51, %v2457_v49 }
 0x708   : > { %v2792_v52 = vld [vmem:[#allocation2 + $0x28] sm:$0xff]  ;;  %v2806_v54 = vpop.permute.xlu1 %2805 }
 0x709   : > { %v3327_v56 = vpop.f32.mrb[0].mxu0  ;;  %v2809_v8 = vmul.f32 %v2806_v54, %v2792_v52 }
 0x70a   : > { %v2056_v46 = vadd.f32 %v3327_v56, %v1965_v14  ;;  %v2046_v62 = vpop.f32.mrb[1].mxu0 }
 0x70b   : > { %v2055_v63 = vadd.f32 %v2046_v62, %v1964_v22 }
 0x70c   : > { %2058 = vst.msk [vmem:[#allocation2 + $0x18] sm:$0xff] %vm534_vm0, %v2056_v46 }
 0x70d   : > { %2057 = vst.msk [vmem:[#allocation2 + $0x10] sm:$0xff] %vm534_vm0, %v2055_v63  ;;  %v3355_v1 = vpop.f32.mrb[2].mxu0 }
 0x70e   : > { %v2558_v2 = vadd.f32 %v3355_v1, %v2469_v0  ;;  %v2548_v3 = vpop.f32.mrb[3].mxu0 }
 0x70f   : > { %v2557_v5 = vadd.f32 %v2548_v3, %v2468_v57 }
 0x710   : > { %2560 = vst.msk [vmem:[#allocation2 + $0x38] sm:$0xff] %vm534_vm0, %v2558_v2 }
 0x711   : > { %2559 = vst.msk [vmem:[#allocation2 + $0x30] sm:$0xff] %vm534_vm0, %v2557_v5 }
 0x713   : > { %v2685_v12 = vld [vmem:[#allocation2 + $0x18] sm:$0xff] }
 0x714   : > { %v2684_v17 = vld [vmem:[#allocation2 + $0x10] sm:$0xff]  ;;  %v2702_v30 = vmul.f32 %v2699_v45, %v2685_v12 }
 0x715   : > { %v2701_v24 = vmul.f32 %v2694_v47, %v2684_v17 }
 0x717   : > { %3375 = vmatprep.mubr.msk.f32.mxu0 %vm534_vm0, %v2701_v24  ;;  %v2899_v27 = vld [vmem:[#allocation2 + $0x38] sm:$0xff] }
 0x718   : > { %3376 = vmatmul.mubr.msk.f32.vlgmr.msra.gmra.mrb[4].mxu0 %vm534_vm0, %v2702_v30  ;;  %v2898_v11 = vld [vmem:[#allocation2 + $0x30] sm:$0xff] }
 0x719   : > { %3459 = vmatpush3.bf16.msra.mxu0 %v3456_v43  ;;  %3386 = vmatprep.mubr.msk.f32.mxu0 %vm534_vm0, %v2808_v31 }
 0x71a   : > { %3461 = vmatprep.subr.bf16.mxu0 %v3460_v32 }
 0x71d   : > { %3463 = vmatpush3.bf16.msra.mxu0 %v3460_v32 }
 0x71e   : > { %3465 = vmatprep.subr.bf16.mxu0 %v3464_v50 }
 0x720   : > { %3387 = vmatmul.mubr.msk.f32.vlgmr.msra.gmra.mrb[4].mxu0 %vm534_vm0, %v2809_v8 }
 0x721   : > { %3467 = vmatpush3.bf16.msra.mxu0 %v3464_v50 }
 0x722   : > { %3469 = vmatprep.subr.bf16.mxu0 %v3468_v13 }
 0x725   : > { %3471 = vmatpush3.bf16.msra.mxu0 %v3468_v13 }
 0x75b   : > { %v2913_v19 = vpop.permute.xlu1 %2912 }
 0x75c   : > { %v2908_v9 = vpop.permute.xlu0 %2907  ;;  %v2916_v33 = vmul.f32 %v2913_v19, %v2899_v27 }
 0x75d   : > { %v2915_v29 = vmul.f32 %v2908_v9, %v2898_v11 }
 0x75f   : > { %3397 = vmatprep.mubr.msk.f32.mxu0 %vm534_vm0, %v2915_v29 }
 0x760   : > { %3398 = vmatmul.mubr.msk.f32.vlgmr.msra.gmra.mrb[4].mxu0 %vm534_vm0, %v2916_v33 }
 0x833   : > { %v3399_v21 = vpop.f32.mrb[4].mxu0 }
 0x834   : > { %v3472_v26 = vadd.f32 %v3399_v21, %v2576_v18  ;;  %v2993_v37 = vpop.f32.mrb[5].mxu0 }
 0x835   : > { %v3473_v38 = vadd.f32 %v2993_v37, %v2575_v59 }
 0x836   : > { %3005 = vst [vmem:[%s509_s29 + $0x8] sm:$0xff] %v3472_v26 }
 0x837   : > { %3004 = vst [vmem:[%s509_s29] sm:$0xff] %v3473_v38 }
 0x838 PF: > { %s16_s25 = sadd.s32 1, %s3645_s25   ;;  %s4152_s21 = smov %s3633_s22 }
 0x839   : > { %p13_p10 = scmp.ge.s32.totalorder %s16_s25, 4   ;;  %s4153_s22 = smov %s3727_s30 }
 0x83a   : > { %s4154_s23 = smov %s3641_s24  ;;  %s4155_s24 = smov %s4157_s26 }
 0x83b   :  { %15 = sbr.rel (!%p13_p10) target bundleno = 3 (0x3), region = 252 }

</bundles_post_ra>
